<compile_context>
chip_gen: v5e
topology: v5e:2x2
jax: 0.10.0
libtpu: 0.0.40
codegen_flags: <defaults>
</compile_context>

<pallas_src>
import jax
import jax.numpy as jnp
from jax.experimental import pallas as pl
from jax.experimental.pallas import tpu as pltpu

LANE = 128  # channel dims are rounded up to the TPU lane width


def _round_up(x, m):
    return ((x + m - 1) // m) * m


def _pick_tile_h(h):
    """Largest H-tile from a fixed menu that divides H and gives >=2 tiles."""
    for th in (32, 16, 8, 4, 2):
        if h % th == 0 and h // th >= 2:
            return th
    return h


def _double_conv_kernel(x_ref, w1_ref, s1_ref, t1_ref, w2_ref, s2_ref, t2_ref,
                        o_ref, mid_ref):
    # x_ref  : (H+4, W, 3*Cin)        bf16  dx-folded, H-padded input (resident per n)
    # w1_ref : (3, 3*Cin, Cmid_p)     bf16  conv1 weights, [dy, (dx,ci), o]
    # w2_ref : (3, 3*Cmid_p, Cout_p)  bf16  conv2 weights, [dx, (dy,ci), o]
    # s*/t*  : (1, C_p)               f32   folded conv-bias + BN scale/shift
    # o_ref  : (TH, W, Cout_p)        bf16  lane-dense output tile
    # mid_ref: (TH, W+2, 3*Cmid_p)    bf16  dy-folded, W-padded y1 scratch
    TH, W, _ = o_ref.shape
    cm3 = mid_ref.shape[2]
    cm = cm3 // 3
    h = pl.program_id(1)
    nh = pl.num_programs(1)
    r0 = h * TH  # first output row of this tile (leading-axis offset, alignment-free)

    # ---- conv1: 3 dy-taps, dx & Cin folded into K (K = 3*Cin) --------------
    # Computes TH+2 rows of y1 (1-row halo each side) so conv2 needs no
    # cross-tile communication.
    acc1 = jnp.zeros((TH + 2, W, w1_ref.shape[2]), jnp.float32)
    for dy in range(3):
        tap = x_ref[pl.ds(r0 + dy, TH + 2), :, :]          # leading-axis slice only
        acc1 = acc1 + jnp.einsum('hwk,ko->hwo', tap, w1_ref[dy],
                                 preferred_element_type=jnp.float32)
    y1 = acc1 * s1_ref[0] + t1_ref[0]                       # folded BN (inference)
    y1 = jnp.where(y1 >= 0.0, y1, 0.2 * y1).astype(mid_ref.dtype)  # LeakyReLU(0.2), bf16

    # ---- stage y1 into the dy-folded scratch --------------------------------
    # Channel group g holds y1 shifted down by g rows, so conv2's K dimension
    # already contains all 3 dy taps.  All channel-group stores are 128-lane
    # aligned; only the thin W-halo columns are re-zeroed each step.
    zcol = jnp.zeros((TH, 1, cm3), mid_ref.dtype)
    mid_ref[:, 0:1, :] = zcol
    mid_ref[:, W + 1:W + 2, :] = zcol
    for dy in range(3):
        mid_ref[:, 1:W + 1, dy * cm:(dy + 1) * cm] = y1[dy:dy + TH]

    @pl.when(h == 0)
    def _():  # conv2's top halo row lies outside the image -> zero (conv pad)
        mid_ref[0:1, :, 0:cm] = jnp.zeros((1, W + 2, cm), mid_ref.dtype)

    @pl.when(h == nh - 1)
    def _():  # conv2's bottom halo row lies outside the image -> zero
        mid_ref[TH - 1:TH, :, 2 * cm:3 * cm] = jnp.zeros((1, W + 2, cm), mid_ref.dtype)

    # ---- conv2: 3 dx-taps, dy & Cmid folded into K (K = 3*Cmid_p) -----------
    acc2 = jnp.zeros((TH, W, o_ref.shape[2]), jnp.float32)
    for dx in range(3):
        slab = mid_ref[:, dx:dx + W, :]                     # (TH, W, 3*Cmid_p) bf16
        acc2 = acc2 + jnp.einsum('hwk,ko->hwo', slab, w2_ref[dx],
                                 preferred_element_type=jnp.float32)
    y2 = acc2 * s2_ref[0] + t2_ref[0]
    y2 = jnp.where(y2 >= 0.0, y2, 0.2 * y2)
    o_ref[...] = y2.astype(o_ref.dtype)


def _fold_bn(conv_bias, gamma, beta, mean, var, eps=1e-5):
    """Fold conv bias + BatchNorm (inference, running stats) into scale/shift."""
    scale = gamma * jax.lax.rsqrt(var + eps)
    shift = beta + (conv_bias - mean) * scale
    return scale, shift


@jax.jit
def double_conv(x_nchw, w1, s1, t1, w2, s2, t2):
    """(conv3x3 pad=1 -> BN -> LeakyReLU(0.2)) x 2, inference-mode BN.

    x_nchw: (N, Cin, H, W) f32; w1: (3,3,Cin,Cmid), w2: (3,3,Cmid,Cout) HWIO;
    s*/t*: (C,) folded BN scale/shift.  Returns (N, Cout, H, W) f32.
    """
    N, Cin, H, W = x_nchw.shape
    Cmid, Cout = w1.shape[3], w2.shape[3]
    Cmid_p, Cout_p = _round_up(Cmid, LANE), _round_up(Cout, LANE)
    TH = _pick_tile_h(H)
    n_h = H // TH
    Cin3 = 3 * Cin

    # NCHW -> NHWC, bf16 activations for the MXU.
    x = jnp.transpose(x_nchw, (0, 2, 3, 1)).astype(jnp.bfloat16)
    # Pad H by 2 (covers conv1 halo of the recomputed y1 halo rows) and W by 1
    # (conv1's own zero padding), then fold the 3 dx shifts into channels so
    # every in-kernel conv1 tap is a dense, alignment-free leading-axis slice.
    xp = jnp.pad(x, ((0, 0), (2, 2), (1, 1), (0, 0)))
    x_im = jnp.concatenate([xp[:, :, d:d + W, :] for d in range(3)], axis=-1)

    # Weights: pad channel dims to the lane width (padded lanes get zero
    # weights / zero scale / zero shift so they stay exactly 0), bf16 operands.
    w1p = jnp.pad(w1, ((0, 0), (0, 0), (0, 0), (0, Cmid_p - Cmid)))
    w1p = w1p.reshape(3, Cin3, Cmid_p).astype(jnp.bfloat16)          # [dy,(dx,ci),o]
    w2p = jnp.pad(w2, ((0, 0), (0, 0), (0, Cmid_p - Cmid), (0, Cout_p - Cout)))
    w2p = jnp.transpose(w2p, (1, 0, 2, 3)).reshape(3, 3 * Cmid_p, Cout_p)
    w2p = w2p.astype(jnp.bfloat16)                                   # [dx,(dy,ci),o]
    s1p = jnp.pad(s1, (0, Cmid_p - Cmid)).reshape(1, Cmid_p).astype(jnp.float32)
    t1p = jnp.pad(t1, (0, Cmid_p - Cmid)).reshape(1, Cmid_p).astype(jnp.float32)
    s2p = jnp.pad(s2, (0, Cout_p - Cout)).reshape(1, Cout_p).astype(jnp.float32)
    t2p = jnp.pad(t2, (0, Cout_p - Cout)).reshape(1, Cout_p).astype(jnp.float32)

    # Scoped-VMEM budget from the actual block/scratch footprint (2x for
    # double buffering + working values), clamped under v7x's 64 MiB.
    blocks = ((H + 4) * W * Cin3 * 2 + 3 * Cin3 * Cmid_p * 2
              + 9 * Cmid_p * Cout_p * 2 + 2 * (Cmid_p + Cout_p) * 4
              + TH * W * Cout_p * 2)
    scratch = TH * (W + 2) * 3 * Cmid_p * 2
    work = (TH + 2) * W * Cmid_p * 4 + TH * W * Cout_p * 4 + TH * W * 3 * Cmid_p * 2
    vmem_limit = int(min(max(2 * (blocks + work) + scratch, 32 * 2**20), 64 * 2**20))

    out = pl.pallas_call(
        _double_conv_kernel,
        out_shape=jax.ShapeDtypeStruct((N, H, W, Cout_p), jnp.bfloat16),
        grid_spec=pltpu.PrefetchScalarGridSpec(
            num_scalar_prefetch=0,
            grid=(N, n_h),
            in_specs=[
                # Input stays resident across the h axis (constant block index),
                # so it is DMA'd once per batch element.
                pl.BlockSpec((None, H + 4, W, Cin3), lambda n, h: (n, 0, 0, 0)),
                pl.BlockSpec((3, Cin3, Cmid_p), lambda n, h: (0, 0, 0)),
                pl.BlockSpec((1, Cmid_p), lambda n, h: (0, 0)),
                pl.BlockSpec((1, Cmid_p), lambda n, h: (0, 0)),
                pl.BlockSpec((3, 3 * Cmid_p, Cout_p), lambda n, h: (0, 0, 0)),
                pl.BlockSpec((1, Cout_p), lambda n, h: (0, 0)),
                pl.BlockSpec((1, Cout_p), lambda n, h: (0, 0)),
            ],
            out_specs=pl.BlockSpec((None, TH, W, Cout_p), lambda n, h: (n, h, 0, 0)),
            scratch_shapes=[
                pltpu.VMEM((TH, W + 2, 3 * Cmid_p), jnp.bfloat16),
            ],
        ),
        compiler_params=pltpu.CompilerParams(
            dimension_semantics=("parallel", "parallel"),
            vmem_limit_bytes=vmem_limit),
    )(x_im, w1p, s1p, t1p, w2p, s2p, t2p)

    # Drop padded channels, NHWC -> NCHW, back to f32 at the module boundary
    # (single fused XLA pass over the bf16 kernel output).
    return jnp.transpose(out[:, :, :, :Cout], (0, 3, 1, 2)).astype(jnp.float32)


def _reference(x_nchw, w1, s1, t1, w2, s2, t2):
    """Pure-JAX reference matching the kernel's bf16-operand / f32-accum path."""
    dn = ('NHWC', 'HWIO', 'NHWC')
    x = jnp.transpose(x_nchw, (0, 2, 3, 1)).astype(jnp.bfloat16)
    y = jax.lax.conv_general_dilated(
        x, w1.astype(jnp.bfloat16), (1, 1), 'SAME',
        dimension_numbers=jax.lax.conv_dimension_numbers(x.shape, w1.shape, dn),
        preferred_element_type=jnp.float32)
    y = y * s1 + t1
    y = jnp.where(y >= 0, y, 0.2 * y).astype(jnp.bfloat16)
    z = jax.lax.conv_general_dilated(
        y, w2.astype(jnp.bfloat16), (1, 1), 'SAME',
        dimension_numbers=jax.lax.conv_dimension_numbers(y.shape, w2.shape, dn),
        preferred_element_type=jnp.float32)
    z = z * s2 + t2
    z = jnp.where(z >= 0, z, 0.2 * z).astype(jnp.bfloat16).astype(jnp.float32)
    return jnp.transpose(z, (0, 3, 1, 2))


if __name__ == "__main__":
    N, Cin, Cout, H, W = 2, 4, 8, 16, 16

    key = jax.random.PRNGKey(0)
    kx, kw1, kb1, kw2, kb2, kg1, kbt1, kg2, kbt2 = jax.random.split(key, 9)

    x = jax.random.normal(kx, (N, Cin, H, W), jnp.float32)

    # Conv weights in HWIO layout (deterministic synthetic init).
    w1 = jax.random.normal(kw1, (3, 3, Cin, Cout), jnp.float32) * 0.1
    b1 = jax.random.normal(kb1, (Cout,), jnp.float32) * 0.1
    w2 = jax.random.normal(kw2, (3, 3, Cout, Cout), jnp.float32) * 0.1
    b2 = jax.random.normal(kb2, (Cout,), jnp.float32) * 0.1

    # BatchNorm parameters / running stats (inference mode).
    gamma1 = 1.0 + 0.1 * jax.random.normal(kg1, (Cout,), jnp.float32)
    beta1 = 0.1 * jax.random.normal(kbt1, (Cout,), jnp.float32)
    mean1 = jnp.linspace(-0.2, 0.2, Cout, dtype=jnp.float32)
    var1 = jnp.linspace(0.8, 1.2, Cout, dtype=jnp.float32)

    gamma2 = 1.0 + 0.1 * jax.random.normal(kg2, (Cout,), jnp.float32)
    beta2 = 0.1 * jax.random.normal(kbt2, (Cout,), jnp.float32)
    mean2 = jnp.linspace(-0.1, 0.3, Cout, dtype=jnp.float32)
    var2 = jnp.linspace(0.9, 1.1, Cout, dtype=jnp.float32)

    s1, t1 = _fold_bn(b1, gamma1, beta1, mean1, var1)
    s2, t2 = _fold_bn(b2, gamma2, beta2, mean2, var2)

    out = double_conv(x, w1, s1, t1, w2, s2, t2)
    out = jax.block_until_ready(out)

    ref = _reference(x, w1, s1, t1, w2, s2, t2)
    assert out.shape == (N, Cout, H, W)
    # Kernel emits bf16 (halved HBM writeback), so compare against a bf16-
    # rounded reference with a tolerance covering one bf16 ulp at |y| ~ 2.
    max_err = float(jnp.max(jnp.abs(out - ref)))
    assert max_err < 5e-2, f"max abs err {max_err}"

    print("KERNEL_OK")
</pallas_src>

<mosaic_0001>
module attributes {stable_mosaic.version = 11 : i64} {
  func.func @_double_conv_kernel(%arg0: i32, %arg1: i32, %arg2: memref<1x20x16x12xbf16, #tpu.memory_space<vmem>>, %arg3: memref<3x12x128xbf16, #tpu.memory_space<vmem>>, %arg4: memref<1x128xf32, #tpu.memory_space<vmem>>, %arg5: memref<1x128xf32, #tpu.memory_space<vmem>>, %arg6: memref<3x384x128xbf16, #tpu.memory_space<vmem>>, %arg7: memref<1x128xf32, #tpu.memory_space<vmem>>, %arg8: memref<1x128xf32, #tpu.memory_space<vmem>>, %arg9: memref<1x8x16x128xbf16, #tpu.memory_space<vmem>>, %arg10: memref<8x18x384xbf16, #tpu.memory_space<vmem>>) attributes {dimension_semantics = [#tpu.dimension_semantics<parallel>, #tpu.dimension_semantics<parallel>], iteration_bounds = array<i64: 2, 2>, scalar_prefetch = 0 : i64, scratch_operands = 1 : i64, tpu.core_type = #tpu.core_type<tc>, window_params = [{transform_indices = @transform_0, window_bounds = array<i64: 1, 20, 16, 12>}, {pipeline_mode = #tpu.pipeline_mode<synchronous>, transform_indices = @transform_1, window_bounds = array<i64: 3, 12, 128>}, {pipeline_mode = #tpu.pipeline_mode<synchronous>, transform_indices = @transform_2, window_bounds = array<i64: 1, 128>}, {pipeline_mode = #tpu.pipeline_mode<synchronous>, transform_indices = @transform_3, window_bounds = array<i64: 1, 128>}, {pipeline_mode = #tpu.pipeline_mode<synchronous>, transform_indices = @transform_4, window_bounds = array<i64: 3, 384, 128>}, {pipeline_mode = #tpu.pipeline_mode<synchronous>, transform_indices = @transform_5, window_bounds = array<i64: 1, 128>}, {pipeline_mode = #tpu.pipeline_mode<synchronous>, transform_indices = @transform_6, window_bounds = array<i64: 1, 128>}, {transform_indices = @transform_7, window_bounds = array<i64: 1, 8, 16, 128>}]} {
    %c8_i32 = arith.constant 8 : i32
    %0 = arith.muli %arg1, %c8_i32 : i32
    %cst = arith.constant 0.000000e+00 : f32
    %1 = vector.broadcast %cst : f32 to vector<10x16x128xf32>
    %c0_i32 = arith.constant 0 : i32
    %2 = arith.addi %0, %c0_i32 : i32
    %c0 = arith.constant 0 : index
    %3 = arith.index_cast %2 : i32 to index
    %c0_0 = arith.constant 0 : index
    %c0_1 = arith.constant 0 : index
    %4 = vector.load %arg2[%c0, %3, %c0_0, %c0_1] : memref<1x20x16x12xbf16, #tpu.memory_space<vmem>>, vector<1x10x16x12xbf16>
    %5 = vector.shape_cast %4 : vector<1x10x16x12xbf16> to vector<10x16x12xbf16>
    %c0_2 = arith.constant 0 : index
    %c0_3 = arith.constant 0 : index
    %c0_4 = arith.constant 0 : index
    %6 = vector.load %arg3[%c0_2, %c0_3, %c0_4] : memref<3x12x128xbf16, #tpu.memory_space<vmem>>, vector<1x12x128xbf16>
    %7 = vector.shape_cast %6 : vector<1x12x128xbf16> to vector<12x128xbf16>
    "tpu.trace_start"() <{level = 10 : i32, message = "hwk,ko->hwo"}> : () -> ()
    %cst_5 = arith.constant dense<0.000000e+00> : vector<10x16x128xf32>
    %8 = tpu.matmul %5, %7, %cst_5 {dimension_numbers = #tpu.dot_dimension_numbers<[2], [0], [0, 1], [1], [0, 0, 0, 1, 1, 1], [], []>} : vector<10x16x12xbf16>, vector<12x128xbf16>, vector<10x16x128xf32> -> vector<10x16x128xf32>
    "tpu.trace_stop"() : () -> ()
    %9 = arith.addf %1, %8 : vector<10x16x128xf32>
    %c1_i32 = arith.constant 1 : i32
    %10 = arith.addi %0, %c1_i32 : i32
    %c0_6 = arith.constant 0 : index
    %11 = arith.index_cast %10 : i32 to index
    %c0_7 = arith.constant 0 : index
    %c0_8 = arith.constant 0 : index
    %12 = vector.load %arg2[%c0_6, %11, %c0_7, %c0_8] : memref<1x20x16x12xbf16, #tpu.memory_space<vmem>>, vector<1x10x16x12xbf16>
    %13 = vector.shape_cast %12 : vector<1x10x16x12xbf16> to vector<10x16x12xbf16>
    %c1 = arith.constant 1 : index
    %c0_9 = arith.constant 0 : index
    %c0_10 = arith.constant 0 : index
    %14 = vector.load %arg3[%c1, %c0_9, %c0_10] : memref<3x12x128xbf16, #tpu.memory_space<vmem>>, vector<1x12x128xbf16>
    %15 = vector.shape_cast %14 : vector<1x12x128xbf16> to vector<12x128xbf16>
    "tpu.trace_start"() <{level = 10 : i32, message = "hwk,ko->hwo"}> : () -> ()
    %cst_11 = arith.constant dense<0.000000e+00> : vector<10x16x128xf32>
    %16 = tpu.matmul %13, %15, %cst_11 {dimension_numbers = #tpu.dot_dimension_numbers<[2], [0], [0, 1], [1], [0, 0, 0, 1, 1, 1], [], []>} : vector<10x16x12xbf16>, vector<12x128xbf16>, vector<10x16x128xf32> -> vector<10x16x128xf32>
    "tpu.trace_stop"() : () -> ()
    %17 = arith.addf %9, %16 : vector<10x16x128xf32>
    %c2_i32 = arith.constant 2 : i32
    %18 = arith.addi %0, %c2_i32 : i32
    %c0_12 = arith.constant 0 : index
    %19 = arith.index_cast %18 : i32 to index
    %c0_13 = arith.constant 0 : index
    %c0_14 = arith.constant 0 : index
    %20 = vector.load %arg2[%c0_12, %19, %c0_13, %c0_14] : memref<1x20x16x12xbf16, #tpu.memory_space<vmem>>, vector<1x10x16x12xbf16>
    %21 = vector.shape_cast %20 : vector<1x10x16x12xbf16> to vector<10x16x12xbf16>
    %c2 = arith.constant 2 : index
    %c0_15 = arith.constant 0 : index
    %c0_16 = arith.constant 0 : index
    %22 = vector.load %arg3[%c2, %c0_15, %c0_16] : memref<3x12x128xbf16, #tpu.memory_space<vmem>>, vector<1x12x128xbf16>
    %23 = vector.shape_cast %22 : vector<1x12x128xbf16> to vector<12x128xbf16>
    "tpu.trace_start"() <{level = 10 : i32, message = "hwk,ko->hwo"}> : () -> ()
    %cst_17 = arith.constant dense<0.000000e+00> : vector<10x16x128xf32>
    %24 = tpu.matmul %21, %23, %cst_17 {dimension_numbers = #tpu.dot_dimension_numbers<[2], [0], [0, 1], [1], [0, 0, 0, 1, 1, 1], [], []>} : vector<10x16x12xbf16>, vector<12x128xbf16>, vector<10x16x128xf32> -> vector<10x16x128xf32>
    "tpu.trace_stop"() : () -> ()
    %25 = arith.addf %17, %24 : vector<10x16x128xf32>
    %c0_18 = arith.constant 0 : index
    %c0_19 = arith.constant 0 : index
    %26 = vector.load %arg4[%c0_18, %c0_19] : memref<1x128xf32, #tpu.memory_space<vmem>>, vector<1x128xf32>
    %27 = vector.shape_cast %26 : vector<1x128xf32> to vector<128xf32>
    %28 = vector.shape_cast %27 : vector<128xf32> to vector<1x1x128xf32>
    %29 = vector.broadcast %28 : vector<1x1x128xf32> to vector<10x16x128xf32>
    %30 = arith.mulf %25, %29 : vector<10x16x128xf32>
    %c0_20 = arith.constant 0 : index
    %c0_21 = arith.constant 0 : index
    %31 = vector.load %arg5[%c0_20, %c0_21] : memref<1x128xf32, #tpu.memory_space<vmem>>, vector<1x128xf32>
    %32 = vector.shape_cast %31 : vector<1x128xf32> to vector<128xf32>
    %33 = vector.shape_cast %32 : vector<128xf32> to vector<1x1x128xf32>
    %34 = vector.broadcast %33 : vector<1x1x128xf32> to vector<10x16x128xf32>
    %35 = arith.addf %30, %34 : vector<10x16x128xf32>
    %cst_22 = arith.constant 0.000000e+00 : f32
    %36 = vector.broadcast %cst_22 : f32 to vector<10x16x128xf32>
    %37 = arith.cmpf oge, %35, %36 : vector<10x16x128xf32>
    %cst_23 = arith.constant 2.000000e-01 : f32
    %38 = vector.broadcast %cst_23 : f32 to vector<10x16x128xf32>
    %39 = arith.mulf %38, %35 : vector<10x16x128xf32>
    %40 = arith.select %37, %35, %39 : vector<10x16x128xi1>, vector<10x16x128xf32>
    %41 = arith.truncf %40 : vector<10x16x128xf32> to vector<10x16x128xbf16>
    %cst_24 = arith.constant 0.000000e+00 : bf16
    %42 = vector.broadcast %cst_24 : bf16 to vector<8x1x384xbf16>
    %c0_25 = arith.constant 0 : index
    %c0_26 = arith.constant 0 : index
    %c0_27 = arith.constant 0 : index
    %43 = vector.load %arg10[%c0_25, %c0_26, %c0_27] : memref<8x18x384xbf16, #tpu.memory_space<vmem>>, vector<8x1x384xbf16>
    tpu.vector_store %arg10[%c0_25, %c0_26, %c0_27], %42 {strides = array<i32>} : memref<8x18x384xbf16, #tpu.memory_space<vmem>>, vector<8x1x384xbf16>,
    %c0_28 = arith.constant 0 : index
    %c17 = arith.constant 17 : index
    %c0_29 = arith.constant 0 : index
    %44 = vector.load %arg10[%c0_28, %c17, %c0_29] : memref<8x18x384xbf16, #tpu.memory_space<vmem>>, vector<8x1x384xbf16>
    tpu.vector_store %arg10[%c0_28, %c17, %c0_29], %42 {strides = array<i32>} : memref<8x18x384xbf16, #tpu.memory_space<vmem>>, vector<8x1x384xbf16>,
    %45 = vector.extract_strided_slice %41 {offsets = [0, 0, 0], sizes = [8, 16, 128], strides = [1, 1, 1]} : vector<10x16x128xbf16> to vector<8x16x128xbf16>
    %c0_30 = arith.constant 0 : index
    %c1_31 = arith.constant 1 : index
    %c0_32 = arith.constant 0 : index
    %46 = vector.load %arg10[%c0_30, %c1_31, %c0_32] : memref<8x18x384xbf16, #tpu.memory_space<vmem>>, vector<8x16x128xbf16>
    tpu.vector_store %arg10[%c0_30, %c1_31, %c0_32], %45 {strides = array<i32>} : memref<8x18x384xbf16, #tpu.memory_space<vmem>>, vector<8x16x128xbf16>,
    %47 = vector.extract_strided_slice %41 {offsets = [1, 0, 0], sizes = [8, 16, 128], strides = [1, 1, 1]} : vector<10x16x128xbf16> to vector<8x16x128xbf16>
    %c0_33 = arith.constant 0 : index
    %c1_34 = arith.constant 1 : index
    %c128 = arith.constant 128 : index
    %48 = vector.load %arg10[%c0_33, %c1_34, %c128] : memref<8x18x384xbf16, #tpu.memory_space<vmem>>, vector<8x16x128xbf16>
    tpu.vector_store %arg10[%c0_33, %c1_34, %c128], %47 {strides = array<i32>} : memref<8x18x384xbf16, #tpu.memory_space<vmem>>, vector<8x16x128xbf16>,
    %49 = vector.extract_strided_slice %41 {offsets = [2, 0, 0], sizes = [8, 16, 128], strides = [1, 1, 1]} : vector<10x16x128xbf16> to vector<8x16x128xbf16>
    %c0_35 = arith.constant 0 : index
    %c1_36 = arith.constant 1 : index
    %c256 = arith.constant 256 : index
    %50 = vector.load %arg10[%c0_35, %c1_36, %c256] : memref<8x18x384xbf16, #tpu.memory_space<vmem>>, vector<8x16x128xbf16>
    tpu.vector_store %arg10[%c0_35, %c1_36, %c256], %49 {strides = array<i32>} : memref<8x18x384xbf16, #tpu.memory_space<vmem>>, vector<8x16x128xbf16>,
    %c0_i32_37 = arith.constant 0 : i32
    %51 = arith.cmpi eq, %arg1, %c0_i32_37 : i32
    %52 = arith.extui %51 : i1 to i32
    %c0_i32_38 = arith.constant 0 : i32
    %53 = arith.cmpi ne, %52, %c0_i32_38 : i32
    scf.if %53 {
      %cst_73 = arith.constant 0.000000e+00 : bf16
      %92 = vector.broadcast %cst_73 : bf16 to vector<1x18x128xbf16>
      %c0_74 = arith.constant 0 : index
      %c0_75 = arith.constant 0 : index
      %c0_76 = arith.constant 0 : index
      %93 = vector.load %arg10[%c0_74, %c0_75, %c0_76] : memref<8x18x384xbf16, #tpu.memory_space<vmem>>, vector<1x18x128xbf16>
      tpu.vector_store %arg10[%c0_74, %c0_75, %c0_76], %92 {strides = array<i32>} : memref<8x18x384xbf16, #tpu.memory_space<vmem>>, vector<1x18x128xbf16>,
    } else {
    }
    %c1_i32_39 = arith.constant 1 : i32
    %54 = arith.cmpi eq, %arg1, %c1_i32_39 : i32
    %55 = arith.extui %54 : i1 to i32
    %c0_i32_40 = arith.constant 0 : i32
    %56 = arith.cmpi ne, %55, %c0_i32_40 : i32
    scf.if %56 {
      %cst_73 = arith.constant 0.000000e+00 : bf16
      %92 = vector.broadcast %cst_73 : bf16 to vector<1x18x128xbf16>
      %c7 = arith.constant 7 : index
      %c0_74 = arith.constant 0 : index
      %c256_75 = arith.constant 256 : index
      %93 = vector.load %arg10[%c7, %c0_74, %c256_75] : memref<8x18x384xbf16, #tpu.memory_space<vmem>>, vector<1x18x128xbf16>
      tpu.vector_store %arg10[%c7, %c0_74, %c256_75], %92 {strides = array<i32>} : memref<8x18x384xbf16, #tpu.memory_space<vmem>>, vector<1x18x128xbf16>,
    } else {
    }
    %cst_41 = arith.constant 0.000000e+00 : f32
    %57 = vector.broadcast %cst_41 : f32 to vector<8x16x128xf32>
    %c0_42 = arith.constant 0 : index
    %c0_43 = arith.constant 0 : index
    %c0_44 = arith.constant 0 : index
    %58 = vector.load %arg10[%c0_42, %c0_43, %c0_44] : memref<8x18x384xbf16, #tpu.memory_space<vmem>>, vector<8x16x384xbf16>
    %c0_45 = arith.constant 0 : index
    %c0_46 = arith.constant 0 : index
    %c0_47 = arith.constant 0 : index
    %59 = vector.load %arg6[%c0_45, %c0_46, %c0_47] : memref<3x384x128xbf16, #tpu.memory_space<vmem>>, vector<1x384x128xbf16>
    %60 = vector.shape_cast %59 : vector<1x384x128xbf16> to vector<384x128xbf16>
    "tpu.trace_start"() <{level = 10 : i32, message = "hwk,ko->hwo"}> : () -> ()
    %cst_48 = arith.constant dense<0.000000e+00> : vector<8x16x128xf32>
    %61 = tpu.matmul %58, %60, %cst_48 {dimension_numbers = #tpu.dot_dimension_numbers<[2], [0], [0, 1], [1], [0, 0, 0, 1, 1, 1], [], []>} : vector<8x16x384xbf16>, vector<384x128xbf16>, vector<8x16x128xf32> -> vector<8x16x128xf32>
    "tpu.trace_stop"() : () -> ()
    %62 = arith.addf %57, %61 : vector<8x16x128xf32>
    %c0_49 = arith.constant 0 : index
    %c1_50 = arith.constant 1 : index
    %c0_51 = arith.constant 0 : index
    %63 = vector.load %arg10[%c0_49, %c1_50, %c0_51] : memref<8x18x384xbf16, #tpu.memory_space<vmem>>, vector<8x16x384xbf16>
    %c1_52 = arith.constant 1 : index
    %c0_53 = arith.constant 0 : index
    %c0_54 = arith.constant 0 : index
    %64 = vector.load %arg6[%c1_52, %c0_53, %c0_54] : memref<3x384x128xbf16, #tpu.memory_space<vmem>>, vector<1x384x128xbf16>
    %65 = vector.shape_cast %64 : vector<1x384x128xbf16> to vector<384x128xbf16>
    "tpu.trace_start"() <{level = 10 : i32, message = "hwk,ko->hwo"}> : () -> ()
    %cst_55 = arith.constant dense<0.000000e+00> : vector<8x16x128xf32>
    %66 = tpu.matmul %63, %65, %cst_55 {dimension_numbers = #tpu.dot_dimension_numbers<[2], [0], [0, 1], [1], [0, 0, 0, 1, 1, 1], [], []>} : vector<8x16x384xbf16>, vector<384x128xbf16>, vector<8x16x128xf32> -> vector<8x16x128xf32>
    "tpu.trace_stop"() : () -> ()
    %67 = arith.addf %62, %66 : vector<8x16x128xf32>
    %c0_56 = arith.constant 0 : index
    %c2_57 = arith.constant 2 : index
    %c0_58 = arith.constant 0 : index
    %68 = vector.load %arg10[%c0_56, %c2_57, %c0_58] : memref<8x18x384xbf16, #tpu.memory_space<vmem>>, vector<8x16x384xbf16>
    %c2_59 = arith.constant 2 : index
    %c0_60 = arith.constant 0 : index
    %c0_61 = arith.constant 0 : index
    %69 = vector.load %arg6[%c2_59, %c0_60, %c0_61] : memref<3x384x128xbf16, #tpu.memory_space<vmem>>, vector<1x384x128xbf16>
    %70 = vector.shape_cast %69 : vector<1x384x128xbf16> to vector<384x128xbf16>
    "tpu.trace_start"() <{level = 10 : i32, message = "hwk,ko->hwo"}> : () -> ()
    %cst_62 = arith.constant dense<0.000000e+00> : vector<8x16x128xf32>
    %71 = tpu.matmul %68, %70, %cst_62 {dimension_numbers = #tpu.dot_dimension_numbers<[2], [0], [0, 1], [1], [0, 0, 0, 1, 1, 1], [], []>} : vector<8x16x384xbf16>, vector<384x128xbf16>, vector<8x16x128xf32> -> vector<8x16x128xf32>
    "tpu.trace_stop"() : () -> ()
    %72 = arith.addf %67, %71 : vector<8x16x128xf32>
    %c0_63 = arith.constant 0 : index
    %c0_64 = arith.constant 0 : index
    %73 = vector.load %arg7[%c0_63, %c0_64] : memref<1x128xf32, #tpu.memory_space<vmem>>, vector<1x128xf32>
    %74 = vector.shape_cast %73 : vector<1x128xf32> to vector<128xf32>
    %75 = vector.shape_cast %74 : vector<128xf32> to vector<1x1x128xf32>
    %76 = vector.broadcast %75 : vector<1x1x128xf32> to vector<8x16x128xf32>
    %77 = arith.mulf %72, %76 : vector<8x16x128xf32>
    %c0_65 = arith.constant 0 : index
    %c0_66 = arith.constant 0 : index
    %78 = vector.load %arg8[%c0_65, %c0_66] : memref<1x128xf32, #tpu.memory_space<vmem>>, vector<1x128xf32>
    %79 = vector.shape_cast %78 : vector<1x128xf32> to vector<128xf32>
    %80 = vector.shape_cast %79 : vector<128xf32> to vector<1x1x128xf32>
    %81 = vector.broadcast %80 : vector<1x1x128xf32> to vector<8x16x128xf32>
    %82 = arith.addf %77, %81 : vector<8x16x128xf32>
    %cst_67 = arith.constant 0.000000e+00 : f32
    %83 = vector.broadcast %cst_67 : f32 to vector<8x16x128xf32>
    %84 = arith.cmpf oge, %82, %83 : vector<8x16x128xf32>
    %cst_68 = arith.constant 2.000000e-01 : f32
    %85 = vector.broadcast %cst_68 : f32 to vector<8x16x128xf32>
    %86 = arith.mulf %85, %82 : vector<8x16x128xf32>
    %87 = arith.select %84, %82, %86 : vector<8x16x128xi1>, vector<8x16x128xf32>
    %88 = arith.truncf %87 : vector<8x16x128xf32> to vector<8x16x128xbf16>
    %c0_69 = arith.constant 0 : index
    %c0_70 = arith.constant 0 : index
    %c0_71 = arith.constant 0 : index
    %c0_72 = arith.constant 0 : index
    %89 = vector.load %arg9[%c0_69, %c0_70, %c0_71, %c0_72] : memref<1x8x16x128xbf16, #tpu.memory_space<vmem>>, vector<1x8x16x128xbf16>
    %90 = vector.shape_cast %89 : vector<1x8x16x128xbf16> to vector<8x16x128xbf16>
    %91 = vector.shape_cast %88 : vector<8x16x128xbf16> to vector<1x8x16x128xbf16>
    tpu.vector_store %arg9[%c0_69, %c0_70, %c0_71, %c0_72], %91 {strides = array<i32>} : memref<1x8x16x128xbf16, #tpu.memory_space<vmem>>, vector<1x8x16x128xbf16>,
    return
  }
  func.func @transform_0(%arg0: i32, %arg1: i32) -> (i32, i32, i32, i32) {
    %c0_i32 = arith.constant 0 : i32
    %c0_i32_0 = arith.constant 0 : i32
    %c0_i32_1 = arith.constant 0 : i32
    %c0_i32_2 = arith.constant 0 : i32
    return %arg0, %c0_i32, %c0_i32_0, %c0_i32_1 : i32, i32, i32, i32
  }
  func.func @transform_1(%arg0: i32, %arg1: i32) -> (i32, i32, i32) {
    %c0_i32 = arith.constant 0 : i32
    %c0_i32_0 = arith.constant 0 : i32
    %c0_i32_1 = arith.constant 0 : i32
    %c0_i32_2 = arith.constant 0 : i32
    return %c0_i32, %c0_i32_0, %c0_i32_1 : i32, i32, i32
  }
  func.func @transform_2(%arg0: i32, %arg1: i32) -> (i32, i32) {
    %c0_i32 = arith.constant 0 : i32
    %c0_i32_0 = arith.constant 0 : i32
    %c0_i32_1 = arith.constant 0 : i32
    return %c0_i32, %c0_i32_0 : i32, i32
  }
  func.func @transform_3(%arg0: i32, %arg1: i32) -> (i32, i32) {
    %c0_i32 = arith.constant 0 : i32
    %c0_i32_0 = arith.constant 0 : i32
    %c0_i32_1 = arith.constant 0 : i32
    return %c0_i32, %c0_i32_0 : i32, i32
  }
  func.func @transform_4(%arg0: i32, %arg1: i32) -> (i32, i32, i32) {
    %c0_i32 = arith.constant 0 : i32
    %c0_i32_0 = arith.constant 0 : i32
    %c0_i32_1 = arith.constant 0 : i32
    %c0_i32_2 = arith.constant 0 : i32
    return %c0_i32, %c0_i32_0, %c0_i32_1 : i32, i32, i32
  }
  func.func @transform_5(%arg0: i32, %arg1: i32) -> (i32, i32) {
    %c0_i32 = arith.constant 0 : i32
    %c0_i32_0 = arith.constant 0 : i32
    %c0_i32_1 = arith.constant 0 : i32
    return %c0_i32, %c0_i32_0 : i32, i32
  }
  func.func @transform_6(%arg0: i32, %arg1: i32) -> (i32, i32) {
    %c0_i32 = arith.constant 0 : i32
    %c0_i32_0 = arith.constant 0 : i32
    %c0_i32_1 = arith.constant 0 : i32
    return %c0_i32, %c0_i32_0 : i32, i32
  }
  func.func @transform_7(%arg0: i32, %arg1: i32) -> (i32, i32, i32, i32) {
    %c0_i32 = arith.constant 0 : i32
    %c0_i32_0 = arith.constant 0 : i32
    %c0_i32_1 = arith.constant 0 : i32
    return %arg0, %arg1, %c0_i32, %c0_i32_0 : i32, i32, i32, i32
  }
}

</mosaic_0001>

<bundles_post_ra>
// kernel: double_conv.1
= control target key start
LH: loop header
LB: loop body
LE: loop exit
PB: predicated region body
PF: predicated region fallthrough
CT: control target
= control target key end

     0   :  { %s4758_s24 = smov 0   ;;  %s4760_s25 = smov 0   ;;  %s5869_s0 = inlined_call_operand.vmem [shape: bf16[2,20,16,12], index: 0, kind: input, shape index: {}]   ;;  %s5870_s1 = inlined_call_operand.vmem [shape: bf16[3,12,128], index: 1, kind: input, shape index: {}]   ;;  %s5871_s2 = inlined_call_operand.vmem [shape: f32[1,128], index: 2, kind: input, shape index: {}]   ;;  %s5872_s3 = inlined_call_operand.vmem [shape: f32[1,128], index: 3, kind: input, shape index: {}]   ;;  %s5873_s4 = inlined_call_operand.vmem [shape: bf16[3,384,128], index: 4, kind: input, shape index: {}]   ;;  %s5874_s5 = inlined_call_operand.vmem [shape: f32[1,128], index: 5, kind: input, shape index: {}]   ;;  %s5875_s6 = inlined_call_operand.vmem [shape: f32[1,128], index: 6, kind: input, shape index: {}]   ;;  %s5876_s7 = inlined_call_operand.vmem [shape: bf16[2,16,16,128], index: 7, kind: output, shape index: {}]  }
   0x1   :  { %s4762_s26 = smov 0   ;;  %s4764_s27 = smov 0  }
   0x2   :  { %s4766_s28 = smov 0  }
   0x3 LB: > { %s26_s29 = sadd.s32 1, %s4706_s26  ;;  %s29_s30 = sadd.s32 1, %s4710_s27  ;;  %s4714_s28 = sphi %s4766_s28, %s17_s28   ;;  %s4710_s27 = sphi %s4764_s27, %s5896_s27   ;;  %s4706_s26 = sphi %s4762_s26, %s5895_s26   ;;  %s4702_s25 = sphi %s4760_s25, %s5894_s25   ;;  %s4698_s24 = sphi %s4758_s24, %s5893_s24  }
   0x4   : > { %p27_p0 = scmp.ge.s32.totalorder %s26_s29, 2  ;;  %p3728_p1 = scmp.ge.s32.totalorder %s4714_s28, 1 }
   0x5   : > { %p251_p2 = scmp.lt.s32.totalorder %s4714_s28, 5 }
   0x6   : > { %s5898_s29 = smov (%p27_p0, %s26_s29), 0  ;;  %s5900_s30 = smov (!%p27_p0, %s29_s30), %s4710_s27 }
   0x7   : > { %p252_p3 = pnand %p3728_p1, %p251_p2  ;;  %p31_p4 = scmp.ge.s32.totalorder %s5900_s30, 2 }
   0x8   : > { %p288_p5 = scmp.lt.s32.totalorder (!%p252_p3), %s4702_s25, 1  ;;  %s3730_s20 = sshll.u32 (!%p252_p3), %s4698_s24, 3 }
   0x9   : > { %s5902_s30 = smov (%p31_p4, %s5900_s30), 0  ;;  %255 = sbr.rel (%p252_p3) target bundleno = 896 (0x380), region = 48 }
   0xa   : > { %p296_p6 = scmp.lt.s32.totalorder (!%p252_p3), %s3730_s20, 15  ;;  %s4448_s22 = sshll.u32 (!%p252_p3), %s4698_s24, 6 }
   0xb   : > { %p3947_p7 = scmp.ne.s32.totalorder (!%p252_p3), %s4698_s24, 0 }
   0xe   : > { %v3803_v0 = vld [vmem:[%s5870_s1 + $0x8] sm:$0xf]  ;;  %v4471_v1 = vld [vmem:[%s5870_s1 + $0x8] sm:$0x30]  ;;  %vm444_vm0 = vcmask 1045504   ;;  %s5904_s25 = smov (!%p288_p5, %s4702_s25), 1 }
   0xf   : > { %v3804_v2 = vor.u32 %v4471_v1, %v3803_v0  ;;  %v3857_v3 = vld [vmem:[%s5870_s1] sm:$0xf]  ;;  %v4459_v4 = vld [vmem:[%s5870_s1] sm:$0x30]  ;;  %v3935_v5 = vld [vmem:[%s5870_s1 + $0x10] sm:$0xf] }
  0x10   : > { %v3858_v6 = vor.u32 %v4459_v4, %v3857_v3  ;;  %v4483_v7 = vld [vmem:[%s5870_s1 + $0x10] sm:$0x30]  ;;  %s4627_s21 = smul.u32 160, %s5904_s25  ;;  %s3732_s10 = sshll.u32 %s5904_s25, 5  ;;  %vm413_vm1 = vcmask 97280   ;;  %vm976_vm2 = vcmask 1040384  }
  0x11   : > { %v446_v8 = vsel %vm444_vm0, %v3804_v2, 0  ;;  %v3936_v9 = vor.u32 %v4483_v7, %v3935_v5  ;;  %s5906_s20 = smov (!%p296_p6, %s3730_s20), 15  ;;  %vm977_vm3 = vsmask.f32 256  ;;  %vm979_vm4 = vcmask 1044484  }
  0x12   : > { %455 = vmatpush.bf16.msra.mxu0 %v446_v8  ;;  %v593_v10 = vsel %vm444_vm0, %v3858_v6, 0  ;;  %s292_s9 = scalar_lea.vmem %s5869_s0, %s4627_s21  ;;  %s3731_s12 = sshll.u32 %s5906_s20, 1  ;;  %vm980_vm5 = vsmask.f32 4352  ;;  %vm4868_vm6 = vmand %vm976_vm2, %vm977_vm3  ;;  %v983_v36 = vld [vmem:[#allocation2] sm:$0x11] }
  0x13   : > { %602 = vmatpush.bf16.msra.mxu1 %v593_v10  ;;  %v767_v11 = vsel %vm444_vm0, %v3936_v9, 0  ;;  %s4816_s11 = scalar_lea.vmem %s292_s9, %s4448_s22  ;;  %s300_s13 = sadd.s32 %s3732_s10, %s3731_s12  ;;  %vm981_vm7 = vmand %vm979_vm4, %vm980_vm5  ;;  %vm1031_vm9 = vsmask.f32 7938  ;;  %vm1033_vm10 = vsmask.f32 7954  ;;  %vm1246_vm15 = vcmask 1043456  }
  0x14   : > { %776 = vmatpush.bf16.msra.mxu2 %v767_v11  ;;  %v4461_v12 = vld [vmem:[%s4816_s11 + $0x8] sm:$0xff]  ;;  %v4449_v13 = vld [vmem:[%s4816_s11] sm:$0xff]  ;;  %v4473_v14 = vld [vmem:[%s4816_s11 + $0x10] sm:$0xff]  ;;  %s3733_s14 = sshll.u32 %s300_s13, 2 }
  0x15   : > { %3805 = vmatmul.msk.bf16.vlgmr.msra.gmra.mxu0 %vm413_vm1, %v4461_v12  ;;  %s4826_s16 = scalar_lea.vmem %s5876_s7, %s3733_s14  ;;  %v4462_v15 = vld [vmem:[%s4816_s11 + $0x10] sm:$0xff]  ;;  %v4450_v16 = vld [vmem:[%s4816_s11 + $0x8] sm:$0xff]  ;;  %v4474_v17 = vld [vmem:[%s4816_s11 + $0x18] sm:$0xff] }
  0x16   : > { %3859 = vmatmul.msk.bf16.vlgmr.msra.gmra.mxu1 %vm413_vm1, %v4449_v13  ;;  %v4463_v18 = vld [vmem:[%s4816_s11 + $0x18] sm:$0xff]  ;;  %v4451_v19 = vld [vmem:[%s4816_s11 + $0x10] sm:$0xff]  ;;  %v4475_v20 = vld [vmem:[%s4816_s11 + $0x20] sm:$0xff] }
  0x17   : > { %3937 = vmatmul.msk.bf16.vlgmr.msra.gmra.mxu2 %vm413_vm1, %v4473_v14  ;;  %v4464_v21 = vld [vmem:[%s4816_s11 + $0x20] sm:$0xff]  ;;  %v4452_v22 = vld [vmem:[%s4816_s11 + $0x18] sm:$0xff]  ;;  %v4476_v23 = vld [vmem:[%s4816_s11 + $0x28] sm:$0xff] }
  0x18   : > { %v4465_v24 = vld [vmem:[%s4816_s11 + $0x28] sm:$0xff]  ;;  %v4453_v25 = vld [vmem:[%s4816_s11 + $0x20] sm:$0xff]  ;;  %v4477_v26 = vld [vmem:[%s4816_s11 + $0x30] sm:$0xff] }
  0x19   : > { %v4466_v27 = vld [vmem:[%s4816_s11 + $0x30] sm:$0xff]  ;;  %v4454_v28 = vld [vmem:[%s4816_s11 + $0x28] sm:$0xff]  ;;  %v4478_v29 = vld [vmem:[%s4816_s11 + $0x38] sm:$0xff] }
  0x1a   : > { %v4467_v30 = vld [vmem:[%s4816_s11 + $0x38] sm:$0xff]  ;;  %v4455_v31 = vld [vmem:[%s4816_s11 + $0x30] sm:$0xff]  ;;  %v4479_v32 = vld [vmem:[%s4816_s11 + $0x40] sm:$0xff] }
  0x1b   : > { %v4468_v33 = vld [vmem:[%s4816_s11 + $0x40] sm:$0xff]  ;;  %v4456_v35 = vld [vmem:[%s4816_s11 + $0x38] sm:$0xff]  ;;  %v4480_v37 = vld [vmem:[%s4816_s11 + $0x48] sm:$0xff] }
  0x1c   : > { %vm4877_vm8 = vmor %vm981_vm7, %vm4868_vm6  ;;  %v1036_v41 = vld [vmem:[#allocation2 + $0x18] sm:$0x11]  ;;  %v4469_v44 = vld [vmem:[%s4816_s11 + $0x48] sm:$0xff] }
  0x1d   : > { %v984_v39 = vsel %vm4877_vm8, 0, %v983_v36  ;;  %vm4888_vm11 = vmand %vm976_vm2, %vm1031_vm9  ;;  %v4457_v45 = vld [vmem:[%s4816_s11 + $0x40] sm:$0xff]  ;;  %v4481_v48 = vld [vmem:[%s4816_s11 + $0x50] sm:$0xff] }
  0x1e   : > { %985 = vst [vmem:[#allocation2] sm:$0x11] %v984_v39  ;;  %vm1034_vm12 = vmand %vm979_vm4, %vm1033_vm10  ;;  %v989_v49 = vld [vmem:[#allocation2 + $0x24] sm:$0x11]  ;;  %v4912_v52 = vld [vmem:[%s5871_s2] ss:$0 sm:$0xff] }
  0x1f   : > { %vm4895_vm13 = vmor %vm1034_vm12, %vm4888_vm11  ;;  %v990_v50 = vsel %vm4877_vm8, 0, %v989_v49  ;;  %v4917_v55 = vld [vmem:[%s5872_s3] ss:$0 sm:$0xff]  ;;  %v4470_v1 = vld [vmem:[%s4816_s11 + $0x50] sm:$0xff] }
  0x20   : > { %v1037_v43 = vsel %vm4895_vm13, 0, %v1036_v41  ;;  %991 = vst [vmem:[#allocation2 + $0x24] sm:$0x11] %v990_v50  ;;  %v1042_v58 = vld [vmem:[#allocation2 + $0x3c] sm:$0x11]  ;;  %v4458_v2 = vld [vmem:[%s4816_s11 + $0x48] sm:$0xff]  ;;  %vm4936_vm0 = vmand %vm1246_vm15, %vm1031_vm9 }
  0x21   : > { %1038 = vst [vmem:[#allocation2 + $0x18] sm:$0x11] %v1037_v43  ;;  %v1043_v59 = vsel %vm4895_vm13, 0, %v1042_v58  ;;  %v4482_v7 = vld [vmem:[%s4816_s11 + $0x58] sm:$0xff]  ;;  %v986_v10 = vld [vmem:[#allocation2 + $0x8] sm:$0x1] }
  0x22   : > { %1044 = vst [vmem:[#allocation2 + $0x3c] sm:$0x11] %v1043_v59  ;;  %v995_v11 = vld [vmem:[#allocation2 + $0x48] sm:$0x11]  ;;  %v987_v13 = vsel %vm4868_vm6, 0, %v986_v10 }
  0x23   : > { %v996_v14 = vsel %vm4877_vm8, 0, %v995_v11  ;;  %988 = vst [vmem:[#allocation2 + $0x8] sm:$0x1] %v987_v13  ;;  %v1048_v36 = vld [vmem:[#allocation2 + $0x60] sm:$0x11] }
  0x24   : > { %997 = vst [vmem:[#allocation2 + $0x48] sm:$0x11] %v996_v14  ;;  %v1049_v43 = vsel %vm4895_vm13, 0, %v1048_v36 }
  0x25   : > { %3806 = vmatmul.msk.bf16.gmra.mxu0 %vm413_vm1, %v4462_v15  ;;  %1050 = vst [vmem:[#allocation2 + $0x60] sm:$0x11] %v1049_v43 }
  0x26   : > { %3860 = vmatmul.msk.bf16.gmra.mxu1 %vm413_vm1, %v4450_v16 }
  0x27   : > { %3938 = vmatmul.msk.bf16.gmra.mxu2 %vm413_vm1, %v4474_v17 }
  0x28   : > { %v1252_v41 = vld [vmem:[#allocation2 + $0x18] sm:$0x1] }
  0x35   : > { %3807 = vmatmul.msk.bf16.gmra.mxu0 %vm413_vm1, %v4463_v18 }
  0x36   : > { %3861 = vmatmul.msk.bf16.gmra.mxu1 %vm413_vm1, %v4451_v19 }
  0x37   : > { %3939 = vmatmul.msk.bf16.gmra.mxu2 %vm413_vm1, %v4475_v20  ;;  %v1248_v20 = vld [vmem:[#allocation2] sm:$0xf] }
  0x45   : > { %3808 = vmatmul.msk.bf16.gmra.mxu0 %vm413_vm1, %v4464_v21 }
  0x46   : > { %3862 = vmatmul.msk.bf16.gmra.mxu1 %vm413_vm1, %v4452_v22 }
  0x47   : > { %3940 = vmatmul.msk.bf16.gmra.mxu2 %vm413_vm1, %v4476_v23 }
  0x55   : > { %3809 = vmatmul.msk.bf16.gmra.mxu0 %vm413_vm1, %v4465_v24 }
  0x56   : > { %3863 = vmatmul.msk.bf16.gmra.mxu1 %vm413_vm1, %v4453_v25 }
  0x57   : > { %3941 = vmatmul.msk.bf16.gmra.mxu2 %vm413_vm1, %v4477_v26 }
  0x65   : > { %3810 = vmatmul.msk.bf16.gmra.mxu0 %vm413_vm1, %v4466_v27 }
  0x66   : > { %3864 = vmatmul.msk.bf16.gmra.mxu1 %vm413_vm1, %v4454_v28 }
  0x67   : > { %3942 = vmatmul.msk.bf16.gmra.mxu2 %vm413_vm1, %v4478_v29 }
  0x75   : > { %3811 = vmatmul.msk.bf16.gmra.mxu0 %vm413_vm1, %v4467_v30 }
  0x76   : > { %3865 = vmatmul.msk.bf16.gmra.mxu1 %vm413_vm1, %v4455_v31  ;;  %v1039_v31 = vld [vmem:[#allocation2 + $0x20] sm:$0x1] }
  0x77   : > { %3943 = vmatmul.msk.bf16.gmra.mxu2 %vm413_vm1, %v4479_v32 }
  0x85   : > { %3812 = vmatmul.msk.bf16.gmra.mxu0 %vm413_vm1, %v4468_v33  ;;  %v1040_v33 = vsel %vm4888_vm11, 0, %v1039_v31 }
  0x86   : > { %3866 = vmatmul.msk.bf16.gmra.mxu1 %vm413_vm1, %v4456_v35  ;;  %1041 = vst [vmem:[#allocation2 + $0x20] sm:$0x1] %v1040_v33 }
  0x87   : > { %3944 = vmatmul.msk.bf16.gmra.mxu2 %vm413_vm1, %v4480_v37 }
  0x92   : > { %v457_v46 = vpop.f32.mrf.mxu0 }
  0x93   : > { %v604_v47 = vpop.f32.mrf.mxu1 }
  0x94   : > { %v605_v51 = vadd.f32 %v604_v47, %v457_v46 }
  0x95   : > { %3813 = vmatmul.msk.bf16.gmra.mxu0 %vm413_vm1, %v4469_v44 }
  0x96   : > { %3867 = vmatmul.msk.bf16.gmra.mxu1 %vm413_vm1, %v4457_v45 }
  0x97   : > { %3945 = vmatmul.msk.bf16.gmra.mxu2 %vm413_vm1, %v4481_v48 }
  0x9a   : > { %v778_v53 = vpop.f32.mrf.mxu2  ;;  %v459_v56 = vpop.f32.mrf.mxu0 }
  0x9b   : > { %v828_v54 = vadd.f32 %v778_v53, %v605_v51  ;;  %v606_v57 = vpop.f32.mrf.mxu1 }
  0x9c   : > { %v607_v63 = vadd.f32 %v606_v57, %v459_v56 }
  0x9d   : > { %v852_v60 = vmul.f32 %v4912_v52, %v828_v54 }
  0x9f   : > { %v876_v61 = vadd.f32 %v4917_v55, %v852_v60 }
  0xa1   : > { %vm896_vm14 = vcmp.ge.f32.partialorder %v876_v61, 0.0  ;;  %v916_v62 = vmul.f32 0.2, %v876_v61 }
  0xa2   : > { %v780_v0 = vpop.f32.mrf.mxu2  ;;  %v462_v5 = vpop.f32.mrf.mxu0 }
  0xa3   : > { %v936_v3 = vsel %vm896_vm14, %v876_v61, %v916_v62  ;;  %v829_v4 = vadd.f32 %v780_v0, %v607_v63  ;;  %v609_v6 = vpop.f32.mrf.mxu1  ;;  %v1255_v62 = vld [vmem:[#allocation2 + $0x24] sm:$0xf] }
  0xa4   : > { %v956_v8 = vpack.c.bf16 %v936_v3, %v936_v3  ;;  %v610_v16 = vadd.f32 %v609_v6, %v462_v5  ;;  %v1324_v5 = vld [vmem:[#allocation2 + $0x4] sm:$0xf] }
  0xa5   : > { %v853_v9 = vmul.f32 %v4912_v52, %v829_v4  ;;  %3814 = vmatmul.msk.bf16.gmra.mxu0 %vm413_vm1, %v4470_v1  ;;  %v992_v1 = vld [vmem:[#allocation2 + $0x2c] sm:$0x1] }
  0xa6   : > { %v1087_v12 = vshrl.u32 %v956_v8, 16  ;;  %3868 = vmatmul.msk.bf16.gmra.mxu1 %vm413_vm1, %v4458_v2  ;;  %v1090_v18 = vshll.u32 %v956_v8, 16  ;;  %v1001_v2 = vld [vmem:[#allocation2 + $0x6c] sm:$0x11]  ;;  %v993_v6 = vsel %vm4868_vm6, 0, %v992_v1 }
  0xa7   : > { %v877_v15 = vadd.f32 %v4917_v55, %v853_v9  ;;  %3946 = vmatmul.msk.bf16.gmra.mxu2 %vm413_vm1, %v4482_v7  ;;  %vm1084_vm1 = vsmask.f32 4368  ;;  %v1002_v7 = vsel %vm4877_vm8, 0, %v1001_v2  ;;  %994 = vst [vmem:[#allocation2 + $0x2c] sm:$0x1] %v993_v6 }
  0xa8   : > { %v1089_v17 = vrot.slane %v1087_v12, 7  ;;  %vm4949_vm4 = vmor %vm977_vm3, %vm1084_vm1  ;;  %1003 = vst [vmem:[#allocation2 + $0x6c] sm:$0x11] %v1002_v7 }
  0xa9   : > { %vm897_vm2 = vcmp.ge.f32.partialorder %v877_v15, 0.0  ;;  %v917_v21 = vmul.f32 0.2, %v877_v15 }
  0xaa   : > { %v1092_v22 = vor.u32 %v1090_v18, %v1089_v17  ;;  %v783_v23 = vpop.f32.mrf.mxu2  ;;  %v464_v26 = vpop.f32.mrf.mxu0  ;;  %v1093_v47 = vrot.slane %v1089_v17, 4 }
  0xab   : > { %v937_v24 = vsel %vm897_vm2, %v877_v15, %v917_v21  ;;  %v830_v25 = vadd.f32 %v783_v23, %v610_v16  ;;  %v611_v27 = vpop.f32.mrf.mxu1  ;;  %v1054_v23 = vld [vmem:[#allocation2 + $0x84] sm:$0x11] }
  0xac   : > { %v1249_v28 = vsel %vm4936_vm0, %v1092_v22, %v1248_v20  ;;  %v957_v29 = vpack.c.bf16 %v937_v24, %v937_v24  ;;  %v612_v46 = vadd.f32 %v611_v27, %v464_v26  ;;  %v1045_v22 = vld [vmem:[#allocation2 + $0x44] sm:$0x1]  ;;  %v1055_v27 = vsel %vm4895_vm13, 0, %v1054_v23 }
  0xad   : > { %1250 = vst [vmem:[#allocation2] sm:$0xf] %v1249_v28  ;;  %v854_v30 = vmul.f32 %v4912_v52, %v830_v25  ;;  %v1046_v26 = vsel %vm4888_vm11, 0, %v1045_v22  ;;  %v1259_v28 = vld [vmem:[#allocation2 + $0x3c] sm:$0x1] }
  0xae   : > { %v1095_v32 = vshrl.u32 %v957_v29, 16  ;;  %v1098_v39 = vshll.u32 %v957_v29, 16  ;;  %1047 = vst [vmem:[#allocation2 + $0x44] sm:$0x1] %v1046_v26 }
  0xaf   : > { %v878_v35 = vadd.f32 %v4917_v55, %v854_v30  ;;  %1056 = vst [vmem:[#allocation2 + $0x84] sm:$0x11] %v1055_v27  ;;  %v1335_v27 = vld [vmem:[#allocation2 + $0x40] sm:$0x1] }
  0xb0   : > { %v1097_v37 = vrot.slane %v1095_v32, 7 }
  0xb1   : > { %vm898_vm5 = vcmp.ge.f32.partialorder %v878_v35, 0.0  ;;  %v918_v45 = vmul.f32 0.2, %v878_v35 }
  0xb2   : > { %v1100_v48 = vor.u32 %v1098_v39, %v1097_v37  ;;  %v1102_v49 = vrot.slane %v1097_v37, 4  ;;  %v785_v50 = vpop.f32.mrf.mxu2  ;;  %v467_v54 = vpop.f32.mrf.mxu0 }
  0xb3   : > { %v938_v51 = vsel %vm898_vm5, %v878_v35, %v918_v45  ;;  %v831_v53 = vadd.f32 %v785_v50, %v612_v46  ;;  %v614_v56 = vpop.f32.mrf.mxu1  ;;  %v1328_v35 = vld [vmem:[#allocation2 + $0x1c] sm:$0x1] }
  0xb4   : > { %v1101_v57 = vsel %vm4949_vm4, %v1093_v47, %v1100_v48  ;;  %v1253_v58 = vsel %vm4868_vm6, %v1102_v49, %v1252_v41  ;;  %v958_v59 = vpack.c.bf16 %v938_v51, %v938_v51  ;;  %v615_v0 = vadd.f32 %v614_v56, %v467_v54  ;;  %v1400_v54 = vld [vmem:[#allocation2 + $0x8] sm:$0xf] }
  0xb5   : > { %1251 = vst [vmem:[#allocation2 + $0xc] sm:$0xf] %v1101_v57  ;;  %v855_v60 = vmul.f32 %v4912_v52, %v831_v53  ;;  %v1331_v53 = vld [vmem:[#allocation2 + $0x28] sm:$0xf] }
  0xb6   : > { %1254 = vst [vmem:[#allocation2 + $0x18] sm:$0x1] %v1253_v58  ;;  %v1104_v61 = vshrl.u32 %v958_v59, 16  ;;  %v1107_v4 = vshll.u32 %v958_v59, 16  ;;  %v998_v58 = vld [vmem:[#allocation2 + $0x50] sm:$0x1] }
  0xb7   : > { %v879_v63 = vadd.f32 %v4917_v55, %v855_v60  ;;  %v999_v60 = vsel %vm4868_vm6, 0, %v998_v58 }
  0xb8   : > { %v1106_v3 = vrot.slane %v1104_v61, 7  ;;  %v1007_v61 = vld [vmem:[#allocation2 + $0x90] sm:$0x11]  ;;  %1000 = vst [vmem:[#allocation2 + $0x50] sm:$0x1] %v999_v60 }
  0xb9   : > { %vm899_vm3 = vcmp.ge.f32.partialorder %v879_v63, 0.0  ;;  %v919_v8 = vmul.f32 0.2, %v879_v63 }
  0xba   : > { %v1109_v9 = vor.u32 %v1107_v4, %v1106_v3  ;;  %v788_v10 = vpop.f32.mrf.mxu2  ;;  %v469_v13 = vpop.f32.mrf.mxu0  ;;  %v1110_v31 = vrot.slane %v1106_v3, 4 }
  0xbb   : > { %v939_v11 = vsel %vm899_vm3, %v879_v63, %v919_v8  ;;  %v832_v12 = vadd.f32 %v788_v10, %v615_v0  ;;  %v616_v14 = vpop.f32.mrf.mxu1  ;;  %v1008_v0 = vsel %vm4877_vm8, 0, %v1007_v61 }
  0xbc   : > { %v1256_v15 = vsel %vm4936_vm0, %v1109_v9, %v1255_v62  ;;  %v1325_v16 = vsel %vm4936_vm0, %v1109_v9, %v1324_v5  ;;  %v959_v17 = vpack.c.bf16 %v939_v11, %v939_v11  ;;  %v617_v30 = vadd.f32 %v616_v14, %v469_v13  ;;  %v1262_v62 = vld [vmem:[#allocation2 + $0x48] sm:$0xf]  ;;  %1009 = vst [vmem:[#allocation2 + $0x90] sm:$0x11] %v1008_v0 }
  0xbd   : > { %1257 = vst [vmem:[#allocation2 + $0x24] sm:$0xf] %v1256_v15  ;;  %v856_v18 = vmul.f32 %v4912_v52, %v832_v12  ;;  %v1051_v14 = vld [vmem:[#allocation2 + $0x68] sm:$0x1] }
  0xbe   : > { %1326 = vst [vmem:[#allocation2 + $0x4] sm:$0xf] %v1325_v16  ;;  %v1112_v20 = vshrl.u32 %v959_v17, 16  ;;  %v1115_v25 = vshll.u32 %v959_v17, 16  ;;  %v1060_v15 = vld [vmem:[#allocation2 + $0xa8] sm:$0x11] }
  0xbf   : > { %v880_v21 = vadd.f32 %v4917_v55, %v856_v18  ;;  %v1052_v18 = vsel %vm4888_vm11, 0, %v1051_v14 }
  0xc0   : > { %v1114_v24 = vrot.slane %v1112_v20, 7  ;;  %v1061_v20 = vsel %vm4895_vm13, 0, %v1060_v15  ;;  %1053 = vst [vmem:[#allocation2 + $0x68] sm:$0x1] %v1052_v18 }
  0xc1   : > { %vm900_vm7 = vcmp.ge.f32.partialorder %v880_v21, 0.0  ;;  %v920_v29 = vmul.f32 0.2, %v880_v21  ;;  %1062 = vst [vmem:[#allocation2 + $0xa8] sm:$0x11] %v1061_v20 }
  0xc2   : > { %v1117_v32 = vor.u32 %v1115_v25, %v1114_v24  ;;  %v1119_v33 = vrot.slane %v1114_v24, 4  ;;  %v790_v36 = vpop.f32.mrf.mxu2  ;;  %v472_v41 = vpop.f32.mrf.mxu0 }
  0xc3   : > { %v940_v37 = vsel %vm900_vm7, %v880_v21, %v920_v29  ;;  %v833_v39 = vadd.f32 %v790_v36, %v617_v30  ;;  %v619_v43 = vpop.f32.mrf.mxu1  ;;  %v1266_v21 = vld [vmem:[#allocation2 + $0x60] sm:$0x1] }
  0xc4   : > { %v1118_v45 = vsel %vm4949_vm4, %v1110_v31, %v1117_v32  ;;  %v1260_v46 = vsel %vm4868_vm6, %v1119_v33, %v1259_v28  ;;  %v960_v47 = vpack.c.bf16 %v940_v37, %v940_v37  ;;  %v1329_v48 = vsel %vm4868_vm6, %v1119_v33, %v1328_v35  ;;  %v1404_v36 = vld [vmem:[#allocation2 + $0x20] sm:$0x1] }
  0xc5   : > { %1258 = vst [vmem:[#allocation2 + $0x30] sm:$0xf] %v1118_v45  ;;  %v857_v49 = vmul.f32 %v4912_v52, %v833_v39  ;;  %v620_v57 = vadd.f32 %v619_v43, %v472_v41 }
  0xc6   : > { %1261 = vst [vmem:[#allocation2 + $0x3c] sm:$0x1] %v1260_v46  ;;  %v1121_v50 = vshrl.u32 %v960_v47, 16  ;;  %v1124_v51 = vshll.u32 %v960_v47, 16 }
  0xc7   : > { %1327 = vst [vmem:[#allocation2 + $0x10] sm:$0xf] %v1118_v45  ;;  %v881_v56 = vadd.f32 %v4917_v55, %v857_v49  ;;  %v1338_v49 = vld [vmem:[#allocation2 + $0x4c] sm:$0xf] }
  0xc8   : > { %1330 = vst [vmem:[#allocation2 + $0x1c] sm:$0x1] %v1329_v48  ;;  %v1123_v59 = vrot.slane %v1121_v50, 7  ;;  %v1004_v50 = vld [vmem:[#allocation2 + $0x74] sm:$0x1] }
  0xc9   : > { %vm901_vm9 = vcmp.ge.f32.partialorder %v881_v56, 0.0  ;;  %v921_v63 = vmul.f32 0.2, %v881_v56 }
  0xca   : > { %v1126_v1 = vor.u32 %v1124_v51, %v1123_v59  ;;  %v793_v2 = vpop.f32.mrf.mxu2  ;;  %v474_v5 = vpop.f32.mrf.mxu0  ;;  %v1127_v24 = vrot.slane %v1123_v59, 4 }
  0xcb   : > { %v941_v3 = vsel %vm901_vm9, %v881_v56, %v921_v63  ;;  %v834_v4 = vadd.f32 %v793_v2, %v620_v57  ;;  %v621_v6 = vpop.f32.mrf.mxu1  ;;  %v1407_v56 = vld [vmem:[#allocation2 + $0x2c] sm:$0xf]  ;;  %v1013_v63 = vld [vmem:[#allocation2 + $0xb4] sm:$0x11] }
  0xcc   : > { %v1263_v7 = vsel %vm4936_vm0, %v1126_v1, %v1262_v62  ;;  %v1332_v8 = vsel %vm4936_vm0, %v1126_v1, %v1331_v53  ;;  %v1401_v9 = vsel %vm4936_vm0, %v1126_v1, %v1400_v54  ;;  %v961_v10 = vpack.c.bf16 %v941_v3, %v941_v3  ;;  %v1269_v54 = vld [vmem:[#allocation2 + $0x6c] sm:$0xf] }
  0xcd   : > { %1264 = vst [vmem:[#allocation2 + $0x48] sm:$0xf] %v1263_v7  ;;  %v858_v11 = vmul.f32 %v4912_v52, %v834_v4  ;;  %v622_v23 = vadd.f32 %v621_v6, %v474_v5  ;;  %v1005_v1 = vsel %vm4868_vm6, 0, %v1004_v50  ;;  %v1014_v7 = vsel %vm4877_vm8, 0, %v1013_v63 }
  0xce   : > { %1333 = vst [vmem:[#allocation2 + $0x28] sm:$0xf] %v1332_v8  ;;  %v1129_v12 = vshrl.u32 %v961_v10, 16  ;;  %v1132_v17 = vshll.u32 %v961_v10, 16  ;;  %v1273_v8 = vld [vmem:[#allocation2 + $0x84] sm:$0x1] }
  0xcf   : > { %1402 = vst [vmem:[#allocation2 + $0x8] sm:$0xf] %v1401_v9  ;;  %v882_v13 = vadd.f32 %v4917_v55, %v858_v11  ;;  %v1057_v10 = vld [vmem:[#allocation2 + $0x8c] sm:$0x1] }
  0xd0   : > { %v1131_v16 = vrot.slane %v1129_v12, 7  ;;  %1006 = vst [vmem:[#allocation2 + $0x74] sm:$0x1] %v1005_v1  ;;  %v1066_v11 = vld [vmem:[#allocation2 + $0xcc] sm:$0x11]  ;;  %v1058_v14 = vsel %vm4888_vm11, 0, %v1057_v10 }
  0xd1   : > { %vm902_vm10 = vcmp.ge.f32.partialorder %v882_v13, 0.0  ;;  %v922_v22 = vmul.f32 0.2, %v882_v13  ;;  %v1067_v15 = vsel %vm4895_vm13, 0, %v1066_v11  ;;  %1015 = vst [vmem:[#allocation2 + $0xb4] sm:$0x11] %v1014_v7 }
  0xd2   : > { %v1134_v25 = vor.u32 %v1132_v17, %v1131_v16  ;;  %v1136_v26 = vrot.slane %v1131_v16, 4  ;;  %v795_v28 = vpop.f32.mrf.mxu2  ;;  %v477_v31 = vpop.f32.mrf.mxu0  ;;  %1059 = vst [vmem:[#allocation2 + $0x8c] sm:$0x1] %v1058_v14 }
  0xd3   : > { %v942_v29 = vsel %vm902_vm10, %v882_v13, %v922_v22  ;;  %v835_v30 = vadd.f32 %v795_v28, %v622_v23  ;;  %v624_v32 = vpop.f32.mrf.mxu1  ;;  %v1342_v22 = vld [vmem:[#allocation2 + $0x64] sm:$0x1]  ;;  %1068 = vst [vmem:[#allocation2 + $0xcc] sm:$0x11] %v1067_v15 }
  0xd4   : > { %v1135_v33 = vsel %vm4949_vm4, %v1127_v24, %v1134_v25  ;;  %v1267_v35 = vsel %vm4868_vm6, %v1136_v26, %v1266_v21  ;;  %v1336_v37 = vsel %vm4868_vm6, %v1136_v26, %v1335_v27  ;;  %v962_v39 = vpack.c.bf16 %v942_v29, %v942_v29 }
  0xd5   : > { %1265 = vst [vmem:[#allocation2 + $0x54] sm:$0xf] %v1135_v33  ;;  %v859_v41 = vmul.f32 %v4912_v52, %v835_v30  ;;  %v1405_v43 = vsel %vm4868_vm6, %v1136_v26, %v1404_v36  ;;  %v625_v47 = vadd.f32 %v624_v32, %v477_v31  ;;  %v1411_v30 = vld [vmem:[#allocation2 + $0x44] sm:$0x1] }
  0xd6   : > { %1268 = vst [vmem:[#allocation2 + $0x60] sm:$0x1] %v1267_v35  ;;  %v1138_v45 = vshrl.u32 %v962_v39, 16  ;;  %v1141_v48 = vshll.u32 %v962_v39, 16 }
  0xd7   : > { %1334 = vst [vmem:[#allocation2 + $0x34] sm:$0xf] %v1135_v33  ;;  %v883_v46 = vadd.f32 %v4917_v55, %v859_v41 }
  0xd8   : > { %1337 = vst [vmem:[#allocation2 + $0x40] sm:$0x1] %v1336_v37  ;;  %v1140_v51 = vrot.slane %v1138_v45, 7  ;;  %v1010_v45 = vld [vmem:[#allocation2 + $0x98] sm:$0x1] }
  0xd9   : > { %1403 = vst [vmem:[#allocation2 + $0x14] sm:$0xf] %v1135_v33  ;;  %vm903_vm12 = vcmp.ge.f32.partialorder %v883_v46, 0.0  ;;  %v923_v53 = vmul.f32 0.2, %v883_v46 }
  0xda   : > { %1406 = vst [vmem:[#allocation2 + $0x20] sm:$0x1] %v1405_v43  ;;  %v798_v57 = vpop.f32.mrf.mxu2  ;;  %v1143_v58 = vor.u32 %v1141_v48, %v1140_v51  ;;  %v479_v61 = vpop.f32.mrf.mxu0  ;;  %v1144_v18 = vrot.slane %v1140_v51, 4  ;;  %v1345_v43 = vld [vmem:[#allocation2 + $0x70] sm:$0xf] }
  0xdb   : > { %v943_v59 = vsel %vm903_vm12, %v883_v46, %v923_v53  ;;  %v836_v60 = vadd.f32 %v798_v57, %v625_v47  ;;  %v626_v62 = vpop.f32.mrf.mxu1  ;;  %v1276_v48 = vld [vmem:[#allocation2 + $0x90] sm:$0xf] }
  0xdc   : > { %v963_v0 = vpack.c.bf16 %v943_v59, %v943_v59  ;;  %v1270_v2 = vsel %vm4936_vm0, %v1143_v58, %v1269_v54  ;;  %v1339_v3 = vsel %vm4936_vm0, %v1143_v58, %v1338_v49  ;;  %v1408_v4 = vsel %vm4936_vm0, %v1143_v58, %v1407_v56  ;;  %v1414_v49 = vld [vmem:[#allocation2 + $0x50] sm:$0xf]  ;;  %v1019_v58 = vld [vmem:[#allocation2 + $0xd8] sm:$0x11] }
  0xdd   : > { %v860_v5 = vmul.f32 %v4912_v52, %v836_v60  ;;  %1271 = vst [vmem:[#allocation2 + $0x6c] sm:$0xf] %v1270_v2  ;;  %v627_v17 = vadd.f32 %v626_v62, %v479_v61  ;;  %v1011_v60 = vsel %vm4868_vm6, 0, %v1010_v45  ;;  %v1020_v2 = vsel %vm4877_vm8, 0, %v1019_v58 }
  0xde   : > { %v1146_v6 = vshrl.u32 %v963_v0, 16  ;;  %1340 = vst [vmem:[#allocation2 + $0x4c] sm:$0xf] %v1339_v3  ;;  %v1149_v13 = vshll.u32 %v963_v0, 16  ;;  %v1280_v3 = vld [vmem:[#allocation2 + $0xa8] sm:$0x1] }
  0xdf   : > { %v884_v9 = vadd.f32 %v4917_v55, %v860_v5  ;;  %1409 = vst [vmem:[#allocation2 + $0x2c] sm:$0xf] %v1408_v4  ;;  %v1063_v5 = vld [vmem:[#allocation2 + $0xb0] sm:$0x1] }
  0xe0   : > { %v1148_v12 = vrot.slane %v1146_v6, 7  ;;  %1012 = vst [vmem:[#allocation2 + $0x98] sm:$0x1] %v1011_v60  ;;  %v1072_v6 = vld [vmem:[#allocation2 + $0xf0] sm:$0x11] }
  0xe1   : > { %vm904_vm14 = vcmp.ge.f32.partialorder %v884_v9, 0.0  ;;  %v924_v16 = vmul.f32 0.2, %v884_v9  ;;  %v1073_v10 = vsel %vm4895_vm13, 0, %v1072_v6  ;;  %1021 = vst [vmem:[#allocation2 + $0xd8] sm:$0x11] %v1020_v2 }
  0xe2   : > { %v1151_v20 = vor.u32 %v1149_v13, %v1148_v12  ;;  %v1153_v21 = vrot.slane %v1148_v12, 4  ;;  %v800_v23 = vpop.f32.mrf.mxu2  ;;  %v482_v26 = vpop.f32.mrf.mxu0  ;;  %1074 = vst [vmem:[#allocation2 + $0xf0] sm:$0x11] %v1073_v10  ;;  %v1356_v10 = vld [vmem:[#allocation2 + $0xac] sm:$0x1] }
  0xe3   : > { %v944_v24 = vsel %vm904_vm14, %v884_v9, %v924_v16  ;;  %v837_v25 = vadd.f32 %v800_v23, %v627_v17  ;;  %v629_v27 = vpop.f32.mrf.mxu1  ;;  %v1064_v9 = vsel %vm4888_vm11, 0, %v1063_v5  ;;  %v1349_v16 = vld [vmem:[#allocation2 + $0x88] sm:$0x1] }
  0xe4   : > { %v1152_v28 = vsel %vm4949_vm4, %v1144_v18, %v1151_v20  ;;  %v1274_v29 = vsel %vm4868_vm6, %v1153_v21, %v1273_v8  ;;  %v1343_v31 = vsel %vm4868_vm6, %v1153_v21, %v1342_v22  ;;  %v964_v32 = vpack.c.bf16 %v944_v24, %v944_v24  ;;  %1065 = vst [vmem:[#allocation2 + $0xb0] sm:$0x1] %v1064_v9 }
  0xe5   : > { %1272 = vst [vmem:[#allocation2 + $0x78] sm:$0xf] %v1152_v28  ;;  %v861_v33 = vmul.f32 %v4912_v52, %v837_v25  ;;  %v1412_v35 = vsel %vm4868_vm6, %v1153_v21, %v1411_v30  ;;  %v630_v39 = vadd.f32 %v629_v27, %v482_v26  ;;  %v1418_v25 = vld [vmem:[#allocation2 + $0x68] sm:$0x1] }
  0xe6   : > { %1275 = vst [vmem:[#allocation2 + $0x84] sm:$0x1] %v1274_v29  ;;  %v1155_v36 = vshrl.u32 %v964_v32, 16  ;;  %v1158_v41 = vshll.u32 %v964_v32, 16 }
  0xe7   : > { %1341 = vst [vmem:[#allocation2 + $0x58] sm:$0xf] %v1152_v28  ;;  %v885_v37 = vadd.f32 %v4917_v55, %v861_v33 }
  0xe8   : > { %1344 = vst [vmem:[#allocation2 + $0x64] sm:$0x1] %v1343_v31  ;;  %v1157_v46 = vrot.slane %v1155_v36, 7  ;;  %v1016_v36 = vld [vmem:[#allocation2 + $0xbc] sm:$0x1] }
  0xe9   : > { %1410 = vst [vmem:[#allocation2 + $0x38] sm:$0xf] %v1152_v28  ;;  %vm905_vm15 = vcmp.ge.f32.partialorder %v885_v37, 0.0  ;;  %v925_v47 = vmul.f32 0.2, %v885_v37 }
  0xea   : > { %1413 = vst [vmem:[#allocation2 + $0x44] sm:$0x1] %v1412_v35  ;;  %v803_v50 = vpop.f32.mrf.mxu2  ;;  %v1160_v51 = vor.u32 %v1158_v41, %v1157_v46  ;;  %v484_v56 = vpop.f32.mrf.mxu0  ;;  %v1161_v13 = vrot.slane %v1157_v46, 4  ;;  %v1352_v35 = vld [vmem:[#allocation2 + $0x94] sm:$0xf] }
  0xeb   : > { %v945_v53 = vsel %vm905_vm15, %v885_v37, %v925_v47  ;;  %v838_v54 = vadd.f32 %v803_v50, %v630_v39  ;;  %v631_v57 = vpop.f32.mrf.mxu1  ;;  %v1283_v41 = vld [vmem:[#allocation2 + $0xb4] sm:$0xf] }
  0xec   : > { %v965_v59 = vpack.c.bf16 %v945_v53, %v945_v53  ;;  %v1277_v61 = vsel %vm4936_vm0, %v1160_v51, %v1276_v48  ;;  %v1346_v62 = vsel %vm4936_vm0, %v1160_v51, %v1345_v43  ;;  %v1415_v63 = vsel %vm4936_vm0, %v1160_v51, %v1414_v49  ;;  %v1421_v43 = vld [vmem:[#allocation2 + $0x74] sm:$0xf]  ;;  %v1025_v51 = vld [vmem:[#allocation2 + $0xfc] sm:$0x11] }
  0xed   : > { %v862_v0 = vmul.f32 %v4912_v52, %v838_v54  ;;  %1278 = vst [vmem:[#allocation2 + $0x90] sm:$0xf] %v1277_v61  ;;  %v632_v12 = vadd.f32 %v631_v57, %v484_v56  ;;  %v1017_v54 = vsel %vm4868_vm6, 0, %v1016_v36  ;;  %v1026_v61 = vsel %vm4877_vm8, 0, %v1025_v51  ;;  %v1294_v51 = vld [vmem:[#allocation2 + $0xf0] sm:$0x1] }
  0xee   : > { %v1163_v1 = vshrl.u32 %v965_v59, 16  ;;  %1347 = vst [vmem:[#allocation2 + $0x70] sm:$0xf] %v1346_v62  ;;  %v1166_v8 = vshll.u32 %v965_v59, 16  ;;  %v1287_v62 = vld [vmem:[#allocation2 + $0xcc] sm:$0x1] }
  0xef   : > { %v886_v4 = vadd.f32 %v4917_v55, %v862_v0  ;;  %1416 = vst [vmem:[#allocation2 + $0x50] sm:$0xf] %v1415_v63  ;;  %v1069_v0 = vld [vmem:[#allocation2 + $0xd4] sm:$0x1] }
  0xf0   : > { %v1165_v7 = vrot.slane %v1163_v1, 7  ;;  %1018 = vst [vmem:[#allocation2 + $0xbc] sm:$0x1] %v1017_v54  ;;  %v1078_v1 = vld [vmem:[#allocation2 + $0x114] sm:$0x11] }
  0xf1   : > { %vm906_vm2 = vcmp.ge.f32.partialorder %v886_v4, 0.0  ;;  %v926_v11 = vmul.f32 0.2, %v886_v4  ;;  %v1079_v5 = vsel %vm4895_vm13, 0, %v1078_v1  ;;  %1027 = vst [vmem:[#allocation2 + $0xfc] sm:$0x11] %v1026_v61 }
  0xf2   : > { %v1168_v14 = vor.u32 %v1166_v8, %v1165_v7  ;;  %v1170_v15 = vrot.slane %v1165_v7, 4  ;;  %v805_v17 = vpop.f32.mrf.mxu2  ;;  %v487_v21 = vpop.f32.mrf.mxu0  ;;  %1080 = vst [vmem:[#allocation2 + $0x114] sm:$0x11] %v1079_v5  ;;  %v1075_v54 = vld [vmem:[#allocation2 + $0xf8] sm:$0x1] }
  0xf3   : > { %v946_v18 = vsel %vm906_vm2, %v886_v4, %v926_v11  ;;  %v839_v20 = vadd.f32 %v805_v17, %v632_v12  ;;  %v634_v22 = vpop.f32.mrf.mxu1  ;;  %v1070_v4 = vsel %vm4888_vm11, 0, %v1069_v0  ;;  %v1425_v17 = vld [vmem:[#allocation2 + $0x8c] sm:$0x1]  ;;  %v1363_v0 = vld [vmem:[#allocation2 + $0xd0] sm:$0x1] }
  0xf4   : > { %v1169_v23 = vsel %vm4949_vm4, %v1161_v13, %v1168_v14  ;;  %v1281_v24 = vsel %vm4868_vm6, %v1170_v15, %v1280_v3  ;;  %v1350_v26 = vsel %vm4868_vm6, %v1170_v15, %v1349_v16  ;;  %v966_v27 = vpack.c.bf16 %v946_v18, %v946_v18  ;;  %1071 = vst [vmem:[#allocation2 + $0xd4] sm:$0x1] %v1070_v4 }
  0xf5   : > { %1279 = vst [vmem:[#allocation2 + $0x9c] sm:$0xf] %v1169_v23  ;;  %v863_v28 = vmul.f32 %v4912_v52, %v839_v20  ;;  %v1419_v29 = vsel %vm4868_vm6, %v1170_v15, %v1418_v25  ;;  %v635_v32 = vadd.f32 %v634_v22, %v487_v21 }
  0xf6   : > { %1282 = vst [vmem:[#allocation2 + $0xa8] sm:$0x1] %v1281_v24  ;;  %v1172_v30 = vshrl.u32 %v966_v27, 16  ;;  %v1175_v33 = vshll.u32 %v966_v27, 16  ;;  %v1359_v27 = vld [vmem:[#allocation2 + $0xb8] sm:$0xf] }
  0xf7   : > { %1348 = vst [vmem:[#allocation2 + $0x7c] sm:$0xf] %v1169_v23  ;;  %v887_v31 = vadd.f32 %v4917_v55, %v863_v28  ;;  %v1022_v28 = vld [vmem:[#allocation2 + $0xe0] sm:$0x1] }
  0xf8   : > { %1351 = vst [vmem:[#allocation2 + $0x88] sm:$0x1] %v1350_v26  ;;  %v1174_v37 = vrot.slane %v1172_v30, 7 }
  0xf9   : > { %1417 = vst [vmem:[#allocation2 + $0x5c] sm:$0xf] %v1169_v23  ;;  %vm907_vm1 = vcmp.ge.f32.partialorder %v887_v31, 0.0  ;;  %v927_v39 = vmul.f32 0.2, %v887_v31 }
  0xfa   : > { %1420 = vst [vmem:[#allocation2 + $0x68] sm:$0x1] %v1419_v29  ;;  %v808_v45 = vpop.f32.mrf.mxu2  ;;  %v1177_v46 = vor.u32 %v1175_v33, %v1174_v37  ;;  %v489_v49 = vpop.f32.mrf.mxu0  ;;  %v1178_v38 = vrot.slane %v1174_v37, 4 }
  0xfb   : > { %v947_v47 = vsel %vm907_vm1, %v887_v31, %v927_v39  ;;  %v840_v48 = vadd.f32 %v808_v45, %v635_v32  ;;  %v636_v50 = vpop.f32.mrf.mxu1  ;;  %v1290_v31 = vld [vmem:[#allocation2 + $0xd8] sm:$0xf]  ;;  %v1023_v45 = vsel %vm4868_vm6, 0, %v1022_v28 }
  0xfc   : > { %v967_v53 = vpack.c.bf16 %v947_v47, %v947_v47  ;;  %v1284_v56 = vsel %vm4936_vm0, %v1177_v46, %v1283_v41  ;;  %v1353_v57 = vsel %vm4936_vm0, %v1177_v46, %v1352_v35  ;;  %v1422_v58 = vsel %vm4936_vm0, %v1177_v46, %v1421_v43  ;;  %v1428_v32 = vld [vmem:[#allocation2 + $0x98] sm:$0xf]  ;;  %1024 = vst [vmem:[#allocation2 + $0xe0] sm:$0x1] %v1023_v45  ;;  %v1301_v45 = vld [vmem:[#allocation2 + $0x114] sm:$0x1] }
  0xfd   : > { %v864_v59 = vmul.f32 %v4912_v52, %v840_v48  ;;  %1285 = vst [vmem:[#allocation2 + $0xb4] sm:$0xf] %v1284_v56  ;;  %v637_v7 = vadd.f32 %v636_v50, %v489_v49 }
  0xfe   : > { %v1180_v60 = vshrl.u32 %v967_v53, 16  ;;  %1354 = vst [vmem:[#allocation2 + $0x94] sm:$0xf] %v1353_v57  ;;  %v1183_v3 = vshll.u32 %v967_v53, 16 }
  0xff   : > { %v888_v63 = vadd.f32 %v4917_v55, %v864_v59  ;;  %1423 = vst [vmem:[#allocation2 + $0x74] sm:$0xf] %v1422_v58  ;;  %v1076_v58 = vsel %vm4888_vm11, 0, %v1075_v54 }
 0x100   : > { %v1182_v2 = vrot.slane %v1180_v60, 7  ;;  %1077 = vst [vmem:[#allocation2 + $0xf8] sm:$0x1] %v1076_v58 }
 0x101   : > { %vm908_vm5 = vcmp.ge.f32.partialorder %v888_v63, 0.0  ;;  %v928_v6 = vmul.f32 0.2, %v888_v63 }
 0x102   : > { %v1185_v8 = vor.u32 %v1183_v3, %v1182_v2  ;;  %v1187_v9 = vrot.slane %v1182_v2, 4  ;;  %v810_v11 = vpop.f32.mrf.mxu2  ;;  %v492_v14 = vpop.f32.mrf.mxu0 }
 0x103   : > { %v948_v12 = vsel %vm908_vm5, %v888_v63, %v928_v6  ;;  %v841_v13 = vadd.f32 %v810_v11, %v637_v7  ;;  %v639_v15 = vpop.f32.mrf.mxu1 }
 0x104   : > { %v1186_v16 = vsel %vm4949_vm4, %v1178_v38, %v1185_v8  ;;  %v1288_v42 = vsel %vm4868_vm6, %v1187_v9, %v1287_v62  ;;  %v1357_v18 = vsel %vm4868_vm6, %v1187_v9, %v1356_v10  ;;  %v968_v20 = vpack.c.bf16 %v948_v12, %v948_v12  ;;  %v1432_v38 = vld [vmem:[#allocation2 + $0xb0] sm:$0x1] }
 0x105   : > { %1286 = vst [vmem:[#allocation2 + $0xc0] sm:$0xf] %v1186_v16  ;;  %v865_v21 = vmul.f32 %v4912_v52, %v841_v13  ;;  %v1426_v22 = vsel %vm4868_vm6, %v1187_v9, %v1425_v17  ;;  %v640_v25 = vadd.f32 %v639_v15, %v492_v14  ;;  %v1028_v15 = vld [vmem:[#allocation2 + $0x104] sm:$0x1] }
 0x106   : > { %1289 = vst [vmem:[#allocation2 + $0xcc] sm:$0x1] %v1288_v42  ;;  %v1189_v23 = vshrl.u32 %v968_v20, 16  ;;  %v1192_v26 = vshll.u32 %v968_v20, 16  ;;  %v1366_v42 = vld [vmem:[#allocation2 + $0xdc] sm:$0xf] }
 0x107   : > { %1355 = vst [vmem:[#allocation2 + $0xa0] sm:$0xf] %v1186_v16  ;;  %v889_v24 = vadd.f32 %v4917_v55, %v865_v21  ;;  %v1029_v17 = vsel %vm4868_vm6, 0, %v1028_v15  ;;  %v1297_v21 = vld [vmem:[#allocation2 + $0xfc] sm:$0xf] }
 0x108   : > { %1358 = vst [vmem:[#allocation2 + $0xac] sm:$0x1] %v1357_v18  ;;  %v1191_v29 = vrot.slane %v1189_v23, 7 }
 0x109   : > { %1424 = vst [vmem:[#allocation2 + $0x80] sm:$0xf] %v1186_v16  ;;  %vm909_vm8 = vcmp.ge.f32.partialorder %v889_v24, 0.0  ;;  %v929_v30 = vmul.f32 0.2, %v889_v24 }
 0x10a   : > { %1427 = vst [vmem:[#allocation2 + $0x8c] sm:$0x1] %v1426_v22  ;;  %v813_v33 = vpop.f32.mrf.mxu2  ;;  %v1194_v35 = vor.u32 %v1192_v26, %v1191_v29  ;;  %v494_v39 = vpop.f32.mrf.mxu0  ;;  %v1195_v61 = vrot.slane %v1191_v29, 4  ;;  %v1435_v22 = vld [vmem:[#allocation2 + $0xbc] sm:$0xf] }
 0x10b   : > { %v949_v36 = vsel %vm909_vm8, %v889_v24, %v929_v30  ;;  %v842_v37 = vadd.f32 %v813_v33, %v640_v25  ;;  %v641_v41 = vpop.f32.mrf.mxu1  ;;  %1030 = vst [vmem:[#allocation2 + $0x104] sm:$0x1] %v1029_v17 }
 0x10c   : > { %v969_v43 = vpack.c.bf16 %v949_v36, %v949_v36  ;;  %v1291_v46 = vsel %vm4936_vm0, %v1194_v35, %v1290_v31  ;;  %v1360_v47 = vsel %vm4936_vm0, %v1194_v35, %v1359_v27  ;;  %v1429_v48 = vsel %vm4936_vm0, %v1194_v35, %v1428_v32  ;;  %v1081_v35 = vld [vmem:[#allocation2 + $0x11c] sm:$0x1] }
 0x10d   : > { %v866_v49 = vmul.f32 %v4912_v52, %v842_v37  ;;  %1292 = vst [vmem:[#allocation2 + $0xd8] sm:$0xf] %v1291_v46  ;;  %v642_v60 = vadd.f32 %v641_v41, %v494_v39  ;;  %v1082_v37 = vsel %vm4888_vm11, 0, %v1081_v35 }
 0x10e   : > { %v1197_v50 = vshrl.u32 %v969_v43, 16  ;;  %1361 = vst [vmem:[#allocation2 + $0xb8] sm:$0xf] %v1360_v47  ;;  %v1200_v57 = vshll.u32 %v969_v43, 16 }
 0x10f   : > { %v890_v53 = vadd.f32 %v4917_v55, %v866_v49  ;;  %1430 = vst [vmem:[#allocation2 + $0x98] sm:$0xf] %v1429_v48 }
 0x110   : > { %v1199_v56 = vrot.slane %v1197_v50, 7  ;;  %1083 = vst [vmem:[#allocation2 + $0x11c] sm:$0x1] %v1082_v37  ;;  %v1370_v50 = vld [vmem:[#allocation2 + $0xf4] sm:$0x1] }
 0x111   : > { %vm910_vm13 = vcmp.ge.f32.partialorder %v890_v53, 0.0  ;;  %v930_v59 = vmul.f32 0.2, %v890_v53 }
 0x112   : > { %v1202_v62 = vor.u32 %v1200_v57, %v1199_v56  ;;  %v1204_v63 = vrot.slane %v1199_v56, 4  ;;  %v815_v1 = vpop.f32.mrf.mxu2  ;;  %v497_v4 = vpop.f32.mrf.mxu0  ;;  %v1439_v56 = vld [vmem:[#allocation2 + $0xd4] sm:$0x1] }
 0x113   : > { %v950_v2 = vsel %vm910_vm13, %v890_v53, %v930_v59  ;;  %v843_v3 = vadd.f32 %v815_v1, %v642_v60  ;;  %v644_v5 = vpop.f32.mrf.mxu1  ;;  %v4673_v1 = vld [vmem:[%s5872_s3] ss:$0 sm:$0xff] }
 0x114   : > { %v1203_v6 = vsel %vm4949_vm4, %v1195_v61, %v1202_v62  ;;  %v1295_v7 = vsel %vm4868_vm6, %v1204_v63, %v1294_v51  ;;  %v1364_v8 = vsel %vm4868_vm6, %v1204_v63, %v1363_v0  ;;  %v970_v9 = vpack.c.bf16 %v950_v2, %v950_v2  ;;  %v4672_v61 = vld [vmem:[%s5871_s2] ss:$0 sm:$0xff] }
 0x115   : > { %1293 = vst [vmem:[#allocation2 + $0xe4] sm:$0xf] %v1203_v6  ;;  %v867_v10 = vmul.f32 %v4912_v52, %v843_v3  ;;  %v1433_v11 = vsel %vm4868_vm6, %v1204_v63, %v1432_v38  ;;  %v645_v14 = vadd.f32 %v644_v5, %v497_v4  ;;  %v1442_v38 = vld [vmem:[#allocation2 + $0xe0] sm:$0xf] }
 0x116   : > { %1296 = vst [vmem:[#allocation2 + $0xf0] sm:$0x1] %v1295_v7  ;;  %v1206_v12 = vshrl.u32 %v970_v9, 16  ;;  %v1209_v16 = vshll.u32 %v970_v9, 16  ;;  %v1373_v7 = vld [vmem:[#allocation2 + $0x100] sm:$0xf] }
 0x117   : > { %1362 = vst [vmem:[#allocation2 + $0xc4] sm:$0xf] %v1203_v6  ;;  %v891_v13 = vadd.f32 %v4917_v55, %v867_v10 }
 0x118   : > { %1365 = vst [vmem:[#allocation2 + $0xd0] sm:$0x1] %v1364_v8  ;;  %v1208_v18 = vrot.slane %v1206_v12, 7 }
 0x119   : > { %1431 = vst [vmem:[#allocation2 + $0xa4] sm:$0xf] %v1203_v6  ;;  %vm911_vm3 = vcmp.ge.f32.partialorder %v891_v13, 0.0  ;;  %v931_v20 = vmul.f32 0.2, %v891_v13 }
 0x11a   : > { %1434 = vst [vmem:[#allocation2 + $0xb0] sm:$0x1] %v1433_v11  ;;  %v818_v23 = vpop.f32.mrf.mxu2  ;;  %v1211_v24 = vor.u32 %v1209_v16, %v1208_v18  ;;  %v499_v27 = vpop.f32.mrf.mxu0  ;;  %v1212_v48 = vrot.slane %v1208_v18, 4 }
 0x11b   : > { %v951_v25 = vsel %vm911_vm3, %v891_v13, %v931_v20  ;;  %v844_v26 = vadd.f32 %v818_v23, %v645_v14  ;;  %v646_v28 = vpop.f32.mrf.mxu1 }
 0x11c   : > { %v971_v29 = vpack.c.bf16 %v951_v25, %v951_v25  ;;  %v1298_v30 = vsel %vm4936_vm0, %v1211_v24, %v1297_v21  ;;  %v1367_v31 = vsel %vm4936_vm0, %v1211_v24, %v1366_v42  ;;  %v1436_v32 = vsel %vm4936_vm0, %v1211_v24, %v1435_v22  ;;  %v1377_v22 = vld [vmem:[#allocation2 + $0x118] sm:$0x1] }
 0x11d   : > { %v868_v33 = vmul.f32 %v4912_v52, %v844_v26  ;;  %1299 = vst [vmem:[#allocation2 + $0xfc] sm:$0xf] %v1298_v30  ;;  %v647_v47 = vadd.f32 %v646_v28, %v499_v27  ;;  %v1446_v28 = vld [vmem:[#allocation2 + $0xf8] sm:$0x1] }
 0x11e   : > { %v1214_v36 = vshrl.u32 %v971_v29, 16  ;;  %1368 = vst [vmem:[#allocation2 + $0xdc] sm:$0xf] %v1367_v31  ;;  %v1217_v43 = vshll.u32 %v971_v29, 16 }
 0x11f   : > { %v892_v39 = vadd.f32 %v4917_v55, %v868_v33  ;;  %1437 = vst [vmem:[#allocation2 + $0xbc] sm:$0xf] %v1436_v32 }
 0x120   : > { %v1216_v41 = vrot.slane %v1214_v36, 7 }
 0x121   : > { %vm912_vm7 = vcmp.ge.f32.partialorder %v892_v39, 0.0  ;;  %v932_v46 = vmul.f32 0.2, %v892_v39 }
 0x122   : > { %v1219_v49 = vor.u32 %v1217_v43, %v1216_v41  ;;  %v1221_v52 = vrot.slane %v1216_v41, 4  ;;  %v820_v51 = vpop.f32.mrf.mxu2  ;;  %v502_v57 = vpop.f32.mrf.mxu0 }
 0x123   : > { %v952_v53 = vsel %vm912_vm7, %v892_v39, %v932_v46  ;;  %v845_v54 = vadd.f32 %v820_v51, %v647_v47  ;;  %v649_v58 = vpop.f32.mrf.mxu1  ;;  %v1449_v46 = vld [vmem:[#allocation2 + $0x104] sm:$0xf] }
 0x124   : > { %v1220_v40 = vsel %vm4949_vm4, %v1212_v48, %v1219_v49  ;;  %v1302_v55 = vsel %vm4868_vm6, %v1221_v52, %v1301_v45  ;;  %v1371_v59 = vsel %vm4868_vm6, %v1221_v52, %v1370_v50  ;;  %v972_v60 = vpack.c.bf16 %v952_v53, %v952_v53 }
 0x125   : > { %1300 = vst [vmem:[#allocation2 + $0x108] sm:$0xf] %v1220_v40  ;;  %v869_v62 = vmul.f32 %v4672_v61, %v845_v54  ;;  %v1440_v63 = vsel %vm4868_vm6, %v1221_v52, %v1439_v56  ;;  %v650_v3 = vadd.f32 %v649_v58, %v502_v57 }
 0x126   : > { %1303 = vst [vmem:[#allocation2 + $0x114] sm:$0x1] %v1302_v55  ;;  %v1305_v0 = vshrl.u32 %v972_v60, 16  ;;  %v1308_v4 = vshll.u32 %v972_v60, 16 }
 0x127   : > { %1369 = vst [vmem:[#allocation2 + $0xe8] sm:$0xf] %v1220_v40  ;;  %v893_v2 = vadd.f32 %v4673_v1, %v869_v62 }
 0x128   : > { %1372 = vst [vmem:[#allocation2 + $0xf4] sm:$0x1] %v1371_v59  ;;  %v1307_v5 = vrot.slane %v1305_v0, 7 }
 0x129   : > { %1438 = vst [vmem:[#allocation2 + $0xc8] sm:$0xf] %v1220_v40  ;;  %vm913_vm11 = vcmp.ge.f32.partialorder %v893_v2, 0.0  ;;  %v933_v6 = vmul.f32 0.2, %v893_v2 }
 0x12a   : > { %1441 = vst [vmem:[#allocation2 + $0xd4] sm:$0x1] %v1440_v63  ;;  %v823_v8 = vpop.f32.mrf.mxu2  ;;  %v1310_v9 = vor.u32 %v1308_v4, %v1307_v5  ;;  %v504_v42 = vpop.f32.mrf.mxu0  ;;  %v1311_v25 = vrot.slane %v1307_v5, 4  ;;  %v1453_v40 = vld [vmem:[#allocation2 + $0x11c] sm:$0x1] }
 0x12b   : > { %v953_v10 = vsel %vm913_vm11, %v893_v2, %v933_v6  ;;  %v846_v11 = vadd.f32 %v823_v8, %v650_v3  ;;  %v651_v17 = vpop.f32.mrf.mxu1 }
 0x12c   : > { %v973_v12 = vpack.c.bf16 %v953_v10, %v953_v10  ;;  %v1374_v13 = vsel %vm4936_vm0, %v1310_v9, %v1373_v7  ;;  %v1443_v14 = vsel %vm4936_vm0, %v1310_v9, %v1442_v38  ;;  %v652_v24 = vadd.f32 %v651_v17, %v504_v42 }
 0x12d   : > { %v870_v15 = vmul.f32 %v4672_v61, %v846_v11  ;;  %1375 = vst [vmem:[#allocation2 + $0x100] sm:$0xf] %v1374_v13 }
 0x12e   : > { %v1313_v16 = vshrl.u32 %v973_v12, 16  ;;  %1444 = vst [vmem:[#allocation2 + $0xe0] sm:$0xf] %v1443_v14  ;;  %v1316_v21 = vshll.u32 %v973_v12, 16 }
 0x12f   : > { %v894_v18 = vadd.f32 %v4673_v1, %v870_v15 }
 0x130   : > { %v1315_v20 = vrot.slane %v1313_v16, 7 }
 0x131   : > { %vm914_vm9 = vcmp.ge.f32.partialorder %v894_v18, 0.0  ;;  %v934_v23 = vmul.f32 0.2, %v894_v18 }
 0x132   : > { %v1318_v26 = vor.u32 %v1316_v21, %v1315_v20  ;;  %v1320_v27 = vrot.slane %v1315_v20, 4  ;;  %v825_v29 = vpop.f32.mrf.mxu2 }
 0x133   : > { %v954_v30 = vsel %vm914_vm9, %v894_v18, %v934_v23  ;;  %v847_v31 = vadd.f32 %v825_v29, %v652_v24 }
 0x134   : > { %v1319_v32 = vsel %vm4949_vm4, %v1311_v25, %v1318_v26  ;;  %v1378_v33 = vsel %vm4868_vm6, %v1320_v27, %v1377_v22  ;;  %v974_v35 = vpack.c.bf16 %v954_v30, %v954_v30  ;;  %v1447_v36 = vsel %vm4868_vm6, %v1320_v27, %v1446_v28 }
 0x135   : > { %1376 = vst [vmem:[#allocation2 + $0x10c] sm:$0xf] %v1319_v32  ;;  %v871_v37 = vmul.f32 %v4672_v61, %v847_v31 }
 0x136   : > { %1379 = vst [vmem:[#allocation2 + $0x118] sm:$0x1] %v1378_v33  ;;  %v1381_v39 = vshrl.u32 %v974_v35, 16  ;;  %v1384_v45 = vshll.u32 %v974_v35, 16 }
 0x137   : > { %1445 = vst [vmem:[#allocation2 + $0xec] sm:$0xf] %v1319_v32  ;;  %v895_v41 = vadd.f32 %v4673_v1, %v871_v37 }
 0x138   : > { %1448 = vst [vmem:[#allocation2 + $0xf8] sm:$0x1] %v1447_v36  ;;  %v1383_v43 = vrot.slane %v1381_v39, 7 }
 0x139   : > { %vm915_vm10 = vcmp.ge.f32.partialorder %v895_v41, 0.0  ;;  %v935_v47 = vmul.f32 0.2, %v895_v41 }
 0x13a   : > { %v1386_v48 = vor.u32 %v1384_v45, %v1383_v43  ;;  %v1387_v55 = vrot.slane %v1383_v43, 4 }
 0x13b   : > { %v955_v49 = vsel %vm915_vm10, %v895_v41, %v935_v47 }
 0x13c   : > { %v1450_v52 = vsel %vm4936_vm0, %v1386_v48, %v1449_v46  ;;  %v975_v50 = vpack.c.bf16 %v955_v49, %v955_v49 }
 0x13d   : > { %1451 = vst [vmem:[#allocation2 + $0x104] sm:$0xf] %v1450_v52 }
 0x13e   : > { %v1389_v51 = vshrl.u32 %v975_v50, 16  ;;  %v1392_v54 = vshll.u32 %v975_v50, 16 }
 0x140   : > { %v1391_v53 = vrot.slane %v1389_v51, 7 }
 0x142   : > { %v1394_v56 = vor.u32 %v1392_v54, %v1391_v53  ;;  %v1396_v57 = vrot.slane %v1391_v53, 4  ;;  %1459 = sbr.rel (%p3947_p7) target bundleno = 331 (0x14b), region = 52 }
 0x144   : > { %v1395_v58 = vsel %vm4949_vm4, %v1387_v55, %v1394_v56  ;;  %v1454_v59 = vsel %vm4868_vm6, %v1396_v57, %v1453_v40 }
 0x145   : > { %1452 = vst [vmem:[#allocation2 + $0x110] sm:$0xf] %v1395_v58 }
 0x146   : > { %1455 = vst [vmem:[#allocation2 + $0x11c] sm:$0x1] %v1454_v59 }
 0x147   : > { %v4716_v19 = vmov 0  }
 0x148   : > { %1460 = vst [vmem:[#allocation2] sm:$0xf] %v4716_v19 }
 0x149   : > { %1461 = vst [vmem:[#allocation2 + $0xc] sm:$0xf] %v4716_v19 }
 0x14a   : > { %1462 = vst [vmem:[#allocation2 + $0x18] sm:$0x1] %v4716_v19 }
 0x14b PF: > { %p3948_p8 = scmp.ne.s32.totalorder %s4698_s24, 1 }
 0x14d   : > { %1466 = sbr.rel (%p3948_p8) target bundleno = 342 (0x156), region = 56 }
 0x152   : > { %v4717_v60 = vmov 0  }
 0x153   : > { %1468 = vst [vmem:[#allocation2 + $0x104] sm:$0xf] %v4717_v60 }
 0x154   : > { %1469 = vst [vmem:[#allocation2 + $0x110] sm:$0xf] %v4717_v60 }
 0x155   : > { %1470 = vst [vmem:[#allocation2 + $0x11c] sm:$0x1] %v4717_v60 }
 0x156 PF: > { %v4539_v34 = vld [vmem:[%s5873_s4 + $0xf8] sm:$0xff]  ;;  %v4538_v44 = vld [vmem:[%s5873_s4 + $0xf0] sm:$0xff]  ;;  %v1551_v61 = vld [vmem:[#allocation2] sm:$0xff]  ;;  %vm1648_vm6 = vsmask.f32 3328  ;;  %vm2986_vm12 = vcmask 1042432  }
 0x157   : > { %2275 = vmatpush.bf16.msra.mxu3 %v4539_v34  ;;  %v1553_v62 = vld [vmem:[#allocation2 + $0xc] sm:$0xff]  ;;  %v1652_v0 = vshrl.u32 %v1551_v61, 16  ;;  %v1655_v1 = vshll.u32 %v1551_v61, 16  ;;  %v4536_v4 = vld [vmem:[%s5873_s4 + $0xe0] sm:$0xff]  ;;  %v1555_v8 = vld [vmem:[#allocation2 + $0x18] sm:$0x11] }
 0x158   : > { %v4537_v63 = vld [vmem:[%s5873_s4 + $0xe8] sm:$0xff]  ;;  %v1661_v2 = vshll.u32 %v1553_v62, 16  ;;  %v1679_v3 = vshrl.u32 %v1553_v62, 16  ;;  %v4535_v9 = vld [vmem:[%s5873_s4 + $0xd8] sm:$0xff]  ;;  %v1685_v12 = vshll.u32 %v1555_v8, 16  ;;  %v4534_v14 = vld [vmem:[%s5873_s4 + $0xd0] sm:$0xff] }
 0x159   : > { %v1654_v5 = vrot.slane %v1652_v0, 4  ;;  %v1657_v6 = vrot.slane %v1655_v1, 5  ;;  %vm1649_vm0 = vsmask.f32 7440  ;;  %v1557_v13 = vld [vmem:[#allocation2 + $0x24] sm:$0xff]  ;;  %v1559_v17 = vld [vmem:[#allocation2 + $0x30] sm:$0xff] }
 0x15a   : > { %v1663_v7 = vrot.slane %v1661_v2, 5  ;;  %v1681_v38 = vrot.slane %v1679_v3, 4  ;;  %v1687_v42 = vrot.slane %v1685_v12, 5  ;;  %vm5169_vm4 = vmor %vm1648_vm6, %vm1649_vm0  ;;  %v1700_v20 = vshrl.u32 %v1557_v13, 16  ;;  %v4533_v24 = vld [vmem:[%s5873_s4 + $0xc8] sm:$0xff]  ;;  %v4532_v33 = vld [vmem:[%s5873_s4 + $0xc0] sm:$0xff] }
 0x15b   : > { %2276 = vmatpush.bf16.msra.mxu3 %v4538_v44  ;;  %v1658_v10 = vor.u32 %v1657_v6, %v1654_v5  ;;  %v1703_v21 = vshll.u32 %v1557_v13, 16  ;;  %v1709_v22 = vshll.u32 %v1559_v17, 16  ;;  %v1727_v23 = vshrl.u32 %v1559_v17, 16  ;;  %v1561_v35 = vld [vmem:[#allocation2 + $0x3c] sm:$0x11]  ;;  %v4546_v45 = vld [vmem:[%s5873_s4 + $0x130] sm:$0xff] }
 0x15c   : > { %v1682_v11 = vor.u32 %v1681_v38, %v1663_v7  ;;  %v1702_v27 = vrot.slane %v1700_v20, 4  ;;  %v4547_v36 = vld [vmem:[%s5873_s4 + $0x138] sm:$0xff]  ;;  %v1733_v43 = vshll.u32 %v1561_v35, 16  ;;  %v1563_v49 = vld [vmem:[#allocation2 + $0x48] sm:$0xff]  ;;  %v1567_v44 = vld [vmem:[#allocation2 + $0x60] sm:$0x11] }
 0x15d   : > { %v1659_v15 = vrot.slane %v1658_v10, 4  ;;  %v1705_v28 = vrot.slane %v1703_v21, 5  ;;  %v1711_v31 = vrot.slane %v1709_v22, 5  ;;  %v1729_v32 = vrot.slane %v1727_v23, 4  ;;  %v1565_v52 = vld [vmem:[#allocation2 + $0x54] sm:$0xff]  ;;  %v4545_v50 = vld [vmem:[%s5873_s4 + $0x128] sm:$0xff] }
 0x15e   : > { %v1683_v16 = vrot.slane %v1682_v11, 4  ;;  %v1735_v48 = vrot.slane %v1733_v43, 5  ;;  %v1748_v54 = vshrl.u32 %v1563_v49, 16  ;;  %v1751_v40 = vshll.u32 %v1563_v49, 16  ;;  %v1569_v1 = vld [vmem:[#allocation2 + $0x6c] sm:$0xff]  ;;  %v1571_v2 = vld [vmem:[#allocation2 + $0x78] sm:$0xff] }
 0x15f   : > { %2277 = vmatpush.bf16.msra.mxu3 %v4537_v63  ;;  %v5178_v25 = vsel %vm5169_vm4, %v1659_v15, %v1663_v7  ;;  %v1706_v39 = vor.u32 %v1705_v28, %v1702_v27  ;;  %v1730_v41 = vor.u32 %v1729_v32, %v1711_v31  ;;  %v1757_v55 = vshll.u32 %v1565_v52, 16  ;;  %v4544_v3 = vld [vmem:[%s5873_s4 + $0x120] sm:$0xff]  ;;  %v1579_v49 = vld [vmem:[#allocation2 + $0xa8] sm:$0x11] }
 0x160   : > { %v5182_v26 = vsel %vm5169_vm4, %v1683_v16, %v1687_v42  ;;  %v2035_v29 = vunpack.c.l.b16 %v5178_v25  ;;  %v1775_v56 = vshrl.u32 %v1565_v52, 16  ;;  %v1750_v59 = vrot.slane %v1748_v54, 4  ;;  %v1573_v17 = vld [vmem:[#allocation2 + $0x84] sm:$0x11] }
 0x161   : > { %v2038_v30 = vunpack.c.l.b16 %v5182_v26  ;;  %v1707_v46 = vrot.slane %v1706_v39, 4  ;;  %v1731_v47 = vrot.slane %v1730_v41, 4  ;;  %v1753_v19 = vrot.slane %v1751_v40, 5  ;;  %v4524_v18 = vld [vmem:[%s5873_s4 + $0x80] sm:$0xff] }
 0x162   : > { %v1759_v60 = vrot.slane %v1757_v55, 5  ;;  %v1777_v34 = vrot.slane %v1775_v56, 4  ;;  %v1781_v0 = vshll.u32 %v1567_v44, 16  ;;  %v1796_v7 = vshrl.u32 %v1569_v1, 16  ;;  %v1583_v44 = vld [vmem:[#allocation2 + $0xc0] sm:$0xff] }
 0x163   : > { %2278 = vmatpush.bf16.msra.mxu3 %v4536_v4  ;;  %v2083_v37 = vpack.c.b16 %v2038_v30, %v2035_v29  ;;  %v5200_v51 = vsel %vm5169_vm4, %v1707_v46, %v1711_v31  ;;  %v5204_v53 = vsel %vm5169_vm4, %v1731_v47, %v1735_v48  ;;  %v1754_v62 = vor.u32 %v1753_v19, %v1750_v59  ;;  %v4543_v29 = vld [vmem:[%s5873_s4 + $0x118] sm:$0xff]  ;;  %v1575_v30 = vld [vmem:[#allocation2 + $0x90] sm:$0xff] }
 0x164   : > { %v2041_v57 = vunpack.c.l.b16 %v5200_v51  ;;  %v2044_v58 = vunpack.c.l.b16 %v5204_v53  ;;  %v1778_v63 = vor.u32 %v1777_v34, %v1759_v60  ;;  %v1783_v6 = vrot.slane %v1781_v0, 5  ;;  %v1577_v31 = vld [vmem:[#allocation2 + $0x9c] sm:$0xff]  ;;  %v1581_v34 = vld [vmem:[#allocation2 + $0xb4] sm:$0xff] }
 0x165   : > { %v1755_v4 = vrot.slane %v1754_v62, 4  ;;  %v1799_v38 = vshll.u32 %v1569_v1, 16  ;;  %v1805_v8 = vshll.u32 %v1571_v2, 16  ;;  %v1798_v12 = vrot.slane %v1796_v7, 4  ;;  %v4523_v59 = vld [vmem:[%s5873_s4 + $0x78] sm:$0xff] }
 0x166   : > { %v2086_v61 = vpack.c.b16 %v2044_v58, %v2041_v57  ;;  %v1779_v5 = vrot.slane %v1778_v63, 4  ;;  %v1829_v22 = vshll.u32 %v1573_v17, 16  ;;  %v1844_v35 = vshrl.u32 %v1575_v30, 16  ;;  %v4542_v58 = vld [vmem:[%s5873_s4 + $0x110] sm:$0xff]  ;;  %v4555_v19 = vld [vmem:[%s5873_s4 + $0x178] sm:$0xff]  ;;  %2743 = vmatpush.bf16.msrb.mxu2 %v4523_v59 }
 0x167   : > { %2279 = vmatpush.bf16.msra.mxu3 %v4535_v9  ;;  %v1823_v9 = vshrl.u32 %v1571_v2, 16  ;;  %v5213_v10 = vsel %vm5169_vm4, %v1755_v4, %v1759_v60  ;;  %v1801_v13 = vrot.slane %v1799_v38, 5  ;;  %v1871_v39 = vshrl.u32 %v1577_v31, 16  ;;  %v4515_v60 = vld [vmem:[%s5873_s4 + $0x38] sm:$0xff]  ;;  %2373 = vmatpush.bf16.msrb.mxu0 %v4555_v19  ;;  %v4554_v17 = vld [vmem:[%s5873_s4 + $0x170] sm:$0xff] }
 0x168   : > { %v5217_v11 = vsel %vm5169_vm4, %v1779_v5, %v1783_v6  ;;  %v2047_v16 = vunpack.c.l.b16 %v5213_v10  ;;  %v1831_v28 = vrot.slane %v1829_v22, 5  ;;  %v1877_v40 = vshll.u32 %v1579_v49, 16  ;;  %2694 = vmatpush.bf16.msrb.mxu1 %v4515_v60  ;;  %v1585_v6 = vld [vmem:[#allocation2 + $0xcc] sm:$0x11] }
 0x169   : > { %v1825_v15 = vrot.slane %v1823_v9, 4  ;;  %v2050_v42 = vunpack.c.l.b16 %v5217_v11  ;;  %v1802_v20 = vor.u32 %v1801_v13, %v1798_v12  ;;  %v1873_v48 = vrot.slane %v1871_v39, 4  ;;  %v4518_v19 = vld [vmem:[%s5873_s4 + $0x50] sm:$0xff] }
 0x16a   : > { %v1879_v57 = vrot.slane %v1877_v40, 5  ;;  %v1892_v0 = vshrl.u32 %v1581_v34, 16  ;;  %v1895_v1 = vshll.u32 %v1581_v34, 16  ;;  %v1901_v2 = vshll.u32 %v1583_v44, 16 }
 0x16b   : > { %2280 = vmatpush.bf16.msra.mxu3 %v4534_v14  ;;  %v1807_v14 = vrot.slane %v1805_v8, 5  ;;  %v2089_v23 = vpack.c.b16 %v2050_v42, %v2047_v16  ;;  %v1925_v13 = vshll.u32 %v1585_v6, 16  ;;  %v1587_v16 = vld [vmem:[#allocation2 + $0xd8] sm:$0xff]  ;;  %v1589_v42 = vld [vmem:[#allocation2 + $0xe4] sm:$0xff]  ;;  %2374 = vmatpush.bf16.msrb.mxu0 %v4554_v17  ;;  %v2036_v60 = vunpack.c.h.b16 %v5178_v25  ;;  %v4510_v25 = vld [vmem:[%s5873_s4 + $0x10] sm:$0xff] }
 0x16c   : > { %v1894_v7 = vrot.slane %v1892_v0, 4  ;;  %v1897_v38 = vrot.slane %v1895_v1, 5  ;;  %v1903_v8 = vrot.slane %v1901_v2, 5  ;;  %v2039_v34 = vunpack.c.h.b16 %v5182_v26  ;;  %v1593_v2 = vld [vmem:[#allocation2 + $0xfc] sm:$0xff]  ;;  %v4517_v26 = vld [vmem:[%s5873_s4 + $0x48] sm:$0xff] }
 0x16d   : > { %v1826_v21 = vor.u32 %v1825_v15, %v1807_v14  ;;  %v1927_v22 = vrot.slane %v1925_v13, 5  ;;  %vm2987_vm14 = vcmask 1046532  }
 0x16e   : > { %vm5526_vm15 = vmor %vm2986_vm12, %vm2987_vm14 }
 0x16f   : > { %2281 = vmatpush.bf16.msra.mxu3 %v4533_v24  ;;  %v1803_v24 = vrot.slane %v1802_v20, 4  ;;  %v1827_v27 = vrot.slane %v1826_v21, 4  ;;  %v4514_v20 = vld [vmem:[%s5873_s4 + $0x30] sm:$0xff]  ;;  %v4521_v21 = vld [vmem:[%s5873_s4 + $0x68] sm:$0xff] }
 0x170   : > { %2695 = vmatpush.bf16.msrb.mxu1 %v4514_v20 }
 0x171   : > { %v5226_v32 = vsel %vm5169_vm4, %v1803_v24, %v1807_v14  ;;  %v1898_v14 = vor.u32 %v1897_v38, %v1894_v7 }
 0x172   : > { %v2053_v41 = vunpack.c.l.b16 %v5226_v32 }
 0x173   : > { %2282 = vmatpush.bf16.msra.mxu3 %v4532_v33  ;;  %v5230_v33 = vsel %vm5169_vm4, %v1827_v27, %v1831_v28  ;;  %v1899_v24 = vrot.slane %v1898_v14, 4  ;;  %v1940_v28 = vshrl.u32 %v1587_v16, 16  ;;  %v5325_v14 = vpack.c.b16 %v2039_v34, %v2036_v60  ;;  %v1597_v60 = vld [vmem:[#allocation2 + $0x114] sm:$0x11] }
 0x174   : > { %v2056_v43 = vunpack.c.l.b16 %v5230_v33 }
 0x175   : > { %v5282_v39 = vsel %vm5169_vm4, %v1899_v24, %v1903_v8 }
 0x176   : > { %2283 = vmatmul.bf16.vlgmr.msra.gmra.mxu3 %v2083_v37  ;;  %v1853_v37 = vshll.u32 %v1577_v31, 16  ;;  %v2092_v52 = vpack.c.b16 %v2056_v43, %v2053_v41  ;;  %v4513_v31 = vld [vmem:[%s5873_s4 + $0x28] sm:$0xff]  ;;  %v1942_v43 = vrot.slane %v1940_v28, 4  ;;  %v1988_v28 = vshrl.u32 %v1593_v2, 16 }
 0x177   : > { %2324 = vmatpush.bf16.msrb.mxu3 %v4547_v36  ;;  %v1847_v36 = vshll.u32 %v1575_v30, 16  ;;  %v4553_v30 = vld [vmem:[%s5873_s4 + $0x168] sm:$0xff]  ;;  %2696 = vmatpush.bf16.msrb.mxu1 %v4513_v31  ;;  %v1991_v31 = vshll.u32 %v1593_v2, 16 }
 0x178   : > { %v1855_v47 = vrot.slane %v1853_v37, 5  ;;  %v4520_v37 = vld [vmem:[%s5873_s4 + $0x60] sm:$0xff]  ;;  %2375 = vmatpush.bf16.msrb.mxu0 %v4553_v30 }
 0x179   : > { %v1849_v46 = vrot.slane %v1847_v36, 5  ;;  %v1967_v36 = vshrl.u32 %v1589_v42, 16 }
 0x17a   : > { %v1874_v54 = vor.u32 %v1873_v48, %v1855_v47  ;;  %v1591_v48 = vld [vmem:[#allocation2 + $0xf0] sm:$0x11] }
 0x17b   : > { %2325 = vmatpush.bf16.msrb.mxu3 %v4546_v45  ;;  %v1846_v45 = vrot.slane %v1844_v35, 4  ;;  %v1949_v35 = vshll.u32 %v1589_v42, 16  ;;  %v4484_v42 = vld [vmem:[#allocation2 + $0x4] sm:$0xf] }
 0x17c   : > { %v1875_v56 = vrot.slane %v1874_v54, 4  ;;  %v2065_v54 = vunpack.c.l.b16 %v5282_v39 }
 0x17d   : > { %v1951_v49 = vrot.slane %v1949_v35, 5 }
 0x17e   : > { %v5255_v63 = vsel %vm5169_vm4, %v1875_v56, %v1879_v57  ;;  %v1973_v56 = vshll.u32 %v1591_v48, 16  ;;  %v4551_v57 = vld [vmem:[%s5873_s4 + $0x158] sm:$0xff]  ;;  %v4508_v48 = vld [vmem:[%s5873_s4] sm:$0xff] }
 0x17f   : > { %2326 = vmatpush.bf16.msrb.mxu3 %v4545_v50  ;;  %v1850_v50 = vor.u32 %v1849_v46, %v1846_v45  ;;  %v2062_v5 = vunpack.c.l.b16 %v5255_v63  ;;  %v4552_v46 = vld [vmem:[%s5873_s4 + $0x160] sm:$0xff] }
 0x180   : > { %2376 = vmatpush.bf16.msrb.mxu0 %v4552_v46  ;;  %v1975_v0 = vrot.slane %v1973_v56, 5 }
 0x181   : > { %v1851_v55 = vrot.slane %v1850_v50, 4  ;;  %v4519_v50 = vld [vmem:[%s5873_s4 + $0x58] sm:$0xff] }
 0x183   : > { %2327 = vmatpush.bf16.msrb.mxu3 %v4544_v3  ;;  %v5251_v62 = vsel %vm5169_vm4, %v1851_v55, %v1855_v47  ;;  %v1919_v3 = vshrl.u32 %v1583_v44, 16  ;;  %v4512_v47 = vld [vmem:[%s5873_s4 + $0x20] sm:$0xff] }
 0x184   : > { %v2059_v4 = vunpack.c.l.b16 %v5251_v62  ;;  %2697 = vmatpush.bf16.msrb.mxu1 %v4512_v47  ;;  %2377 = vmatpush.bf16.msrb.mxu0 %v4551_v57  ;;  %v1993_v57 = vrot.slane %v1991_v31, 5 }
 0x185   : > { %v1921_v9 = vrot.slane %v1919_v3, 4  ;;  %v1552_v3 = vld [vmem:[#allocation2 + $0x8] sm:$0xf] }
 0x186   : > { %2288 = vmatmul.bf16.gmra.mxu3 %v2086_v61  ;;  %v4522_v61 = vld [vmem:[%s5873_s4 + $0x70] sm:$0xff]  ;;  %v2095_v12 = vpack.c.b16 %v2062_v5, %v2059_v4  ;;  %v1666_v6 = vshrl.u32 %v1552_v3, 16  ;;  %v1669_v7 = vshll.u32 %v1552_v3, 16 }
 0x187   : > { %2328 = vmatpush.bf16.msrb.mxu3 %v4543_v29  ;;  %2744 = vmatpush.bf16.msrb.mxu2 %v4522_v61  ;;  %v1922_v15 = vor.u32 %v1921_v9, %v1903_v8  ;;  %v1943_v29 = vshll.u32 %v1587_v16, 16  ;;  %v1554_v4 = vld [vmem:[#allocation2 + $0x14] sm:$0xf]  ;;  %v1595_v8 = vld [vmem:[#allocation2 + $0x108] sm:$0xff]  ;;  %v4540_v9 = vld [vmem:[%s5873_s4 + $0x100] sm:$0xff] }
 0x188   : > { %v4550_v5 = vld [vmem:[%s5873_s4 + $0x150] sm:$0xff]  ;;  %v1675_v38 = vshll.u32 %v1554_v4, 16  ;;  %v1689_v13 = vshrl.u32 %v1554_v4, 16  ;;  %v4516_v16 = vld [vmem:[%s5873_s4 + $0x40] sm:$0xff]  ;;  %v1668_v17 = vrot.slane %v1666_v6, 4  ;;  %v1997_v35 = vshll.u32 %v1595_v8, 16 }
 0x189   : > { %v1923_v27 = vrot.slane %v1922_v15, 4  ;;  %v1945_v45 = vrot.slane %v1943_v29, 5  ;;  %2378 = vmatpush.bf16.msrb.mxu0 %v4550_v5  ;;  %v4509_v15 = vld [vmem:[%s5873_s4 + $0x8] sm:$0xff]  ;;  %v2021_v4 = vshll.u32 %v1597_v60, 16  ;;  %v1564_v60 = vld [vmem:[#allocation2 + $0x50] sm:$0xf] }
 0x18a   : > { %v1677_v24 = vrot.slane %v1675_v38, 5  ;;  %v1691_v29 = vrot.slane %v1689_v13, 4 }
 0x18b   : > { %2329 = vmatpush.bf16.msrb.mxu3 %v4542_v58  ;;  %2745 = vmatpush.bf16.msrb.mxu2 %v4521_v21  ;;  %v5286_v41 = vsel %vm5169_vm4, %v1923_v27, %v1927_v22  ;;  %v1946_v55 = vor.u32 %v1945_v45, %v1942_v43  ;;  %v4511_v58 = vld [vmem:[%s5873_s4 + $0x18] sm:$0xff]  ;;  %v4097_v21 = vld [vmem:[#allocation2 + $0xc] sm:$0xf0]  ;;  %v1556_v22 = vld [vmem:[#allocation2 + $0x20] sm:$0x1]  ;;  %v2023_v13 = vrot.slane %v2021_v4, 5 }
 0x18c   : > { %v2068_v40 = vunpack.c.l.b16 %v5286_v41  ;;  %2698 = vmatpush.bf16.msrb.mxu1 %v4511_v58  ;;  %v1695_v30 = vshll.u32 %v1556_v22, 16  ;;  %v4100_v43 = vor.u32 %v4484_v42, %v4097_v21  ;;  %v4548_v45 = vld [vmem:[%s5873_s4 + $0x140] sm:$0xff]  ;;  %v1692_v46 = vor.u32 %v1691_v29, %v1677_v24  ;;  %v4487_v29 = vld [vmem:[#allocation2 + $0x28] sm:$0xf] }
 0x18d   : > { %v1947_v61 = vrot.slane %v1946_v55, 4  ;;  %v1990_v55 = vrot.slane %v1988_v28, 4  ;;  %v1999_v58 = vrot.slane %v1997_v35, 5  ;;  %v4571_v28 = vld [vmem:[%s5873_s4 + $0x1f8] sm:$0xff] }
 0x18e   : > { %v2098_v44 = vpack.c.b16 %v2068_v40, %v2065_v54  ;;  %v1697_v47 = vrot.slane %v1695_v30, 5  ;;  %v1693_v56 = vrot.slane %v1692_v46, 4 }
 0x18f   : > { %2746 = vmatpush.bf16.msrb.mxu2 %v4520_v37  ;;  %v5335_v20 = vsel %vm5169_vm4, %v1947_v61, %v1951_v49  ;;  %v1994_v2 = vor.u32 %v1993_v57, %v1990_v55  ;;  %v4488_v57 = vld [vmem:[#allocation2 + $0x2c] sm:$0xf0] }
 0x190   : > { %2699 = vmatpush.bf16.msrb.mxu1 %v4510_v25  ;;  %v2071_v54 = vunpack.c.l.b16 %v5335_v20  ;;  %v1698_v34 = vsel %vm5169_vm4, %v1693_v56, %v1697_v47  ;;  %v1558_v25 = vld [vmem:[#allocation2 + $0x2c] sm:$0xf]  ;;  %v4107_v56 = vld [vmem:[#allocation2 + $0x24] sm:$0xf] }
 0x191   : > { %v1714_v6 = vshrl.u32 %v1558_v25, 16 }
 0x193   : > { %2747 = vmatpush.bf16.msrb.mxu2 %v4519_v50  ;;  %v4485_v50 = vld [vmem:[#allocation2 + $0x8] sm:$0xf0]  ;;  %v1716_v42 = vrot.slane %v1714_v6, 4  ;;  %v1568_v6 = vld [vmem:[#allocation2 + $0x68] sm:$0x1] }
 0x194   : > { %2700 = vmatpush.bf16.msrb.mxu1 %v4509_v15  ;;  %v4531_v15 = vld [vmem:[%s5873_s4 + $0xb8] sm:$0xff] }
 0x196   : > { %2293 = vmatmul.bf16.gmra.mxu3 %v2089_v23  ;;  %v4541_v23 = vld [vmem:[%s5873_s4 + $0x108] sm:$0xff] }
 0x197   : > { %2330 = vmatpush.bf16.msrb.mxu3 %v4541_v23  ;;  %2748 = vmatpush.bf16.msrb.mxu2 %v4518_v19  ;;  %v1671_v23 = vrot.slane %v1669_v7, 5  ;;  %v1717_v7 = vshll.u32 %v1558_v25, 16 }
 0x198   : > { %2701 = vmatpush.bf16.msrb.mxu1 %v4508_v48 }
 0x199   : > { %v1672_v37 = vor.u32 %v1671_v23, %v1668_v17  ;;  %v1719_v17 = vrot.slane %v1717_v7, 5  ;;  %v1562_v23 = vld [vmem:[#allocation2 + $0x44] sm:$0x1]  ;;  %v4562_v7 = vld [vmem:[%s5873_s4 + $0x1b0] sm:$0xff] }
 0x19a   : > { %v1743_v35 = vshll.u32 %v1562_v23, 16 }
 0x19b   : > { %2331 = vmatpush.bf16.msrb.mxu3 %v4540_v9  ;;  %2749 = vmatpush.bf16.msrb.mxu2 %v4517_v26  ;;  %v1560_v26 = vld [vmem:[#allocation2 + $0x38] sm:$0xf]  ;;  %v1995_v9 = vrot.slane %v1994_v2, 4  ;;  %v1720_v30 = vor.u32 %v1719_v17, %v1716_v42  ;;  %v4530_v2 = vld [vmem:[%s5873_s4 + $0xb0] sm:$0xff] }
 0x19c   : > { %v1723_v38 = vshll.u32 %v1560_v26, 16  ;;  %3390 = vmatpush.bf16.msra.mxu1 %v4571_v28  ;;  %v1745_v48 = vrot.slane %v1743_v35, 5 }
 0x19d   : > { %v1721_v46 = vrot.slane %v1720_v30, 4  ;;  %v4491_v30 = vld [vmem:[#allocation2 + $0x50] sm:$0xf0] }
 0x19e   : > { %v1725_v21 = vrot.slane %v1723_v38, 5  ;;  %v4570_v38 = vld [vmem:[%s5873_s4 + $0x1f0] sm:$0xff] }
 0x19f   : > { %2750 = vmatpush.bf16.msrb.mxu2 %v4516_v16  ;;  %v4579_v16 = vld [vmem:[%s5873_s4 + $0x238] sm:$0xff]  ;;  %2792 = vmatpush.bf16.msra.mxu3 %v4531_v15 }
 0x1a0   : > { %v4121_v15 = vld [vmem:[#allocation2 + $0x54] sm:$0xf0]  ;;  %3391 = vmatpush.bf16.msra.mxu1 %v4570_v38  ;;  %v4131_v38 = vld [vmem:[#allocation2 + $0x6c] sm:$0xf] }
 0x1a2   : > { %2751 = vmatmul.bf16.vlgmr.msrb.gmra.mxu2 %v4100_v43  ;;  %v4109_v43 = vld [vmem:[#allocation2 + $0x30] sm:$0xf0] }
 0x1a3   : > { %3439 = vmatpush.bf16.msra.mxu2 %v4579_v16  ;;  %2793 = vmatpush.bf16.msra.mxu3 %v4530_v2 }
 0x1a6   : > { %2298 = vmatmul.bf16.gmra.mxu3 %v2092_v52  ;;  %v1969_v52 = vrot.slane %v1967_v36, 4  ;;  %v2015_v36 = vshrl.u32 %v1595_v8, 16  ;;  %v1737_v8 = vshrl.u32 %v1560_v26, 16 }
 0x1a8   : > { %v1970_v59 = vor.u32 %v1969_v52, %v1951_v49  ;;  %v1673_v49 = vrot.slane %v1672_v37, 4  ;;  %v4095_v52 = vld [vmem:[#allocation2] sm:$0xf]  ;;  %v1739_v22 = vrot.slane %v1737_v8, 4  ;;  %v4490_v8 = vld [vmem:[#allocation2 + $0x4c] sm:$0xf] }
 0x1a9   : > { %v4096_v61 = vor.u32 %v4485_v50, %v4095_v52  ;;  %v4124_v16 = vor.u32 %v4490_v8, %v4121_v15  ;;  %v4494_v8 = vld [vmem:[#allocation2 + $0x74] sm:$0xf0] }
 0x1aa   : > { %v1971_v1 = vrot.slane %v1970_v59, 4  ;;  %v2017_v59 = vrot.slane %v2015_v36, 4  ;;  %v1678_v19 = vsel %vm5169_vm4, %v1673_v49, %v1677_v24  ;;  %v4563_v24 = vld [vmem:[%s5873_s4 + $0x1b8] sm:$0xff]  ;;  %v1740_v31 = vor.u32 %v1739_v22, %v1725_v21 }
 0x1ab   : > { %2702 = vmatmul.bf16.vlgmr.msrb.gmra.mxu1 %v4096_v61  ;;  %v5367_v36 = vsel %vm5169_vm4, %v1995_v9, %v1999_v58  ;;  %v1726_v49 = vsel %vm5169_vm4, %v1721_v46, %v1725_v21  ;;  %v1765_v61 = vshll.u32 %v1564_v60, 16 }
 0x1ac   : > { %v5339_v27 = vsel %vm5169_vm4, %v1971_v1, %v1975_v0  ;;  %v2040_v0 = vunpack.c.l.b16 %v1698_v34  ;;  %v2018_v3 = vor.u32 %v2017_v59, %v1999_v58  ;;  %v1741_v47 = vrot.slane %v1740_v31, 4  ;;  %v1566_v34 = vld [vmem:[#allocation2 + $0x5c] sm:$0xf] }
 0x1ad   : > { %v2074_v40 = vunpack.c.l.b16 %v5339_v27  ;;  %v2077_v50 = vunpack.c.l.b16 %v5367_v36  ;;  %v4108_v59 = vor.u32 %v4488_v57, %v4107_v56  ;;  %v1574_v57 = vld [vmem:[#allocation2 + $0x8c] sm:$0x1] }
 0x1ae   : > { %v1746_v52 = vsel %vm5169_vm4, %v1741_v47, %v1745_v48 }
 0x1af   : > { %v2101_v1 = vpack.c.b16 %v2074_v40, %v2071_v54  ;;  %v2043_v40 = vunpack.c.l.b16 %v1726_v49  ;;  %v2046_v55 = vunpack.c.l.b16 %v1746_v52  ;;  %v4529_v52 = vld [vmem:[%s5873_s4 + $0xa8] sm:$0xff] }
 0x1b0   : > { %2794 = vmatpush.bf16.msra.mxu3 %v4529_v52  ;;  %v4145_v52 = vld [vmem:[#allocation2 + $0x9c] sm:$0xf0] }
 0x1b1   : > { %v2088_v58 = vpack.c.b16 %v2046_v55, %v2043_v40 }
 0x1b6   : > { %2303 = vmatmul.bf16.gmra.mxu3 %v2095_v12  ;;  %v4549_v12 = vld [vmem:[%s5873_s4 + $0x148] sm:$0xff] }
 0x1b7   : > { %2379 = vmatpush.bf16.msrb.mxu0 %v4549_v12  ;;  %v2019_v12 = vrot.slane %v2018_v3, 4  ;;  %v4578_v3 = vld [vmem:[%s5873_s4 + $0x230] sm:$0xff] }
 0x1b8   : > { %3440 = vmatpush.bf16.msra.mxu2 %v4578_v3 }
 0x1b9   : > { %v5371_v37 = vsel %vm5169_vm4, %v2019_v12, %v2023_v13  ;;  %v1791_v13 = vshll.u32 %v1568_v6, 16 }
 0x1ba   : > { %v2080_v54 = vunpack.c.l.b16 %v5371_v37 }
 0x1bb   : > { %2380 = vmatpush.bf16.msrb.mxu0 %v4548_v45  ;;  %v4112_v45 = vor.u32 %v4487_v29, %v4109_v43  ;;  %2707 = vmatmul.bf16.gmra.mxu1 %v4108_v59  ;;  %v1793_v21 = vrot.slane %v1791_v13, 5  ;;  %v4119_v29 = vld [vmem:[#allocation2 + $0x48] sm:$0xf]  ;;  %v1570_v43 = vld [vmem:[#allocation2 + $0x74] sm:$0xf] }
 0x1bc   : > { %v4120_v35 = vor.u32 %v4491_v30, %v4119_v29  ;;  %v1810_v46 = vshrl.u32 %v1570_v43, 16  ;;  %v1813_v47 = vshll.u32 %v1570_v43, 16  ;;  %v4569_v59 = vld [vmem:[%s5873_s4 + $0x1e8] sm:$0xff]  ;;  %v4560_v43 = vld [vmem:[%s5873_s4 + $0x1a0] sm:$0xff] }
 0x1bd   : > { %2756 = vmatmul.bf16.gmra.mxu2 %v4112_v45  ;;  %v1572_v45 = vld [vmem:[#allocation2 + $0x80] sm:$0xf]  ;;  %3392 = vmatpush.bf16.msra.mxu1 %v4569_v59 }
 0x1be   : > { %v1819_v48 = vshll.u32 %v1572_v45, 16  ;;  %v1833_v49 = vshrl.u32 %v1572_v45, 16  ;;  %v1815_v40 = vrot.slane %v1813_v47, 5  ;;  %v4568_v45 = vld [vmem:[%s5873_s4 + $0x1e0] sm:$0xff] }
 0x1bf   : > { %3341 = vmatpush.bf16.msra.mxu0 %v4563_v24 }
 0x1c0   : > { %v1821_v55 = vrot.slane %v1819_v48, 5  ;;  %v1835_v56 = vrot.slane %v1833_v49, 4 }
 0x1c1   : > { %3393 = vmatpush.bf16.msra.mxu1 %v4568_v45 }
 0x1c3   : > { %3342 = vmatpush.bf16.msra.mxu0 %v4562_v7 }
 0x1c6   : > { %2308 = vmatmul.bf16.gmra.mxu3 %v2098_v44  ;;  %v2037_v44 = vunpack.c.l.b16 %v1678_v19  ;;  %v2104_v19 = vpack.c.b16 %v2080_v54, %v2077_v50  ;;  %v4577_v50 = vld [vmem:[%s5873_s4 + $0x228] sm:$0xff]  ;;  %v1812_v54 = vrot.slane %v1810_v46, 4  ;;  %v4496_v46 = vld [vmem:[#allocation2 + $0x94] sm:$0xf] }
 0x1c7   : > { %3441 = vmatpush.bf16.msra.mxu2 %v4577_v50  ;;  %v4148_v50 = vor.u32 %v4496_v46, %v4145_v52 }
 0x1c8   : > { %v2085_v5 = vpack.c.b16 %v2040_v0, %v2037_v44  ;;  %v1762_v44 = vshrl.u32 %v1564_v60, 16  ;;  %v1771_v0 = vshll.u32 %v1566_v34, 16  ;;  %v1816_v60 = vor.u32 %v1815_v40, %v1812_v54 }
 0x1ca   : > { %2381 = vmatmul.bf16.vlgmr.msrb.gmra.mxu0 %v2085_v5  ;;  %v1764_v4 = vrot.slane %v1762_v44, 4  ;;  %v1767_v5 = vrot.slane %v1765_v61, 5  ;;  %v1773_v25 = vrot.slane %v1771_v0, 5  ;;  %v1839_v44 = vshll.u32 %v1574_v57, 16  ;;  %v4133_v61 = vld [vmem:[#allocation2 + $0x78] sm:$0xf0] }
 0x1cb   : > { %2712 = vmatmul.bf16.gmra.mxu1 %v4120_v35  ;;  %v2063_v57 = vunpack.c.h.b16 %v5255_v63 }
 0x1cc   : > { %v1768_v9 = vor.u32 %v1767_v5, %v1764_v4  ;;  %v1841_v3 = vrot.slane %v1839_v44, 5 }
 0x1cd   : > { %2761 = vmatmul.bf16.gmra.mxu2 %v4124_v16  ;;  %v1576_v16 = vld [vmem:[#allocation2 + $0x98] sm:$0xf] }
 0x1ce   : > { %v1769_v42 = vrot.slane %v1768_v9, 4 }
 0x1d0   : > { %v1774_v22 = vsel %vm5169_vm4, %v1769_v42, %v1773_v25  ;;  %v1578_v42 = vld [vmem:[#allocation2 + $0xa4] sm:$0xf] }
 0x1d1   : > { %v2049_v24 = vunpack.c.l.b16 %v1774_v22  ;;  %v1867_v22 = vshll.u32 %v1578_v42, 16 }
 0x1d3   : > { %v1869_v29 = vrot.slane %v1867_v22, 5 }
 0x1d6   : > { %2313 = vmatmul.bf16.gmra.mxu3 %v2101_v1  ;;  %v1785_v1 = vshrl.u32 %v1566_v34, 16  ;;  %v1836_v34 = vor.u32 %v1835_v56, %v1821_v55  ;;  %v2060_v56 = vunpack.c.h.b16 %v5251_v62 }
 0x1d8   : > { %v1787_v26 = vrot.slane %v1785_v1, 4  ;;  %v1817_v1 = vrot.slane %v1816_v60, 4  ;;  %v1837_v2 = vrot.slane %v1836_v34, 4  ;;  %v2051_v60 = vunpack.c.h.b16 %v5217_v11 }
 0x1d9   : > { %v5442_v63 = vpack.c.b16 %v2063_v57, %v2060_v56  ;;  %v1588_v57 = vld [vmem:[#allocation2 + $0xe0] sm:$0xf] }
 0x1da   : > { %2386 = vmatmul.bf16.gmra.mxu0 %v2088_v58  ;;  %v1788_v12 = vor.u32 %v1787_v26, %v1773_v25  ;;  %v1822_v4 = vsel %vm5169_vm4, %v1817_v1, %v1821_v55  ;;  %v1842_v5 = vsel %vm5169_vm4, %v1837_v2, %v1841_v3  ;;  %v2042_v25 = vunpack.c.h.b16 %v5200_v51 }
 0x1db   : > { %v2045_v26 = vunpack.c.h.b16 %v5204_v53  ;;  %v2055_v6 = vunpack.c.l.b16 %v1822_v4  ;;  %v2058_v7 = vunpack.c.l.b16 %v1842_v5  ;;  %v1881_v51 = vshrl.u32 %v1578_v42, 16  ;;  %v4528_v53 = vld [vmem:[%s5873_s4 + $0xa0] sm:$0xff]  ;;  %v1582_v4 = vld [vmem:[#allocation2 + $0xbc] sm:$0xf]  ;;  %v1584_v5 = vld [vmem:[#allocation2 + $0xc8] sm:$0xf] }
 0x1dc   : > { %v1789_v17 = vrot.slane %v1788_v12, 4  ;;  %v4132_v12 = vor.u32 %v4494_v8, %v4131_v38  ;;  %2795 = vmatpush.bf16.msra.mxu3 %v4528_v53  ;;  %v1929_v11 = vshrl.u32 %v1584_v5, 16  ;;  %v4559_v42 = vld [vmem:[%s5873_s4 + $0x198] sm:$0xff] }
 0x1dd   : > { %v2094_v9 = vpack.c.b16 %v2058_v7, %v2055_v6  ;;  %v2087_v15 = vpack.c.b16 %v2045_v26, %v2042_v25  ;;  %v1883_v30 = vrot.slane %v1881_v51, 4  ;;  %v1906_v25 = vshrl.u32 %v1582_v4, 16  ;;  %v4527_v6 = vld [vmem:[%s5873_s4 + $0x98] sm:$0xff] }
 0x1de   : > { %v1794_v23 = vsel %vm5169_vm4, %v1789_v17, %v1793_v21  ;;  %2717 = vmatmul.bf16.gmra.mxu1 %v4132_v12  ;;  %v1858_v17 = vshrl.u32 %v1576_v16, 16  ;;  %v1861_v21 = vshll.u32 %v1576_v16, 16  ;;  %v1915_v26 = vshll.u32 %v1584_v5, 16  ;;  %v4575_v7 = vld [vmem:[%s5873_s4 + $0x218] sm:$0xff]  ;;  %v4566_v5 = vld [vmem:[%s5873_s4 + $0x1d0] sm:$0xff] }
 0x1df   : > { %v2052_v28 = vunpack.c.l.b16 %v1794_v23  ;;  %v4576_v23 = vld [vmem:[%s5873_s4 + $0x220] sm:$0xff]  ;;  %v1884_v48 = vor.u32 %v1883_v30, %v1869_v29  ;;  %v1908_v38 = vrot.slane %v1906_v25, 4  ;;  %v1931_v12 = vrot.slane %v1929_v11, 4  ;;  %v4502_v25 = vld [vmem:[#allocation2 + $0xdc] sm:$0xf] }
 0x1e0   : > { %3442 = vmatpush.bf16.msra.mxu2 %v4576_v23  ;;  %2796 = vmatpush.bf16.msra.mxu3 %v4527_v6  ;;  %v4157_v23 = vld [vmem:[#allocation2 + $0xc0] sm:$0xf0]  ;;  %v4169_v6 = vld [vmem:[#allocation2 + $0xe4] sm:$0xf0] }
 0x1e1   : > { %v2091_v31 = vpack.c.b16 %v2052_v28, %v2049_v24  ;;  %v1860_v24 = vrot.slane %v1858_v17, 4  ;;  %v1863_v28 = vrot.slane %v1861_v21, 5  ;;  %v1885_v40 = vrot.slane %v1884_v48, 4  ;;  %v4567_v17 = vld [vmem:[%s5873_s4 + $0x1d8] sm:$0xff] }
 0x1e2   : > { %v4499_v21 = vld [vmem:[#allocation2 + $0xb8] sm:$0xf]  ;;  %3394 = vmatpush.bf16.msra.mxu1 %v4567_v17  ;;  %v2057_v48 = vunpack.c.h.b16 %v5230_v33 }
 0x1e3   : > { %v1864_v47 = vor.u32 %v1863_v28, %v1860_v24  ;;  %v4160_v24 = vor.u32 %v4499_v21, %v4157_v23 }
 0x1e4   : > { %3443 = vmatpush.bf16.msra.mxu2 %v4575_v7  ;;  %v4172_v7 = vor.u32 %v4502_v25, %v4169_v6  ;;  %v4506_v25 = vld [vmem:[#allocation2 + $0x104] sm:$0xf0] }
 0x1e5   : > { %v1865_v54 = vrot.slane %v1864_v47, 4  ;;  %v2054_v47 = vunpack.c.h.b16 %v5226_v32  ;;  %v1957_v32 = vshll.u32 %v1588_v57, 16 }
 0x1e6   : > { %2318 = vmatmul.bf16.gmra.mxu3 %v2104_v19  ;;  %v4493_v19 = vld [vmem:[#allocation2 + $0x70] sm:$0xf]  ;;  %3395 = vmatpush.bf16.msra.mxu1 %v4566_v5  ;;  %v4179_v5 = vld [vmem:[#allocation2 + $0xfc] sm:$0xf] }
 0x1e7   : > { %v4136_v0 = vor.u32 %v4493_v19, %v4133_v61  ;;  %v2048_v19 = vunpack.c.h.b16 %v5213_v10  ;;  %v4143_v61 = vld [vmem:[#allocation2 + $0x90] sm:$0xf]  ;;  %v1909_v10 = vshll.u32 %v1582_v4, 16  ;;  %v2093_v56 = vpack.c.b16 %v2057_v48, %v2054_v47  ;;  %v4573_v47 = vld [vmem:[%s5873_s4 + $0x208] sm:$0xff] }
 0x1e8   : > { %v4558_v4 = vld [vmem:[%s5873_s4 + $0x190] sm:$0xff] }
 0x1e9   : > { %2766 = vmatmul.bf16.gmra.mxu2 %v4136_v0  ;;  %v4497_v0 = vld [vmem:[#allocation2 + $0x98] sm:$0xf0]  ;;  %v2090_v3 = vpack.c.b16 %v2051_v60, %v2048_v19  ;;  %v1911_v8 = vrot.slane %v1909_v10, 5  ;;  %v4526_v60 = vld [vmem:[%s5873_s4 + $0x90] sm:$0xff] }
 0x1ea   : > { %2391 = vmatmul.bf16.gmra.mxu0 %v2091_v31  ;;  %v1580_v31 = vld [vmem:[#allocation2 + $0xb0] sm:$0x1]  ;;  %v4144_v2 = vor.u32 %v4497_v0, %v4143_v61  ;;  %v1959_v61 = vrot.slane %v1957_v32, 5  ;;  %2797 = vmatpush.bf16.msra.mxu3 %v4526_v60  ;;  %v4181_v32 = vld [vmem:[#allocation2 + $0x108] sm:$0xf0] }
 0x1eb   : > { %v1887_v49 = vshll.u32 %v1580_v31, 16  ;;  %v1912_v22 = vor.u32 %v1911_v8, %v1908_v38  ;;  %v2066_v31 = vunpack.c.h.b16 %v5282_v39 }
 0x1ed   : > { %v1889_v55 = vrot.slane %v1887_v49, 5  ;;  %v1913_v28 = vrot.slane %v1912_v22, 4 }
 0x1ee   : > { %2722 = vmatmul.bf16.gmra.mxu1 %v4144_v2  ;;  %v1592_v2 = vld [vmem:[#allocation2 + $0xf8] sm:$0x1] }
 0x1ef   : > { %v1890_v59 = vsel %vm5169_vm4, %v1885_v40, %v1889_v55  ;;  %v1983_v11 = vshll.u32 %v1592_v2, 16 }
 0x1f0   : > { %v2064_v44 = vunpack.c.l.b16 %v1890_v59  ;;  %v1954_v59 = vshrl.u32 %v1588_v57, 16 }
 0x1f6   : > { %2332 = vmatmul.bf16.vlgmr.msrb.gmra.mxu3 %v5325_v14  ;;  %v4561_v14 = vld [vmem:[%s5873_s4 + $0x1a8] sm:$0xff] }
 0x1f7   : > { %3343 = vmatpush.bf16.msra.mxu0 %v4561_v14  ;;  %v1870_v14 = vsel %vm5169_vm4, %v1865_v54, %v1869_v29  ;;  %v4500_v54 = vld [vmem:[#allocation2 + $0xbc] sm:$0xf0] }
 0x1f8   : > { %v2061_v34 = vunpack.c.l.b16 %v1870_v14  ;;  %v1590_v14 = vld [vmem:[#allocation2 + $0xec] sm:$0xf] }
 0x1f9   : > { %v5402_v58 = vpop.f32.mrf.mxu3  ;;  %2771 = vmatmul.bf16.gmra.mxu2 %v4148_v50  ;;  %v4155_v50 = vld [vmem:[#allocation2 + $0xb4] sm:$0xf]  ;;  %v1963_v19 = vshll.u32 %v1590_v14, 16  ;;  %v1977_v33 = vshrl.u32 %v1590_v14, 16 }
 0x1fa   : > { %2396 = vmatmul.bf16.gmra.mxu0 %v2094_v9  ;;  %v2097_v1 = vpack.c.b16 %v2064_v44, %v2061_v34  ;;  %v1917_v9 = vrot.slane %v1915_v26, 5  ;;  %v4156_v55 = vor.u32 %v4500_v54, %v4155_v50  ;;  %v4574_v34 = vld [vmem:[%s5873_s4 + $0x210] sm:$0xff]  ;;  %v1956_v44 = vrot.slane %v1954_v59, 4  ;;  %v1598_v54 = vld [vmem:[#allocation2 + $0x11c] sm:$0x1] }
 0x1fb   : > { %3344 = vmatpush.bf16.msra.mxu0 %v4560_v43  ;;  %v2069_v43 = vunpack.c.h.b16 %v5286_v41  ;;  %v1965_v0 = vrot.slane %v1963_v19, 5  ;;  %3444 = vmatpush.bf16.msra.mxu2 %v4574_v34  ;;  %v2031_v59 = vshll.u32 %v1598_v54, 16 }
 0x1fc   : > { %v1932_v51 = vor.u32 %v1931_v12, %v1917_v9  ;;  %v1918_v45 = vsel %vm5169_vm4, %v1913_v28, %v1917_v9  ;;  %v1960_v10 = vor.u32 %v1959_v61, %v1956_v44  ;;  %v1985_v9 = vrot.slane %v1983_v11, 5 }
 0x1fd   : > { %v2067_v49 = vunpack.c.l.b16 %v1918_v45  ;;  %v5468_v41 = vpack.c.b16 %v2069_v43, %v2066_v31  ;;  %v2072_v12 = vunpack.c.h.b16 %v5335_v20  ;;  %v1594_v20 = vld [vmem:[#allocation2 + $0x104] sm:$0xf]  ;;  %v2033_v34 = vrot.slane %v2031_v59, 5 }
 0x1fe   : > { %v1933_v29 = vrot.slane %v1932_v51, 4  ;;  %2727 = vmatmul.bf16.gmra.mxu1 %v4156_v55  ;;  %v1961_v38 = vrot.slane %v1960_v10, 4  ;;  %v4167_v51 = vld [vmem:[#allocation2 + $0xd8] sm:$0xf]  ;;  %v2005_v31 = vshll.u32 %v1594_v20, 16  ;;  %v4565_v55 = vld [vmem:[%s5873_s4 + $0x1c8] sm:$0xff]  ;;  %v2078_v44 = vunpack.c.h.b16 %v5367_v36 }
 0x1ff   : > { %3345 = vmatpush.bf16.msra.mxu0 %v4559_v42  ;;  %3445 = vmatpush.bf16.msra.mxu2 %v4573_v47  ;;  %v2081_v61 = vunpack.c.h.b16 %v5371_v37  ;;  %v2844_v36 = vld [vmem:[#allocation2 + $0x14] sm:$0xf] }
 0x200   : > { %v1966_v42 = vsel %vm5169_vm4, %v1961_v38, %v1965_v0  ;;  %3396 = vmatpush.bf16.msra.mxu1 %v4565_v55  ;;  %v2995_v37 = vrot.slane %v2844_v36, 5  ;;  %v2842_v38 = vld [vmem:[#allocation2 + $0x8] sm:$0xe] }
 0x201   : > { %v5416_v13 = vpop.f32.mrf.mxu3  ;;  %v2073_v21 = vunpack.c.l.b16 %v1966_v42  ;;  %v5517_v6 = vpack.c.b16 %v2081_v61, %v2078_v44  ;;  %v2843_v42 = vld [vmem:[#allocation2 + $0xc] sm:$0xff] }
 0x203   : > { %3346 = vmatpush.bf16.msra.mxu0 %v4558_v4 }
 0x206   : > { %2337 = vmatmul.bf16.gmra.mxu3 %v2087_v15  ;;  %v1586_v15 = vld [vmem:[#allocation2 + $0xd4] sm:$0x1] }
 0x207   : > { %v1935_v53 = vshll.u32 %v1586_v15, 16  ;;  %v2075_v15 = vunpack.c.h.b16 %v5339_v27  ;;  %v1596_v27 = vld [vmem:[#allocation2 + $0x110] sm:$0xf] }
 0x208   : > { %v2011_v43 = vshll.u32 %v1596_v27, 16  ;;  %v2025_v45 = vshrl.u32 %v1596_v27, 16  ;;  %v2845_v27 = vld [vmem:[#allocation2 + $0x18] sm:$0x11] }
 0x209   : > { %v5424_v35 = vpop.f32.mrf.mxu3  ;;  %v1937_v30 = vrot.slane %v1935_v53, 5  ;;  %2776 = vmatmul.bf16.gmra.mxu2 %v4160_v24  ;;  %v4503_v53 = vld [vmem:[#allocation2 + $0xe0] sm:$0xf0] }
 0x20a   : > { %2401 = vmatmul.bf16.gmra.mxu0 %v2097_v1  ;;  %v1979_v1 = vrot.slane %v1977_v33, 4  ;;  %v4168_v24 = vor.u32 %v4503_v53, %v4167_v51  ;;  %v2027_v50 = vrot.slane %v2025_v45, 4  ;;  %v2991_v53 = vrot.slane %v2843_v42, 5 }
 0x20b   : > { %v1938_v46 = vsel %vm5169_vm4, %v1933_v29, %v1937_v30  ;;  %v5492_v29 = vpack.c.b16 %v2075_v15, %v2072_v12  ;;  %v2002_v30 = vshrl.u32 %v1594_v20, 16  ;;  %v3000_v12 = vrot.slane %v2995_v37, 4  ;;  %v2841_v20 = vld [vmem:[#allocation2] sm:$0xee] }
 0x20c   : > { %v2070_v52 = vunpack.c.l.b16 %v1938_v46  ;;  %v1980_v26 = vor.u32 %v1979_v1, %v1965_v0  ;;  %v4525_v46 = vld [vmem:[%s5873_s4 + $0x88] sm:$0xff]  ;;  %v2998_v45 = vrot.slane %v2845_v27, 5 }
 0x20d   : > { %v2004_v48 = vrot.slane %v2002_v30, 4  ;;  %2798 = vmatpush.bf16.msra.mxu3 %v4525_v46 }
 0x20e   : > { %v2100_v40 = vpack.c.b16 %v2070_v52, %v2067_v49  ;;  %v1981_v8 = vrot.slane %v1980_v26, 4  ;;  %2732 = vmatmul.bf16.gmra.mxu1 %v4168_v24  ;;  %v2007_v49 = vrot.slane %v2005_v31, 5  ;;  %v2013_v52 = vrot.slane %v2011_v43, 5 }
 0x20f   : > { %v4180_v26 = vor.u32 %v4506_v25, %v4179_v5  ;;  %v4333_v31 = vrot.slane %v2841_v20, 9  ;;  %v2997_v43 = vrot.slane %v2991_v53, 4 }
 0x210   : > { %v1986_v17 = vsel %vm5169_vm4, %v1981_v8, %v1985_v9  ;;  %v2008_v57 = vor.u32 %v2007_v49, %v2004_v48  ;;  %v2028_v14 = vor.u32 %v2027_v50, %v2013_v52  ;;  %v2846_v8 = vld [vmem:[#allocation2 + $0x20] sm:$0x1]  ;;  %v4334_v9 = vrot.slane %v2842_v38, 9 }
 0x211   : > { %v5440_v62 = vpop.f32.mrf.mxu3  ;;  %v2076_v22 = vunpack.c.l.b16 %v1986_v17  ;;  %2799 = vmatpush.bf16.msra.mxu3 %v4524_v18  ;;  %v2992_v47 = vsel %vm5526_vm15, %v4333_v31, %v2991_v53  ;;  %v2999_v48 = vsel %vm5526_vm15, %v2997_v43, %v2998_v45  ;;  %v2851_v18 = vld [vmem:[#allocation2 + $0x3c] sm:$0x11]  ;;  %v2854_v45 = vld [vmem:[#allocation2 + $0x50] sm:$0xe] }
 0x212   : > { %v2009_v33 = vrot.slane %v2008_v57, 4  ;;  %v2029_v60 = vrot.slane %v2028_v14, 4  ;;  %v2996_v51 = vsel %vm5526_vm15, %v4334_v9, %v2995_v37  ;;  %v3101_v49 = vunpack.c.l.b16 %v2992_v47  ;;  %v2847_v37 = vld [vmem:[#allocation2 + $0x24] sm:$0xee]  ;;  %v2856_v31 = vld [vmem:[#allocation2 + $0x5c] sm:$0xf] }
 0x213   : > { %v2103_v23 = vpack.c.b16 %v2076_v22, %v2073_v21  ;;  %v4556_v21 = vld [vmem:[%s5873_s4 + $0x180] sm:$0xff]  ;;  %v3103_v24 = vunpack.c.l.b16 %v2996_v51  ;;  %v3102_v50 = vunpack.c.h.b16 %v2992_v47  ;;  %v3105_v54 = vunpack.c.h.b16 %v2999_v48 }
 0x214   : > { %v2014_v0 = vsel %vm5169_vm4, %v2009_v33, %v2013_v52  ;;  %v2034_v1 = vsel %vm5169_vm4, %v2029_v60, %v2033_v34  ;;  %v4564_v22 = vld [vmem:[%s5873_s4 + $0x1c0] sm:$0xff]  ;;  %v3104_v52 = vunpack.c.l.b16 %v2999_v48  ;;  %v2848_v33 = vld [vmem:[#allocation2 + $0x2c] sm:$0xe]  ;;  %v3023_v43 = vrot.slane %v2856_v31, 5  ;;  %v2860_v31 = vld [vmem:[#allocation2 + $0x74] sm:$0xe] }
 0x215   : > { %v2079_v2 = vunpack.c.l.b16 %v2014_v0  ;;  %v2082_v4 = vunpack.c.l.b16 %v2034_v1  ;;  %3397 = vmatpush.bf16.msra.mxu1 %v4564_v22  ;;  %v2852_v60 = vld [vmem:[#allocation2 + $0x44] sm:$0x1]  ;;  %v4336_v34 = vrot.slane %v2848_v33, 9  ;;  %v2849_v1 = vld [vmem:[#allocation2 + $0x30] sm:$0xff]  ;;  %v4338_v47 = vrot.slane %v2854_v45, 9 }
 0x216   : > { %2342 = vmatmul.bf16.gmra.mxu3 %v2090_v3  ;;  %v3149_v55 = vpack.c.b16 %v3104_v52, %v3101_v49  ;;  %v3015_v61 = vrot.slane %v2852_v60, 5  ;;  %v3028_v48 = vrot.slane %v3023_v43, 4  ;;  %v4340_v45 = vrot.slane %v2860_v31, 9 }
 0x217   : > { %v2106_v10 = vpack.c.b16 %v2082_v4, %v2079_v2 }
 0x219   : > { %v5450_v16 = vpop.f32.mrf.mxu3  ;;  %2781 = vmatmul.bf16.gmra.mxu2 %v4172_v7  ;;  %v4572_v7 = vld [vmem:[%s5873_s4 + $0x200] sm:$0xff] }
 0x21a   : > { %2406 = vmatmul.bf16.gmra.mxu0 %v2100_v40  ;;  %3446 = vmatpush.bf16.msra.mxu2 %v4572_v7  ;;  %v4335_v7 = vrot.slane %v2847_v37, 9 }
 0x21e   : > { %2737 = vmatmul.bf16.gmra.mxu1 %v4180_v26 }
 0x221   : > { %v5466_v39 = vpop.f32.mrf.mxu3 }
 0x225   : > { %v5552_v59 = vpop.f32.mrf.mxu2 }
 0x226   : > { %2347 = vmatmul.bf16.gmra.mxu3 %v2093_v56  ;;  %v4505_v56 = vld [vmem:[#allocation2 + $0x100] sm:$0xf] }
 0x227   : > { %v4184_v19 = vor.u32 %v4505_v56, %v4181_v32  ;;  %v3150_v56 = vpack.c.b16 %v3105_v54, %v3102_v50  ;;  %v2850_v32 = vld [vmem:[#allocation2 + $0x38] sm:$0xf] }
 0x228   : > { %v2855_v50 = vld [vmem:[#allocation2 + $0x54] sm:$0xff] }
 0x229   : > { %v5476_v3 = vpop.f32.mrf.mxu3  ;;  %2786 = vmatmul.bf16.gmra.mxu2 %v4184_v19  ;;  %v3009_v19 = vrot.slane %v2850_v32, 5 }
 0x22a   : > { %2411 = vmatmul.bf16.gmra.mxu0 %v2103_v23 }
 0x22b   : > { %v3014_v44 = vrot.slane %v3009_v19, 4  ;;  %v3010_v5 = vsel %vm5526_vm15, %v4336_v34, %v3009_v19  ;;  %v3019_v19 = vrot.slane %v2855_v50, 5  ;;  %v2853_v34 = vld [vmem:[#allocation2 + $0x48] sm:$0xee] }
 0x22c   : > { %v3109_v26 = vunpack.c.l.b16 %v3010_v5 }
 0x22d   : > { %v3016_v25 = vsel %vm5526_vm15, %v3014_v44, %v3015_v61  ;;  %v2857_v44 = vld [vmem:[#allocation2 + $0x60] sm:$0x11]  ;;  %v4337_v61 = vrot.slane %v2853_v34, 9 }
 0x22e   : > { %3398 = vmatmul.bf16.vlgmr.msra.gmra.mxu1 %v3150_v56  ;;  %v3112_v36 = vunpack.c.l.b16 %v3016_v25  ;;  %v3024_v56 = vsel %vm5526_vm15, %v4338_v47, %v3023_v43  ;;  %v3026_v5 = vrot.slane %v2857_v44, 5  ;;  %v2864_v43 = vld [vmem:[#allocation2 + $0x8c] sm:$0x1] }
 0x22f   : > { %v3115_v33 = vunpack.c.l.b16 %v3024_v56  ;;  %v3043_v47 = vrot.slane %v2864_v43, 5 }
 0x230   : > { %v3154_v9 = vpack.c.b16 %v3112_v36, %v3109_v26 }
 0x231   : > { %v5490_v28 = vpop.f32.mrf.mxu3 }
 0x236   : > { %2352 = vmatmul.bf16.gmra.mxu3 %v5442_v63  ;;  %v4557_v63 = vld [vmem:[%s5873_s4 + $0x188] sm:$0xff] }
 0x237   : > { %3347 = vmatpush.bf16.msra.mxu0 %v4557_v63  ;;  %v5546_v63 = vpop.f32.mrf.mxu1 }
 0x239   : > { %v5501_v40 = vpop.f32.mrf.mxu3 }
 0x23a   : > { %2416 = vmatmul.bf16.gmra.mxu0 %v2106_v10  ;;  %v3005_v10 = vrot.slane %v2849_v1, 5  ;;  %v3025_v1 = vrot.slane %v3019_v19, 4 }
 0x23b   : > { %3348 = vmatpush.bf16.msra.mxu0 %v4556_v21 }
 0x23c   : > { %v3011_v38 = vrot.slane %v3005_v10, 4  ;;  %v3027_v26 = vsel %vm5526_vm15, %v3025_v1, %v3026_v5  ;;  %v2859_v1 = vld [vmem:[#allocation2 + $0x6c] sm:$0xee]  ;;  %v2863_v5 = vld [vmem:[#allocation2 + $0x84] sm:$0x11] }
 0x23d   : > { %v3116_v37 = vunpack.c.l.b16 %v3027_v26 }
 0x23f   : > { %v5555_v0 = vpop.f32.mrf.mxu1 }
 0x241   : > { %v5515_v11 = vpop.f32.mrf.mxu3 }
 0x246   : > { %2357 = vmatmul.bf16.gmra.mxu3 %v5468_v41  ;;  %v3001_v41 = vrot.slane %v2846_v8, 5  ;;  %v3012_v8 = vrot.slane %v2851_v18, 5 }
 0x247   : > { %v5550_v14 = vpop.f32.mrf.mxu0  ;;  %v5571_v53 = vpop.f32.mrf.mxu1 }
 0x248   : > { %v3002_v23 = vsel %vm5526_vm15, %v3000_v12, %v3001_v41  ;;  %v3006_v12 = vsel %vm5526_vm15, %v4335_v7, %v3005_v10  ;;  %v3013_v41 = vsel %vm5526_vm15, %v3011_v38, %v3012_v8  ;;  %v3020_v10 = vsel %vm5526_vm15, %v4337_v61, %v3019_v19  ;;  %v4103_v38 = vld [vmem:[#allocation2 + $0x8] sm:$0xf]  ;;  %v4486_v8 = vld [vmem:[#allocation2 + $0x10] sm:$0xf0] }
 0x249   : > { %v5530_v17 = vpop.f32.mrf.mxu3  ;;  %v3106_v30 = vunpack.c.l.b16 %v3002_v23  ;;  %v3107_v42 = vunpack.c.l.b16 %v3006_v12  ;;  %v3110_v21 = vunpack.c.l.b16 %v3013_v41  ;;  %v3108_v22 = vunpack.c.h.b16 %v3006_v12 }
 0x24a   : > { %3349 = vmatmul.bf16.vlgmr.msra.gmra.mxu0 %v3149_v55  ;;  %v3111_v51 = vunpack.c.h.b16 %v3013_v41  ;;  %v3113_v36 = vunpack.c.l.b16 %v3020_v10  ;;  %v3114_v18 = vunpack.c.h.b16 %v3020_v10  ;;  %v3117_v7 = vunpack.c.h.b16 %v3027_v26 }
 0x24b   : > { %v3151_v46 = vpack.c.b16 %v3106_v30, %v3103_v24  ;;  %v3152_v23 = vpack.c.b16 %v3110_v21, %v3107_v42  ;;  %v3040_v26 = vrot.slane %v2863_v5, 5 }
 0x24c   : > { %v3153_v24 = vpack.c.b16 %v3111_v51, %v3108_v22  ;;  %v3155_v12 = vpack.c.b16 %v3116_v37, %v3113_v36  ;;  %v3156_v41 = vpack.c.b16 %v3117_v7, %v3114_v18  ;;  %v4104_v22 = vor.u32 %v4486_v8, %v4103_v38 }
 0x24d   : > { %3447 = vmatmul.bf16.vlgmr.msra.gmra.mxu2 %v3151_v46  ;;  %v2858_v46 = vld [vmem:[#allocation2 + $0x68] sm:$0x1] }
 0x24e   : > { %3403 = vmatmul.bf16.gmra.mxu1 %v3153_v24  ;;  %v3029_v49 = vrot.slane %v2858_v46, 5 }
 0x24f   : > { %v5559_v4 = vpop.f32.mrf.mxu0  ;;  %v5580_v52 = vpop.f32.mrf.mxu1 }
 0x250   : > { %v3030_v32 = vsel %vm5526_vm15, %v3028_v48, %v3029_v49  ;;  %v2861_v49 = vld [vmem:[#allocation2 + $0x78] sm:$0xff] }
 0x251   : > { %v5548_v57 = vpop.f32.mrf.mxu3  ;;  %v3118_v60 = vunpack.c.l.b16 %v3030_v32 }
 0x253   : > { %v3157_v25 = vpack.c.b16 %v3118_v60, %v3115_v33  ;;  %v3033_v33 = vrot.slane %v2861_v49, 5 }
 0x255   : > { %v3039_v10 = vrot.slane %v3033_v33, 4 }
 0x256   : > { %2362 = vmatmul.bf16.gmra.mxu3 %v5492_v29  ;;  %v5565_v29 = vpop.f32.mrf.mxu2 }
 0x257   : > { %v5575_v27 = vpop.f32.mrf.mxu0  ;;  %v3041_v7 = vsel %vm5526_vm15, %v3039_v10, %v3040_v26 }
 0x259   : > { %v5557_v2 = vpop.f32.mrf.mxu3 }
 0x25a   : > { %3354 = vmatmul.bf16.gmra.mxu0 %v3152_v23  ;;  %v2862_v23 = vld [vmem:[#allocation2 + $0x80] sm:$0xf] }
 0x25b   : > { %v3037_v24 = vrot.slane %v2862_v23, 5 }
 0x25d   : > { %3452 = vmatmul.bf16.gmra.mxu2 %v3154_v9  ;;  %v5596_v9 = vpop.f32.mrf.mxu1  ;;  %v3042_v46 = vrot.slane %v3037_v24, 4  ;;  %v3038_v32 = vsel %vm5526_vm15, %v4340_v45, %v3037_v24 }
 0x25e   : > { %v5577_v30 = vpop.f32.mrf.mxu2  ;;  %3408 = vmatmul.bf16.gmra.mxu1 %v3156_v41  ;;  %v3121_v44 = vunpack.c.l.b16 %v3038_v32  ;;  %v4115_v41 = vld [vmem:[#allocation2 + $0x2c] sm:$0xf] }
 0x25f   : > { %v5584_v55 = vpop.f32.mrf.mxu0  ;;  %v3044_v19 = vsel %vm5526_vm15, %v3042_v46, %v3043_v47 }
 0x260   : > { %v3124_v61 = vunpack.c.l.b16 %v3044_v19 }
 0x261   : > { %v5573_v20 = vpop.f32.mrf.mxu3 }
 0x262   : > { %v3160_v37 = vpack.c.b16 %v3124_v61, %v3121_v44 }
 0x265   : > { %v5604_v48 = vpop.f32.mrf.mxu1 }
 0x266   : > { %2367 = vmatmul.bf16.gmra.mxu3 %v5517_v6  ;;  %v5590_v6 = vpop.f32.mrf.mxu2 }
 0x267   : > { %v5600_v21 = vpop.f32.mrf.mxu0 }
 0x269   : > { %v5582_v54 = vpop.f32.mrf.mxu3 }
 0x26a   : > { %3359 = vmatmul.bf16.gmra.mxu0 %v3155_v12  ;;  %v3123_v12 = vunpack.c.h.b16 %v3041_v7 }
 0x26d   : > { %3457 = vmatmul.bf16.gmra.mxu2 %v3157_v25  ;;  %v4339_v25 = vrot.slane %v2859_v1, 9  ;;  %v5621_v24 = vpop.f32.mrf.mxu1 }
 0x26e   : > { %v5602_v51 = vpop.f32.mrf.mxu2 }
 0x26f   : > { %v5606_v56 = vpop.f32.mrf.mxu0  ;;  %v3034_v18 = vsel %vm5526_vm15, %v4339_v25, %v3033_v33  ;;  %v2866_v33 = vld [vmem:[#allocation2 + $0x98] sm:$0xe] }
 0x270   : > { %v3119_v38 = vunpack.c.l.b16 %v3034_v18  ;;  %v3120_v8 = vunpack.c.h.b16 %v3034_v18  ;;  %v4342_v61 = vrot.slane %v2866_v33, 9 }
 0x271   : > { %v5598_v42 = vpop.f32.mrf.mxu3 }
 0x275   : > { %v5633_v5 = vpop.f32.mrf.mxu1 }
 0x276   : > { %2800 = vmatmul.bf16.vlgmr.msra.gmra.mxu3 %v4104_v22  ;;  %v5613_v34 = vpop.f32.mrf.mxu2  ;;  %v4489_v22 = vld [vmem:[#allocation2 + $0x34] sm:$0xf0] }
 0x277   : > { %v5623_v45 = vpop.f32.mrf.mxu0  ;;  %v4116_v49 = vor.u32 %v4489_v22, %v4115_v41 }
 0x279   : > { %v2333_v50 = vpop.f32.mrf.mxu3 }
 0x27a   : > { %v2334_v60 = vadd.f32 %v2333_v50, %v5402_v58  ;;  %v3122_v58 = vunpack.c.l.b16 %v3041_v7 }
 0x27c   : > { %v2383_v36 = vadd.f32 %v5550_v14, %v2334_v60  ;;  %v3158_v31 = vpack.c.b16 %v3122_v58, %v3119_v38  ;;  %v3159_v14 = vpack.c.b16 %v3123_v12, %v3120_v8  ;;  %v2870_v60 = vld [vmem:[#allocation2 + $0xb0] sm:$0x1]  ;;  %v2865_v58 = vld [vmem:[#allocation2 + $0x90] sm:$0xee]  ;;  %v2869_v8 = vld [vmem:[#allocation2 + $0xa8] sm:$0x11] }
 0x27d   : > { %3462 = vmatmul.bf16.gmra.mxu2 %v3160_v37  ;;  %v3054_v41 = vrot.slane %v2869_v8, 5  ;;  %v5653_v33 = vpop.f32.mrf.mxu1 }
 0x27e   : > { %v2704_v23 = vadd.f32 %v5546_v63, %v2383_v36  ;;  %v5629_v50 = vpop.f32.mrf.mxu2  ;;  %3413 = vmatmul.bf16.gmra.mxu1 %v3159_v14  ;;  %3364 = vmatmul.bf16.gmra.mxu0 %v3158_v31  ;;  %v2868_v63 = vld [vmem:[#allocation2 + $0xa4] sm:$0xf] }
 0x27f   : > { %v3051_v19 = vrot.slane %v2868_v63, 5  ;;  %v5638_v26 = vpop.f32.mrf.mxu0  ;;  %v4492_v63 = vld [vmem:[#allocation2 + $0x58] sm:$0xf0] }
 0x280   : > { %v5626_v46 = vadd.f32 %v5552_v59, %v2704_v23  ;;  %v3057_v59 = vrot.slane %v2870_v60, 5 }
 0x281   : > { %v2335_v43 = vpop.f32.mrf.mxu3  ;;  %v3056_v1 = vrot.slane %v3051_v19, 4 }
 0x282   : > { %v2336_v47 = vadd.f32 %v2335_v43, %v5416_v13  ;;  %v2867_v13 = vld [vmem:[#allocation2 + $0x9c] sm:$0xff] }
 0x283   : > { %v3058_v36 = vsel %vm5526_vm15, %v3056_v1, %v3057_v59  ;;  %v3047_v37 = vrot.slane %v2867_v13, 5 }
 0x284   : > { %v2385_v32 = vadd.f32 %v5559_v4, %v2336_v47  ;;  %v3052_v4 = vsel %vm5526_vm15, %v4342_v61, %v3051_v19  ;;  %v3130_v38 = vunpack.c.l.b16 %v3058_v36 }
 0x285   : > { %v3127_v7 = vunpack.c.l.b16 %v3052_v4  ;;  %v3053_v12 = vrot.slane %v3047_v37, 4  ;;  %v5665_v8 = vpop.f32.mrf.mxu1 }
 0x286   : > { %2805 = vmatmul.bf16.gmra.mxu3 %v4116_v49  ;;  %v2706_v44 = vadd.f32 %v5555_v0, %v2385_v32  ;;  %v5645_v18 = vpop.f32.mrf.mxu2  ;;  %v4127_v32 = vld [vmem:[#allocation2 + $0x50] sm:$0xf] }
 0x287   : > { %v3163_v23 = vpack.c.b16 %v3130_v38, %v3127_v7  ;;  %v3055_v14 = vsel %vm5526_vm15, %v3053_v12, %v3054_v41  ;;  %v5655_v61 = vpop.f32.mrf.mxu0  ;;  %v4128_v13 = vor.u32 %v4492_v63, %v4127_v32 }
 0x288   : > { %v5636_v25 = vadd.f32 %v5565_v29, %v2706_v44  ;;  %v4341_v29 = vrot.slane %v2865_v58, 9  ;;  %v3129_v49 = vunpack.c.h.b16 %v3055_v14 }
 0x289   : > { %v2338_v10 = vpop.f32.mrf.mxu3 }
 0x28a   : > { %v2339_v0 = vadd.f32 %v2338_v10, %v5424_v35  ;;  %v3048_v31 = vsel %vm5526_vm15, %v4341_v29, %v3047_v37  ;;  %v3128_v35 = vunpack.c.l.b16 %v3055_v14  ;;  %v2872_v37 = vld [vmem:[#allocation2 + $0xbc] sm:$0xe] }
 0x28b   : > { %v3125_v43 = vunpack.c.l.b16 %v3048_v31  ;;  %v3126_v47 = vunpack.c.h.b16 %v3048_v31  ;;  %v4344_v38 = vrot.slane %v2872_v37, 9 }
 0x28c   : > { %v2388_v22 = vadd.f32 %v5575_v27, %v2339_v0  ;;  %v2876_v0 = vld [vmem:[#allocation2 + $0xd4] sm:$0x1] }
 0x28d   : > { %3467 = vmatmul.bf16.gmra.mxu2 %v3163_v23  ;;  %v3161_v60 = vpack.c.b16 %v3128_v35, %v3125_v43  ;;  %v3162_v27 = vpack.c.b16 %v3129_v49, %v3126_v47  ;;  %v2871_v35 = vld [vmem:[#allocation2 + $0xb4] sm:$0xee]  ;;  %v2875_v47 = vld [vmem:[#allocation2 + $0xcc] sm:$0x11]  ;;  %v5685_v37 = vpop.f32.mrf.mxu1 }
 0x28e   : > { %v2709_v19 = vadd.f32 %v5571_v53, %v2388_v22  ;;  %v5661_v10 = vpop.f32.mrf.mxu2  ;;  %v2874_v53 = vld [vmem:[#allocation2 + $0xc8] sm:$0xf]  ;;  %v3068_v32 = vrot.slane %v2875_v47, 5 }
 0x28f   : > { %3418 = vmatmul.bf16.gmra.mxu1 %v3162_v27  ;;  %3369 = vmatmul.bf16.gmra.mxu0 %v3161_v60  ;;  %v3065_v36 = vrot.slane %v2874_v53, 5  ;;  %v5670_v41 = vpop.f32.mrf.mxu0  ;;  %v4495_v53 = vld [vmem:[#allocation2 + $0x7c] sm:$0xf0] }
 0x290   : > { %v5658_v1 = vadd.f32 %v5577_v30, %v2709_v19  ;;  %v3071_v30 = vrot.slane %v2876_v0, 5 }
 0x291   : > { %v2340_v44 = vpop.f32.mrf.mxu3  ;;  %v3070_v58 = vrot.slane %v3065_v36, 4 }
 0x292   : > { %v2341_v59 = vadd.f32 %v2340_v44, %v5440_v62  ;;  %v2873_v62 = vld [vmem:[#allocation2 + $0xc0] sm:$0xff] }
 0x293   : > { %v3072_v22 = vsel %vm5526_vm15, %v3070_v58, %v3071_v30  ;;  %v3061_v23 = vrot.slane %v2873_v62, 5 }
 0x294   : > { %v2390_v4 = vadd.f32 %v5584_v55, %v2341_v59  ;;  %v3066_v55 = vsel %vm5526_vm15, %v4344_v38, %v3065_v36  ;;  %v3136_v43 = vunpack.c.l.b16 %v3072_v22 }
 0x295   : > { %v3133_v14 = vunpack.c.l.b16 %v3066_v55  ;;  %v3067_v49 = vrot.slane %v3061_v23, 4  ;;  %v5697_v47 = vpop.f32.mrf.mxu1 }
 0x296   : > { %2810 = vmatmul.bf16.gmra.mxu3 %v4128_v13  ;;  %v2711_v7 = vadd.f32 %v5580_v52, %v2390_v4  ;;  %v5677_v31 = vpop.f32.mrf.mxu2  ;;  %v4139_v4 = vld [vmem:[#allocation2 + $0x74] sm:$0xf] }
 0x297   : > { %v3166_v19 = vpack.c.b16 %v3136_v43, %v3133_v14  ;;  %v3069_v27 = vsel %vm5526_vm15, %v3067_v49, %v3068_v32  ;;  %v5687_v38 = vpop.f32.mrf.mxu0  ;;  %v4140_v62 = vor.u32 %v4495_v53, %v4139_v4 }
 0x298   : > { %v5668_v29 = vadd.f32 %v5590_v6, %v2711_v7  ;;  %v4343_v6 = vrot.slane %v2871_v35, 9  ;;  %v3135_v13 = vunpack.c.h.b16 %v3069_v27 }
 0x299   : > { %v2343_v12 = vpop.f32.mrf.mxu3 }
 0x29a   : > { %v2344_v52 = vadd.f32 %v2343_v12, %v5450_v16  ;;  %v3062_v60 = vsel %vm5526_vm15, %v4343_v6, %v3061_v23  ;;  %v3134_v16 = vunpack.c.l.b16 %v3069_v27  ;;  %v2878_v23 = vld [vmem:[#allocation2 + $0xe0] sm:$0xe] }
 0x29b   : > { %v3131_v44 = vunpack.c.l.b16 %v3062_v60  ;;  %v3132_v59 = vunpack.c.h.b16 %v3062_v60  ;;  %v4346_v43 = vrot.slane %v2878_v23, 9 }
 0x29c   : > { %v2393_v63 = vadd.f32 %v5600_v21, %v2344_v52  ;;  %v2882_v52 = vld [vmem:[#allocation2 + $0xf8] sm:$0x1] }
 0x29d   : > { %3472 = vmatmul.bf16.gmra.mxu2 %v3166_v19  ;;  %v3164_v0 = vpack.c.b16 %v3134_v16, %v3131_v44  ;;  %v3165_v21 = vpack.c.b16 %v3135_v13, %v3132_v59  ;;  %v2877_v16 = vld [vmem:[#allocation2 + $0xd8] sm:$0xee]  ;;  %v2881_v59 = vld [vmem:[#allocation2 + $0xf0] sm:$0x11]  ;;  %v5717_v23 = vpop.f32.mrf.mxu1 }
 0x29e   : > { %v2714_v36 = vadd.f32 %v5596_v9, %v2393_v63  ;;  %v5693_v12 = vpop.f32.mrf.mxu2  ;;  %v2880_v9 = vld [vmem:[#allocation2 + $0xec] sm:$0xf]  ;;  %v3082_v4 = vrot.slane %v2881_v59, 5 }
 0x29f   : > { %3423 = vmatmul.bf16.gmra.mxu1 %v3165_v21  ;;  %3374 = vmatmul.bf16.gmra.mxu0 %v3164_v0  ;;  %v3079_v22 = vrot.slane %v2880_v9, 5  ;;  %v5702_v32 = vpop.f32.mrf.mxu0  ;;  %v4498_v9 = vld [vmem:[#allocation2 + $0xa0] sm:$0xf0] }
 0x2a0   : > { %v5690_v58 = vadd.f32 %v5602_v51, %v2714_v36  ;;  %v3085_v51 = vrot.slane %v2882_v52, 5 }
 0x2a1   : > { %v2345_v7 = vpop.f32.mrf.mxu3  ;;  %v3084_v35 = vrot.slane %v3079_v22, 4 }
 0x2a2   : > { %v2346_v30 = vadd.f32 %v2345_v7, %v5466_v39  ;;  %v2879_v39 = vld [vmem:[#allocation2 + $0xe4] sm:$0xff] }
 0x2a3   : > { %v3086_v63 = vsel %vm5526_vm15, %v3084_v35, %v3085_v51  ;;  %v3075_v19 = vrot.slane %v2879_v39, 5 }
 0x2a4   : > { %v2395_v55 = vadd.f32 %v5606_v56, %v2346_v30  ;;  %v3080_v56 = vsel %vm5526_vm15, %v4346_v43, %v3079_v22  ;;  %v3142_v44 = vunpack.c.l.b16 %v3086_v63 }
 0x2a5   : > { %v3139_v27 = vunpack.c.l.b16 %v3080_v56  ;;  %v3081_v13 = vrot.slane %v3075_v19, 4  ;;  %v5729_v59 = vpop.f32.mrf.mxu1 }
 0x2a6   : > { %2815 = vmatmul.bf16.gmra.mxu3 %v4140_v62  ;;  %v2716_v14 = vadd.f32 %v5604_v48, %v2395_v55  ;;  %v5709_v60 = vpop.f32.mrf.mxu2  ;;  %v4151_v55 = vld [vmem:[#allocation2 + $0x98] sm:$0xf] }
 0x2a7   : > { %v3169_v36 = vpack.c.b16 %v3142_v44, %v3139_v27  ;;  %v3083_v21 = vsel %vm5526_vm15, %v3081_v13, %v3082_v4  ;;  %v5719_v43 = vpop.f32.mrf.mxu0  ;;  %v4152_v39 = vor.u32 %v4498_v9, %v4151_v55 }
 0x2a8   : > { %v5700_v6 = vadd.f32 %v5613_v34, %v2716_v14  ;;  %v4345_v34 = vrot.slane %v2877_v16, 9  ;;  %v3141_v62 = vunpack.c.h.b16 %v3083_v21 }
 0x2a9   : > { %v2348_v49 = vpop.f32.mrf.mxu3 }
 0x2aa   : > { %v2349_v48 = vadd.f32 %v2348_v49, %v5476_v3  ;;  %v3076_v0 = vsel %vm5526_vm15, %v4345_v34, %v3075_v19  ;;  %v3140_v3 = vunpack.c.l.b16 %v3083_v21  ;;  %v2884_v19 = vld [vmem:[#allocation2 + $0x104] sm:$0xe] }
 0x2ab   : > { %v3137_v7 = vunpack.c.l.b16 %v3076_v0  ;;  %v3138_v30 = vunpack.c.h.b16 %v3076_v0  ;;  %v4348_v44 = vrot.slane %v2884_v19, 9 }
 0x2ac   : > { %v2398_v53 = vadd.f32 %v5623_v45, %v2349_v48  ;;  %v2888_v48 = vld [vmem:[#allocation2 + $0x11c] sm:$0x1] }
 0x2ad   : > { %3477 = vmatmul.bf16.gmra.mxu2 %v3169_v36  ;;  %v3167_v52 = vpack.c.b16 %v3140_v3, %v3137_v7  ;;  %v3168_v45 = vpack.c.b16 %v3141_v62, %v3138_v30  ;;  %v2883_v7 = vld [vmem:[#allocation2 + $0xfc] sm:$0xee]  ;;  %v2887_v3 = vld [vmem:[#allocation2 + $0x114] sm:$0x11]  ;;  %v2738_v19 = vpop.f32.mrf.mxu1 }
 0x2ae   : > { %v2719_v22 = vadd.f32 %v5621_v24, %v2398_v53  ;;  %v5725_v49 = vpop.f32.mrf.mxu2  ;;  %v2886_v24 = vld [vmem:[#allocation2 + $0x110] sm:$0xf]  ;;  %v3096_v55 = vrot.slane %v2887_v3, 5 }
 0x2af   : > { %3428 = vmatmul.bf16.gmra.mxu1 %v3168_v45  ;;  %3379 = vmatmul.bf16.gmra.mxu0 %v3167_v52  ;;  %v3093_v63 = vrot.slane %v2886_v24, 5  ;;  %v5734_v4 = vpop.f32.mrf.mxu0  ;;  %v4501_v24 = vld [vmem:[#allocation2 + $0xc4] sm:$0xf0] }
 0x2b0   : > { %v5722_v35 = vadd.f32 %v5629_v50, %v2719_v22  ;;  %v3099_v50 = vrot.slane %v2888_v48, 5 }
 0x2b1   : > { %v2350_v14 = vpop.f32.mrf.mxu3  ;;  %v3098_v16 = vrot.slane %v3093_v63, 4 }
 0x2b2   : > { %v2351_v51 = vadd.f32 %v2350_v14, %v5490_v28  ;;  %v2885_v28 = vld [vmem:[#allocation2 + $0x108] sm:$0xff] }
 0x2b3   : > { %v3100_v53 = vsel %vm5526_vm15, %v3098_v16, %v3099_v50  ;;  %v3089_v36 = vrot.slane %v2885_v28, 5 }
 0x2b4   : > { %v2400_v56 = vadd.f32 %v5638_v26, %v2351_v51  ;;  %v3094_v26 = vsel %vm5526_vm15, %v4348_v44, %v3093_v63  ;;  %v3148_v21 = vunpack.c.l.b16 %v3100_v53 }
 0x2b5   : > { %v3145_v0 = vunpack.c.l.b16 %v3094_v26  ;;  %v3095_v62 = vrot.slane %v3089_v36, 4 }
 0x2b6   : > { %2820 = vmatmul.bf16.gmra.mxu3 %v4152_v39  ;;  %v2721_v27 = vadd.f32 %v5633_v5, %v2400_v56  ;;  %v5741_v30 = vpop.f32.mrf.mxu2  ;;  %v4163_v56 = vld [vmem:[#allocation2 + $0xbc] sm:$0xf] }
 0x2b7   : > { %v3172_v22 = vpack.c.b16 %v3148_v21, %v3145_v0  ;;  %v3097_v45 = vsel %vm5526_vm15, %v3095_v62, %v3096_v55  ;;  %v2417_v44 = vpop.f32.mrf.mxu0  ;;  %v4164_v50 = vor.u32 %v4501_v24, %v4163_v56  ;;  %v4175_v21 = vld [vmem:[#allocation2 + $0xe0] sm:$0xf] }
 0x2b8   : > { %v5732_v34 = vadd.f32 %v5645_v18, %v2721_v27  ;;  %v4347_v18 = vrot.slane %v2883_v7, 9  ;;  %v3147_v39 = vunpack.c.h.b16 %v3097_v45  ;;  %v4504_v7 = vld [vmem:[#allocation2 + $0xe8] sm:$0xf0] }
 0x2b9   : > { %v2353_v13 = vpop.f32.mrf.mxu3 }
 0x2ba   : > { %v2354_v5 = vadd.f32 %v2353_v13, %v5501_v40  ;;  %v3090_v52 = vsel %vm5526_vm15, %v4347_v18, %v3089_v36  ;;  %v3146_v40 = vunpack.c.l.b16 %v3097_v45 }
 0x2bb   : > { %v3143_v14 = vunpack.c.l.b16 %v3090_v52  ;;  %v3144_v51 = vunpack.c.h.b16 %v3090_v52 }
 0x2bc   : > { %v2403_v9 = vadd.f32 %v5655_v61, %v2354_v5  ;;  %v2740_v5 = vpop.f32.mrf.mxu1 }
 0x2bd   : > { %3482 = vmatmul.bf16.gmra.mxu2 %v3172_v22  ;;  %v3170_v48 = vpack.c.b16 %v3146_v40, %v3143_v14  ;;  %v3171_v27 = vpack.c.b16 %v3147_v39, %v3144_v51  ;;  %v4187_v14 = vld [vmem:[#allocation2 + $0x104] sm:$0xf]  ;;  %v4507_v40 = vld [vmem:[#allocation2 + $0x10c] sm:$0xf0] }
 0x2be   : > { %v2724_v63 = vadd.f32 %v5653_v33, %v2403_v9  ;;  %v2787_v13 = vpop.f32.mrf.mxu2 }
 0x2bf   : > { %3433 = vmatmul.bf16.gmra.mxu1 %v3171_v27  ;;  %3384 = vmatmul.bf16.gmra.mxu0 %v3170_v48 }
 0x2c0   : > { %v5750_v16 = vadd.f32 %v5661_v10, %v2724_v63  ;;  %v2419_v10 = vpop.f32.mrf.mxu0 }
 0x2c1   : > { %v2355_v61 = vpop.f32.mrf.mxu3 }
 0x2c2   : > { %v2356_v15 = vadd.f32 %v2355_v61, %v5515_v11 }
 0x2c4   : > { %v2405_v28 = vadd.f32 %v5670_v41, %v2356_v15  ;;  %v3399_v55 = vpop.f32.mrf.mxu1 }
 0x2c6   : > { %2825 = vmatmul.bf16.gmra.mxu3 %v4164_v50  ;;  %v2726_v26 = vadd.f32 %v5665_v8, %v2405_v28  ;;  %v2789_v41 = vpop.f32.mrf.mxu2 }
 0x2c8   : > { %v5756_v33 = vadd.f32 %v5677_v31, %v2726_v26  ;;  %v4176_v31 = vor.u32 %v4504_v7, %v4175_v21 }
 0x2c9   : > { %v2358_v53 = vpop.f32.mrf.mxu3 }
 0x2ca   : > { %v2359_v36 = vadd.f32 %v2358_v53, %v5530_v17  ;;  %v3350_v17 = vpop.f32.mrf.mxu0 }
 0x2cb   : > { %v3400_v53 = vadd.f32 %v3399_v55, %v3350_v17 }
 0x2cc   : > { %v2408_v0 = vadd.f32 %v5687_v38, %v2359_v36  ;;  %v3401_v45 = vpop.f32.mrf.mxu1 }
 0x2ce   : > { %v2729_v11 = vadd.f32 %v5685_v37, %v2408_v0 }
 0x2d0   : > { %v5762_v3 = vadd.f32 %v5693_v12, %v2729_v11  ;;  %v3448_v22 = vpop.f32.mrf.mxu2 }
 0x2d1   : > { %v2360_v18 = vpop.f32.mrf.mxu3 }
 0x2d2   : > { %v2361_v8 = vadd.f32 %v2360_v18, %v5548_v57 }
 0x2d4   : > { %v2410_v62 = vadd.f32 %v5702_v32, %v2361_v8  ;;  %v3352_v32 = vpop.f32.mrf.mxu0 }
 0x2d5   : > { %v3402_v7 = vadd.f32 %v3401_v45, %v3352_v32 }
 0x2d6   : > { %2830 = vmatmul.bf16.gmra.mxu3 %v4176_v31  ;;  %v2731_v9 = vadd.f32 %v5697_v47, %v2410_v62 }
 0x2d8   : > { %v5768_v38 = vadd.f32 %v5709_v60, %v2731_v9  ;;  %v4188_v60 = vor.u32 %v4507_v40, %v4187_v14  ;;  %v3450_v56 = vpop.f32.mrf.mxu2 }
 0x2d9   : > { %v2363_v37 = vpop.f32.mrf.mxu3  ;;  %v3451_v8 = vadd.f32 %v3450_v56, %v3402_v7 }
 0x2da   : > { %v2364_v52 = vadd.f32 %v2363_v37, %v5557_v2 }
 0x2dc   : > { %v2413_v12 = vadd.f32 %v5719_v43, %v2364_v52  ;;  %v3404_v43 = vpop.f32.mrf.mxu1  ;;  %v3355_v48 = vpop.f32.mrf.mxu0 }
 0x2dd   : > { %v3405_v62 = vadd.f32 %v3404_v43, %v3355_v48 }
 0x2de   : > { %v2734_v57 = vadd.f32 %v5717_v23, %v2413_v12 }
 0x2e0   : > { %v5774_v51 = vadd.f32 %v5725_v49, %v2734_v57  ;;  %v3453_v61 = vpop.f32.mrf.mxu2 }
 0x2e1   : > { %v2365_v39 = vpop.f32.mrf.mxu3  ;;  %v3454_v12 = vadd.f32 %v3453_v61, %v3405_v62 }
 0x2e2   : > { %v2366_v47 = vadd.f32 %v2365_v39, %v5573_v20 }
 0x2e4   : > { %v2415_v24 = vadd.f32 %v5734_v4, %v2366_v47  ;;  %v3406_v4 = vpop.f32.mrf.mxu1  ;;  %v3357_v26 = vpop.f32.mrf.mxu0 }
 0x2e6   : > { %2835 = vmatmul.bf16.gmra.mxu3 %v4188_v60  ;;  %v2736_v2 = vadd.f32 %v5729_v59, %v2415_v24  ;;  %v3407_v60 = vadd.f32 %v3406_v4, %v3357_v26 }
 0x2e8   : > { %v5780_v63 = vadd.f32 %v5741_v30, %v2736_v2  ;;  %v3455_v0 = vpop.f32.mrf.mxu2  ;;  %v3449_v30 = vadd.f32 %v3448_v22, %v3400_v53 }
 0x2e9   : > { %v2368_v23 = vpop.f32.mrf.mxu3 }
 0x2ea   : > { %v2369_v27 = vadd.f32 %v2368_v23, %v5582_v54  ;;  %v3456_v23 = vadd.f32 %v3455_v0, %v3407_v60 }
 0x2ec   : > { %v2418_v49 = vadd.f32 %v2417_v44, %v2369_v27 }
 0x2ee   : > { %v2739_v15 = vadd.f32 %v2738_v19, %v2418_v49  ;;  %v5792_v19 = vld [vmem:[%s5874_s5] ss:$0 sm:$0xff] }
 0x2f0   : > { %v5783_v50 = vadd.f32 %v2787_v13, %v2739_v15  ;;  %v3409_v13 = vpop.f32.mrf.mxu1 }
 0x2f1   : > { %v2370_v20 = vpop.f32.mrf.mxu3 }
 0x2f2   : > { %v2371_v28 = vadd.f32 %v2370_v20, %v5598_v42  ;;  %v3360_v42 = vpop.f32.mrf.mxu0 }
 0x2f3   : > { %v3410_v49 = vadd.f32 %v3409_v13, %v3360_v42 }
 0x2f4   : > { %v2420_v59 = vadd.f32 %v2419_v10, %v2371_v28 }
 0x2f6   : > { %v2741_v36 = vadd.f32 %v2740_v5, %v2420_v59  ;;  %v5798_v5 = vld [vmem:[%s5875_s6] ss:$0 sm:$0xff] }
 0x2f8   : > { %v5786_v11 = vadd.f32 %v2789_v41, %v2741_v36  ;;  %v3458_v41 = vpop.f32.mrf.mxu2  ;;  %v3411_v9 = vpop.f32.mrf.mxu1 }
 0x2f9   : > { %v2801_v21 = vpop.f32.mrf.mxu3  ;;  %v3459_v4 = vadd.f32 %v3458_v41, %v3410_v49 }
 0x2fa   : > { %v2802_v54 = vadd.f32 %v2801_v21, %v5626_v46  ;;  %v3362_v37 = vpop.f32.mrf.mxu0 }
 0x2fc   : > { %v3488_v44 = vadd.f32 %v3449_v30, %v2802_v54 }
 0x2fe   : > { %v3508_v18 = vmul.f32 %v5792_v19, %v3488_v44  ;;  %v3412_v44 = vadd.f32 %v3411_v9, %v3362_v37 }
 0x300   : > { %v3528_v31 = vadd.f32 %v5798_v5, %v3508_v18  ;;  %v3414_v24 = vpop.f32.mrf.mxu1 }
 0x301   : > { %v2803_v10 = vpop.f32.mrf.mxu3 }
 0x302   : > { %v2804_v46 = vadd.f32 %v2803_v10, %v5636_v25  ;;  %v3560_v22 = vmul.f32 0.2, %v3528_v31  ;;  %vm3544_vm2 = vcmp.ge.f32.partialorder %v3528_v31, 0.0  ;;  %v3460_v25 = vpop.f32.mrf.mxu2  ;;  %v3365_v43 = vpop.f32.mrf.mxu0 }
 0x303   : > { %v3461_v18 = vadd.f32 %v3460_v25, %v3412_v44 }
 0x304   : > { %v3489_v55 = vadd.f32 %v3451_v8, %v2804_v46  ;;  %v3576_v40 = vsel %vm3544_vm2, %v3528_v31, %v3560_v22  ;;  %v3415_v8 = vadd.f32 %v3414_v24, %v3365_v43 }
 0x306   : > { %v3509_v17 = vmul.f32 %v5792_v19, %v3489_v55 }
 0x308   : > { %v3529_v52 = vadd.f32 %v5798_v5, %v3509_v17  ;;  %v3416_v36 = vpop.f32.mrf.mxu1 }
 0x309   : > { %v2806_v45 = vpop.f32.mrf.mxu3 }
 0x30a   : > { %vm3545_vm1 = vcmp.ge.f32.partialorder %v3529_v52, 0.0  ;;  %v3561_v57 = vmul.f32 0.2, %v3529_v52  ;;  %v2807_v14 = vadd.f32 %v2806_v45, %v5658_v1  ;;  %v3463_v1 = vpop.f32.mrf.mxu2 }
 0x30b   : > { %v3464_v9 = vadd.f32 %v3463_v1, %v3415_v8 }
 0x30c   : > { %v3577_v32 = vsel %vm3545_vm1, %v3529_v52, %v3561_v57  ;;  %v3490_v39 = vadd.f32 %v3454_v12, %v2807_v14 }
 0x30d   : > { %v4583_v47 = vpack.c.bf16 %v3577_v32, %v3576_v40 }
 0x30e   : > { %v3510_v56 = vmul.f32 %v5792_v19, %v3490_v39 }
 0x30f   : > { %4584 = vst [vmem:[%s4826_s16] sm:$0xff] %v4583_v47  }
 0x310   : > { %v3530_v27 = vadd.f32 %v5798_v5, %v3510_v56 }
 0x311   : > { %v2808_v2 = vpop.f32.mrf.mxu3 }
 0x312   : > { %v2809_v48 = vadd.f32 %v2808_v2, %v5668_v29  ;;  %v3562_v20 = vmul.f32 0.2, %v3530_v27  ;;  %vm3546_vm5 = vcmp.ge.f32.partialorder %v3530_v27, 0.0  ;;  %v3367_v29 = vpop.f32.mrf.mxu0  ;;  %v3465_v13 = vpop.f32.mrf.mxu2 }
 0x313   : > { %v3417_v25 = vadd.f32 %v3416_v36, %v3367_v29 }
 0x314   : > { %v3491_v61 = vadd.f32 %v3456_v23, %v2809_v48  ;;  %v3578_v0 = vsel %vm3546_vm5, %v3530_v27, %v3562_v20 }
 0x315   : > { %v3466_v60 = vadd.f32 %v3465_v13, %v3417_v25 }
 0x316   : > { %v3511_v15 = vmul.f32 %v5792_v19, %v3491_v61 }
 0x318   : > { %v3531_v28 = vadd.f32 %v5798_v5, %v3511_v15 }
 0x319   : > { %v2811_v26 = vpop.f32.mrf.mxu3 }
 0x31a   : > { %vm3547_vm8 = vcmp.ge.f32.partialorder %v3531_v28, 0.0  ;;  %v3563_v53 = vmul.f32 0.2, %v3531_v28  ;;  %v2812_v59 = vadd.f32 %v2811_v26, %v5690_v58  ;;  %v3419_v58 = vpop.f32.mrf.mxu1  ;;  %v3370_v31 = vpop.f32.mrf.mxu0 }
 0x31b   : > { %v3468_v22 = vpop.f32.mrf.mxu2  ;;  %v3420_v43 = vadd.f32 %v3419_v58, %v3370_v31 }
 0x31c   : > { %v3579_v30 = vsel %vm3547_vm8, %v3531_v28, %v3563_v53  ;;  %v3492_v21 = vadd.f32 %v3459_v4, %v2812_v59 }
 0x31d   : > { %v4588_v54 = vpack.c.bf16 %v3579_v30, %v3578_v0  ;;  %v3469_v49 = vadd.f32 %v3468_v22, %v3420_v43 }
 0x31e   : > { %v3512_v42 = vmul.f32 %v5792_v19, %v3492_v21 }
 0x31f   : > { %4620 = vst [vmem:[%s4826_s16 + $0x8] sm:$0xff] %v4588_v54  }
 0x320   : > { %v3532_v41 = vadd.f32 %v5798_v5, %v3512_v42 }
 0x321   : > { %v2813_v7 = vpop.f32.mrf.mxu3 }
 0x322   : > { %v2814_v10 = vadd.f32 %v2813_v7, %v5700_v6  ;;  %v3564_v55 = vmul.f32 0.2, %v3532_v41  ;;  %vm3548_vm13 = vcmp.ge.f32.partialorder %v3532_v41, 0.0  ;;  %v3421_v40 = vpop.f32.mrf.mxu1  ;;  %v3372_v32 = vpop.f32.mrf.mxu0 }
 0x323   : > { %v3470_v24 = vpop.f32.mrf.mxu2  ;;  %v3422_v36 = vadd.f32 %v3421_v40, %v3372_v32 }
 0x324   : > { %v3493_v46 = vadd.f32 %v3461_v18, %v2814_v10  ;;  %v3580_v12 = vsel %vm3548_vm13, %v3532_v41, %v3564_v55 }
 0x325   : > { %v3471_v30 = vadd.f32 %v3470_v24, %v3422_v36 }
 0x326   : > { %v3513_v62 = vmul.f32 %v5792_v19, %v3493_v46 }
 0x328   : > { %v3533_v17 = vadd.f32 %v5798_v5, %v3513_v62 }
 0x329   : > { %v2816_v37 = vpop.f32.mrf.mxu3 }
 0x32a   : > { %vm3549_vm3 = vcmp.ge.f32.partialorder %v3533_v17, 0.0  ;;  %v3565_v52 = vmul.f32 0.2, %v3533_v17  ;;  %v2817_v6 = vadd.f32 %v2816_v37, %v5722_v35  ;;  %v3424_v61 = vpop.f32.mrf.mxu1  ;;  %v3375_v15 = vpop.f32.mrf.mxu0 }
 0x32b   : > { %v3473_v59 = vpop.f32.mrf.mxu2  ;;  %v3425_v42 = vadd.f32 %v3424_v61, %v3375_v15 }
 0x32c   : > { %v3581_v45 = vsel %vm3549_vm3, %v3533_v17, %v3565_v52  ;;  %v3494_v57 = vadd.f32 %v3464_v9, %v2817_v6 }
 0x32d   : > { %v4593_v14 = vpack.c.bf16 %v3581_v45, %v3580_v12  ;;  %v3474_v8 = vadd.f32 %v3473_v59, %v3425_v42 }
 0x32e   : > { %v3514_v39 = vmul.f32 %v5792_v19, %v3494_v57 }
 0x32f   : > { %4621 = vst [vmem:[%s4826_s16 + $0x10] sm:$0xff] %v4593_v14  }
 0x330   : > { %v3534_v2 = vadd.f32 %v5798_v5, %v3514_v39 }
 0x331   : > { %v2818_v47 = vpop.f32.mrf.mxu3 }
 0x332   : > { %v2819_v56 = vadd.f32 %v2818_v47, %v5732_v34  ;;  %v3566_v48 = vmul.f32 0.2, %v3534_v2  ;;  %vm3550_vm7 = vcmp.ge.f32.partialorder %v3534_v2, 0.0  ;;  %v3426_v54 = vpop.f32.mrf.mxu1  ;;  %v3377_v44 = vpop.f32.mrf.mxu0 }
 0x333   : > { %v3475_v18 = vpop.f32.mrf.mxu2  ;;  %v3427_v22 = vadd.f32 %v3426_v54, %v3377_v44 }
 0x334   : > { %v3495_v23 = vadd.f32 %v3466_v60, %v2819_v56  ;;  %v3582_v28 = vsel %vm3550_vm7, %v3534_v2, %v3566_v48 }
 0x335   : > { %v3476_v45 = vadd.f32 %v3475_v18, %v3427_v22 }
 0x336   : > { %v3515_v35 = vmul.f32 %v5792_v19, %v3495_v23 }
 0x338   : > { %v3535_v27 = vadd.f32 %v5798_v5, %v3515_v35 }
 0x339   : > { %v2821_v1 = vpop.f32.mrf.mxu3 }
 0x33a   : > { %vm3551_vm11 = vcmp.ge.f32.partialorder %v3535_v27, 0.0  ;;  %v3567_v20 = vmul.f32 0.2, %v3535_v27  ;;  %v2822_v34 = vadd.f32 %v2821_v1, %v5750_v16  ;;  %v3429_v17 = vpop.f32.mrf.mxu1  ;;  %v3380_v37 = vpop.f32.mrf.mxu0 }
 0x33b   : > { %v3478_v12 = vpop.f32.mrf.mxu2  ;;  %v3430_v25 = vadd.f32 %v3429_v17, %v3380_v37 }
 0x33c   : > { %v3583_v4 = vsel %vm3551_vm11, %v3535_v27, %v3567_v20  ;;  %v3496_v26 = vadd.f32 %v3469_v49, %v2822_v34 }
 0x33d   : > { %v4598_v53 = vpack.c.bf16 %v3583_v4, %v3582_v28  ;;  %v3479_v56 = vadd.f32 %v3478_v12, %v3430_v25 }
 0x33e   : > { %v3516_v29 = vmul.f32 %v5792_v19, %v3496_v26 }
 0x33f   : > { %4622 = vst [vmem:[%s4826_s16 + $0x18] sm:$0xff] %v4598_v53  }
 0x340   : > { %v3536_v13 = vadd.f32 %v5798_v5, %v3516_v29 }
 0x341   : > { %v2823_v0 = vpop.f32.mrf.mxu3 }
 0x342   : > { %v2824_v21 = vadd.f32 %v2823_v0, %v5756_v33  ;;  %v3568_v10 = vmul.f32 0.2, %v3536_v13  ;;  %vm3552_vm9 = vcmp.ge.f32.partialorder %v3536_v13, 0.0  ;;  %v3431_v32 = vpop.f32.mrf.mxu1  ;;  %v3382_v39 = vpop.f32.mrf.mxu0 }
 0x343   : > { %v3432_v49 = vadd.f32 %v3431_v32, %v3382_v39 }
 0x344   : > { %v3497_v7 = vadd.f32 %v3471_v30, %v2824_v21  ;;  %v3584_v31 = vsel %vm3552_vm9, %v3536_v13, %v3568_v10 }
 0x346   : > { %v3517_v16 = vmul.f32 %v5792_v19, %v3497_v7 }
 0x348   : > { %v3537_v41 = vadd.f32 %v5798_v5, %v3517_v16 }
 0x349   : > { %v2826_v46 = vpop.f32.mrf.mxu3 }
 0x34a   : > { %vm3553_vm10 = vcmp.ge.f32.partialorder %v3537_v41, 0.0  ;;  %v3569_v58 = vmul.f32 0.2, %v3537_v41  ;;  %v2827_v33 = vadd.f32 %v2826_v46, %v5762_v3  ;;  %v3434_v1 = vpop.f32.mrf.mxu1  ;;  %v3385_v15 = vpop.f32.mrf.mxu0 }
 0x34b   : > { %v3435_v26 = vadd.f32 %v3434_v1, %v3385_v15 }
 0x34c   : > { %v3585_v62 = vsel %vm3553_vm10, %v3537_v41, %v3569_v58  ;;  %v3498_v55 = vadd.f32 %v3474_v8, %v2827_v33 }
 0x34d   : > { %v4603_v9 = vpack.c.bf16 %v3585_v62, %v3584_v31 }
 0x34e   : > { %v3518_v52 = vmul.f32 %v5792_v19, %v3498_v55 }
 0x34f   : > { %4623 = vst [vmem:[%s4826_s16 + $0x20] sm:$0xff] %v4603_v9  }
 0x350   : > { %v3538_v14 = vadd.f32 %v5798_v5, %v3518_v52 }
 0x351   : > { %v2828_v6 = vpop.f32.mrf.mxu3 }
 0x352   : > { %v2829_v57 = vadd.f32 %v2828_v6, %v5768_v38  ;;  %v3570_v47 = vmul.f32 0.2, %v3538_v14  ;;  %vm3554_vm6 = vcmp.ge.f32.partialorder %v3538_v14, 0.0  ;;  %v3480_v38 = vpop.f32.mrf.mxu2  ;;  %v3387_v44 = vpop.f32.mrf.mxu0 }
 0x353   : > { %v3481_v34 = vadd.f32 %v3480_v38, %v3432_v49 }
 0x354   : > { %v3499_v40 = vadd.f32 %v3476_v45, %v2829_v57  ;;  %v3586_v23 = vsel %vm3554_vm6, %v3538_v14, %v3570_v47 }
 0x356   : > { %v3519_v3 = vmul.f32 %v5792_v19, %v3499_v40 }
 0x358   : > { %v3539_v60 = vadd.f32 %v5798_v5, %v3519_v3 }
 0x359   : > { %v2831_v24 = vpop.f32.mrf.mxu3 }
 0x35a   : > { %vm3555_vm0 = vcmp.ge.f32.partialorder %v3539_v60, 0.0  ;;  %v3571_v2 = vmul.f32 0.2, %v3539_v60  ;;  %v2832_v43 = vadd.f32 %v2831_v24, %v5774_v51  ;;  %v3483_v51 = vpop.f32.mrf.mxu2 }
 0x35b   : > { %v3484_v0 = vadd.f32 %v3483_v51, %v3435_v26 }
 0x35c   : > { %v3587_v35 = vsel %vm3555_vm0, %v3539_v60, %v3571_v2  ;;  %v3500_v48 = vadd.f32 %v3479_v56, %v2832_v43 }
 0x35d   : > { %v4608_v27 = vpack.c.bf16 %v3587_v35, %v3586_v23 }
 0x35e   : > { %v3520_v61 = vmul.f32 %v5792_v19, %v3500_v48 }
 0x35f   : > { %4624 = vst [vmem:[%s4826_s16 + $0x28] sm:$0xff] %v4608_v27  }
 0x360   : > { %v3540_v4 = vadd.f32 %v5798_v5, %v3520_v61 }
 0x361   : > { %v2833_v20 = vpop.f32.mrf.mxu3 }
 0x362   : > { %v2834_v28 = vadd.f32 %v2833_v20, %v5780_v63  ;;  %v3572_v36 = vmul.f32 0.2, %v3540_v4  ;;  %vm3556_vm4 = vcmp.ge.f32.partialorder %v3540_v4, 0.0  ;;  %v3436_v63 = vpop.f32.mrf.mxu1  ;;  %v3485_v10 = vpop.f32.mrf.mxu2 }
 0x363   : > { %v3437_v18 = vadd.f32 %v3436_v63, %v3387_v44 }
 0x364   : > { %v3501_v53 = vadd.f32 %v3481_v34, %v2834_v28  ;;  %v3588_v13 = vsel %vm3556_vm4, %v3540_v4, %v3572_v36 }
 0x365   : > { %v3486_v46 = vadd.f32 %v3485_v10, %v3437_v18 }
 0x366   : > { %v3521_v59 = vmul.f32 %v5792_v19, %v3501_v53 }
 0x368   : > { %v3541_v29 = vadd.f32 %v5798_v5, %v3521_v59 }
 0x369   : > { %v2836_v30 = vpop.f32.mrf.mxu3 }
 0x36a   : > { %vm3557_vm12 = vcmp.ge.f32.partialorder %v3541_v29, 0.0  ;;  %v3573_v21 = vmul.f32 0.2, %v3541_v29  ;;  %v2837_v54 = vadd.f32 %v2836_v30, %v5783_v50 }
 0x36c   : > { %v3589_v42 = vsel %vm3557_vm12, %v3541_v29, %v3573_v21  ;;  %v3502_v7 = vadd.f32 %v3484_v0, %v2837_v54 }
 0x36d   : > { %v4613_v16 = vpack.c.bf16 %v3589_v42, %v3588_v13 }
 0x36e   : > { %v3522_v41 = vmul.f32 %v5792_v19, %v3502_v7 }
 0x36f   : > { %4625 = vst [vmem:[%s4826_s16 + $0x30] sm:$0xff] %v4613_v16  }
 0x370   : > { %v3542_v33 = vadd.f32 %v5798_v5, %v3522_v41 }
 0x371   : > { %v2838_v8 = vpop.f32.mrf.mxu3 }
 0x372   : > { %v2839_v58 = vadd.f32 %v2838_v8, %v5786_v11  ;;  %v3574_v62 = vmul.f32 0.2, %v3542_v33  ;;  %vm3558_vm14 = vcmp.ge.f32.partialorder %v3542_v33, 0.0 }
 0x374   : > { %v3503_v31 = vadd.f32 %v3486_v46, %v2839_v58  ;;  %v3590_v9 = vsel %vm3558_vm14, %v3542_v33, %v3574_v62 }
 0x376   : > { %v3523_v50 = vmul.f32 %v5792_v19, %v3503_v31 }
 0x378   : > { %v3543_v55 = vadd.f32 %v5798_v5, %v3523_v50 }
 0x37a   : > { %vm3559_vm15 = vcmp.ge.f32.partialorder %v3543_v55, 0.0  ;;  %v3575_v17 = vmul.f32 0.2, %v3543_v55 }
 0x37c   : > { %v3591_v37 = vsel %vm3559_vm15, %v3543_v55, %v3575_v17 }
 0x37d   : > { %v4618_v22 = vpack.c.bf16 %v3591_v37, %v3590_v9 }
 0x37f   : > { %4626 = vst [vmem:[%s4826_s16 + $0x38] sm:$0xff] %v4618_v22  }
 0x380 PF: > { %s17_s28 = sadd.s32 1, %s4714_s28   ;;  %s5893_s24 = smov %s4706_s26 }
 0x381   : > { %p14_p9 = scmp.ge.s32.totalorder %s17_s28, 6   ;;  %s5894_s25 = smov %s4710_s27 }
 0x382   : > { %s5895_s26 = smov %s5898_s29  ;;  %s5896_s27 = smov %s5902_s30 }
 0x383   :  { %16 = sbr.rel (!%p14_p9) target bundleno = 3 (0x3), region = 94 }

</bundles_post_ra>
